<compile_context>
chip_gen: v5e
topology: v5e:2x2
jax: 0.10.0
libtpu: 0.0.40
codegen_flags: <defaults>
</compile_context>

<pallas_src>
import functools

import jax
import jax.numpy as jnp
from jax import lax
from jax.experimental import pallas as pl
from jax.experimental.pallas import tpu as pltpu

EPS = 1e-5


# ---------------------------------------------------------------------------
# BN folding (inference mode)
# ---------------------------------------------------------------------------
def _fold_bn(gamma, beta, mean, var):
    scale = gamma * lax.rsqrt(var + EPS)
    bias = beta - mean * scale
    return scale, bias


def _round_up(x, m):
    return (x + m - 1) // m * m


def _vmem_limit_bytes():
    # 128 MiB physical VMEM on v5e/v6e, 64 MiB per TensorCore on v7x.
    try:
        cap = int(pltpu.get_tpu_info().vmem_capacity_bytes)
    except Exception:  # pragma: no cover - conservative fallback
        cap = 64 * 1024 * 1024
    return min(cap * 3 // 4, 100 * 1024 * 1024)


# ---------------------------------------------------------------------------
# Fused bottleneck kernel (one image per grid step, stride=1, dilation=d)
# ---------------------------------------------------------------------------
def _make_bottleneck_kernel(H, W, Cin, Pp, Cout, d):
    HW = H * W
    Hp, Wp = H + 2 * d, W + 2 * d

    def kernel(x_ref, w1_ref, b1_ref, w2_ref, b2_ref, w3_ref, b3_ref, o_ref,
               out1_ref):
        # Zero only the d-wide border of out1 (== conv2's spatial zero-pad).
        # The interior is fully overwritten every step and the border is never
        # written by the interior store below -- if a future stride/halo change
        # writes into the border, this init must be revisited.  Done every step
        # (cheap) so each TensorCore's private scratch is always initialized.
        zrow = jnp.zeros((d, Wp, Pp), out1_ref.dtype)
        zcol = jnp.zeros((H, d, Pp), out1_ref.dtype)
        out1_ref[0:d, :, :] = zrow
        out1_ref[Hp - d:Hp, :, :] = zrow
        out1_ref[d:d + H, 0:d, :] = zcol
        out1_ref[d:d + H, Wp - d:Wp, :] = zcol

        # conv1 (1x1) + bn1 + relu   (bn1 scale pre-folded into w1).
        # bf16 MXU operands, f32 accumulation; bias/ReLU in f32.
        x_bf = x_ref[0].reshape(HW, Cin).astype(jnp.bfloat16)
        y1 = jnp.dot(x_bf, w1_ref[...], preferred_element_type=jnp.float32)
        y1 = jnp.maximum(y1 + b1_ref[...], 0.0)
        out1_ref[d:d + H, d:d + W, :] = y1.reshape(H, W, Pp).astype(out1_ref.dtype)

        # conv2 (3x3, dilation=d, pad=d, stride=1): 9 accumulated matmuls on
        # shifted VMEM views of the zero-bordered out1 -- no materialized
        # im2col.  (The kj*d W-shift is a sublane-offset load; if it shows up
        # as XLU/copy hotspots in a bundle dump, switch to pltpu.roll.)
        acc = jnp.zeros((HW, Pp), jnp.float32)
        for ki in range(3):
            for kj in range(3):
                t = ki * 3 + kj
                tap = out1_ref[ki * d:ki * d + H, kj * d:kj * d + W, :]
                acc = acc + jnp.dot(tap.reshape(HW, Pp),
                                    w2_ref[t * Pp:(t + 1) * Pp, :],
                                    preferred_element_type=jnp.float32)
        y2 = jnp.maximum(acc + b2_ref[...], 0.0)

        # conv3 (1x1) + bn3 + residual add + relu   (downsample=None path).
        y3 = jnp.dot(y2.astype(jnp.bfloat16), w3_ref[...],
                     preferred_element_type=jnp.float32)
        residual = x_ref[0].reshape(HW, Cin).astype(jnp.float32)
        y3 = jnp.maximum(y3 + b3_ref[...] + residual, 0.0)
        o_ref[0] = y3.reshape(H, W, Cout).astype(o_ref.dtype)

    return kernel


# ---------------------------------------------------------------------------
# Wrapper
# ---------------------------------------------------------------------------
@functools.partial(jax.jit, static_argnums=(2, 3))
def bottleneck_forward(x, params, stride=1, dilation=1):
    N, H, W, Cin = x.shape
    planes = params["w1"].shape[1]
    cout = params["w3"].shape[1]
    d = int(dilation)

    # With downsample=None (this module's default), the residual add requires
    # stride == 1 and Cin == Cout (PyTorch would shape-error otherwise).
    assert stride == 1 and Cin == cout, \
        "downsample=None path requires stride=1 and Cin == planes*expansion"

    s1, b1 = _fold_bn(*params["bn1"])
    s2, b2 = _fold_bn(*params["bn2"])
    s3, b3 = _fold_bn(*params["bn3"])

    # Lane-align the bottleneck width: pad planes up to a multiple of 128 with
    # zero weights/biases (math unchanged, stores/loads become lane-dense and
    # the MXU N-dim full width).  BN scale folded into the conv weights; only
    # the biases enter the kernel (in f32).
    P = planes
    Pp = _round_up(P, 128)

    w1s = params["w1"] * s1[None, :]                      # (Cin, P)
    w2s = params["w2"] * s2                               # (3,3,P,P) HWIO
    w3s = params["w3"] * s3[None, :]                      # (P, Cout)

    w1p = jnp.zeros((Cin, Pp), jnp.float32).at[:, :P].set(w1s).astype(jnp.bfloat16)
    w2p = (jnp.zeros((3, 3, Pp, Pp), jnp.float32).at[:, :, :P, :P].set(w2s)
           .reshape(9 * Pp, Pp).astype(jnp.bfloat16))
    w3p = jnp.zeros((Pp, cout), jnp.float32).at[:P, :].set(w3s).astype(jnp.bfloat16)
    b1p = jnp.zeros((1, Pp), jnp.float32).at[0, :P].set(b1)
    b2p = jnp.zeros((1, Pp), jnp.float32).at[0, :P].set(b2)
    b3p = b3.reshape(1, cout).astype(jnp.float32)

    kernel = _make_bottleneck_kernel(H, W, Cin, Pp, cout, d)

    itemsize = jnp.dtype(x.dtype).itemsize
    flops = 2 * N * H * W * (Cin * Pp + 9 * Pp * Pp + Pp * cout)
    bytes_accessed = (N * H * W * (Cin + cout)) * itemsize \
        + 2 * (Cin * Pp + 9 * Pp * Pp + Pp * cout) + 4 * (2 * Pp + cout)

    return pl.pallas_call(
        kernel,
        out_shape=jax.ShapeDtypeStruct((N, H, W, cout), x.dtype),
        grid=(N,),
        in_specs=[
            pl.BlockSpec((1, H, W, Cin), lambda n: (n, 0, 0, 0)),   # x / residual
            pl.BlockSpec((Cin, Pp), lambda n: (0, 0)),              # w1 (folded, bf16)
            pl.BlockSpec((1, Pp), lambda n: (0, 0)),                # b1 (f32)
            pl.BlockSpec((9 * Pp, Pp), lambda n: (0, 0)),           # w2 (folded, bf16)
            pl.BlockSpec((1, Pp), lambda n: (0, 0)),                # b2 (f32)
            pl.BlockSpec((Pp, cout), lambda n: (0, 0)),             # w3 (folded, bf16)
            pl.BlockSpec((1, cout), lambda n: (0, 0)),              # b3 (f32)
        ],
        out_specs=pl.BlockSpec((1, H, W, cout), lambda n: (n, 0, 0, 0)),
        scratch_shapes=[
            pltpu.VMEM((H + 2 * d, W + 2 * d, Pp), jnp.bfloat16),   # padded out1
        ],
        compiler_params=pltpu.CompilerParams(
            dimension_semantics=("parallel",),       # shard batch across TCs (v7x)
            vmem_limit_bytes=_vmem_limit_bytes(),    # per-generation budget
        ),
        cost_estimate=pl.CostEstimate(flops=flops, transcendentals=0,
                                      bytes_accessed=bytes_accessed),
    )(x, w1p, b1p, w2p, b2p, w3p, b3p)


# ---------------------------------------------------------------------------
# Pure-JAX reference
# ---------------------------------------------------------------------------
def _bn_ref(y, gamma, beta, mean, var):
    return (y - mean) * lax.rsqrt(var + EPS) * gamma + beta


def bottleneck_reference(x, params, stride=1, dilation=1):
    dn = ("NHWC", "HWIO", "NHWC")
    planes = params["w1"].shape[1]
    cout = params["w3"].shape[1]

    y = lax.conv_general_dilated(x, params["w1"].reshape(1, 1, -1, planes),
                                 (1, 1), "VALID", dimension_numbers=dn)
    y = jax.nn.relu(_bn_ref(y, *params["bn1"]))
    y = lax.conv_general_dilated(y, params["w2"], (stride, stride),
                                 ((dilation, dilation), (dilation, dilation)),
                                 rhs_dilation=(dilation, dilation),
                                 dimension_numbers=dn)
    y = jax.nn.relu(_bn_ref(y, *params["bn2"]))
    y = lax.conv_general_dilated(y, params["w3"].reshape(1, 1, planes, cout),
                                 (1, 1), "VALID", dimension_numbers=dn)
    y = _bn_ref(y, *params["bn3"])
    return jax.nn.relu(y + x)


# ---------------------------------------------------------------------------
def _make_params(key, inplanes, planes, expansion=4):
    ks = jax.random.split(key, 16)

    def bn(k, c):
        kk = jax.random.split(k, 4)
        gamma = 1.0 + 0.1 * jax.random.normal(kk[0], (c,), jnp.float32)
        beta = 0.1 * jax.random.normal(kk[1], (c,), jnp.float32)
        mean = 0.1 * jax.random.normal(kk[2], (c,), jnp.float32)
        var = jnp.abs(jax.random.normal(kk[3], (c,), jnp.float32)) + 0.5
        return (gamma, beta, mean, var)

    return {
        "w1": 0.1 * jax.random.normal(ks[0], (inplanes, planes), jnp.float32),
        "w2": 0.1 * jax.random.normal(ks[1], (3, 3, planes, planes), jnp.float32),
        "w3": 0.1 * jax.random.normal(ks[2], (planes, planes * expansion), jnp.float32),
        "bn1": bn(ks[3], planes),
        "bn2": bn(ks[4], planes),
        "bn3": bn(ks[5], planes * expansion),
    }


if __name__ == "__main__":
    key = jax.random.PRNGKey(0)
    k_x, k_p = jax.random.split(key)

    N, H, W = 2, 16, 16
    planes, expansion = 4, 4
    inplanes = planes * expansion  # 16: residual add needs Cin == Cout (downsample=None)

    x = jax.random.normal(k_x, (N, H, W, inplanes), jnp.float32)
    params = _make_params(k_p, inplanes, planes, expansion)

    for dil in (1, 2):  # exercise both the plain and dilated conv2 paths
        out = jax.block_until_ready(bottleneck_forward(x, params, 1, dil))
        ref = bottleneck_reference(x, params, 1, dil)
        err = float(jnp.max(jnp.abs(out - ref)))
        assert out.shape == (N, H, W, planes * expansion), out.shape
        assert err < 5e-2, f"dilation={dil}: max abs error {err}"

    print("KERNEL_OK")
</pallas_src>

<mosaic_0001>
module attributes {stable_mosaic.version = 11 : i64} {
  func.func @kernel(%arg0: i32, %arg1: memref<1x16x16x16xf32, #tpu.memory_space<vmem>>, %arg2: memref<16x128xbf16, #tpu.memory_space<vmem>>, %arg3: memref<1x128xf32, #tpu.memory_space<vmem>>, %arg4: memref<1152x128xbf16, #tpu.memory_space<vmem>>, %arg5: memref<1x128xf32, #tpu.memory_space<vmem>>, %arg6: memref<128x16xbf16, #tpu.memory_space<vmem>>, %arg7: memref<1x16xf32, #tpu.memory_space<vmem>>, %arg8: memref<1x16x16x16xf32, #tpu.memory_space<vmem>>, %arg9: memref<18x18x128xbf16, #tpu.memory_space<vmem>>) attributes {dimension_semantics = [#tpu.dimension_semantics<parallel>], iteration_bounds = array<i64: 2>, scalar_prefetch = 0 : i64, scratch_operands = 1 : i64, tpu.core_type = #tpu.core_type<tc>, window_params = [{transform_indices = @transform_0, window_bounds = array<i64: 1, 16, 16, 16>}, {pipeline_mode = #tpu.pipeline_mode<synchronous>, transform_indices = @transform_1, window_bounds = array<i64: 16, 128>}, {pipeline_mode = #tpu.pipeline_mode<synchronous>, transform_indices = @transform_2, window_bounds = array<i64: 1, 128>}, {pipeline_mode = #tpu.pipeline_mode<synchronous>, transform_indices = @transform_3, window_bounds = array<i64: 1152, 128>}, {pipeline_mode = #tpu.pipeline_mode<synchronous>, transform_indices = @transform_4, window_bounds = array<i64: 1, 128>}, {pipeline_mode = #tpu.pipeline_mode<synchronous>, transform_indices = @transform_5, window_bounds = array<i64: 128, 16>}, {pipeline_mode = #tpu.pipeline_mode<synchronous>, transform_indices = @transform_6, window_bounds = array<i64: 1, 16>}, {transform_indices = @transform_7, window_bounds = array<i64: 1, 16, 16, 16>}]} {
    %cst = arith.constant 0.000000e+00 : bf16
    %0 = vector.broadcast %cst : bf16 to vector<1x18x128xbf16>
    %cst_0 = arith.constant 0.000000e+00 : bf16
    %1 = vector.broadcast %cst_0 : bf16 to vector<16x1x128xbf16>
    %c0 = arith.constant 0 : index
    %c0_1 = arith.constant 0 : index
    %c0_2 = arith.constant 0 : index
    %2 = vector.load %arg9[%c0, %c0_1, %c0_2] : memref<18x18x128xbf16, #tpu.memory_space<vmem>>, vector<1x18x128xbf16>
    tpu.vector_store %arg9[%c0, %c0_1, %c0_2], %0 {strides = array<i32>} : memref<18x18x128xbf16, #tpu.memory_space<vmem>>, vector<1x18x128xbf16>,
    %c17 = arith.constant 17 : index
    %c0_3 = arith.constant 0 : index
    %c0_4 = arith.constant 0 : index
    %3 = vector.load %arg9[%c17, %c0_3, %c0_4] : memref<18x18x128xbf16, #tpu.memory_space<vmem>>, vector<1x18x128xbf16>
    tpu.vector_store %arg9[%c17, %c0_3, %c0_4], %0 {strides = array<i32>} : memref<18x18x128xbf16, #tpu.memory_space<vmem>>, vector<1x18x128xbf16>,
    %c1 = arith.constant 1 : index
    %c0_5 = arith.constant 0 : index
    %c0_6 = arith.constant 0 : index
    %4 = vector.load %arg9[%c1, %c0_5, %c0_6] : memref<18x18x128xbf16, #tpu.memory_space<vmem>>, vector<16x1x128xbf16>
    tpu.vector_store %arg9[%c1, %c0_5, %c0_6], %1 {strides = array<i32>} : memref<18x18x128xbf16, #tpu.memory_space<vmem>>, vector<16x1x128xbf16>,
    %c1_7 = arith.constant 1 : index
    %c17_8 = arith.constant 17 : index
    %c0_9 = arith.constant 0 : index
    %5 = vector.load %arg9[%c1_7, %c17_8, %c0_9] : memref<18x18x128xbf16, #tpu.memory_space<vmem>>, vector<16x1x128xbf16>
    tpu.vector_store %arg9[%c1_7, %c17_8, %c0_9], %1 {strides = array<i32>} : memref<18x18x128xbf16, #tpu.memory_space<vmem>>, vector<16x1x128xbf16>,
    %c0_10 = arith.constant 0 : index
    %c0_11 = arith.constant 0 : index
    %c0_12 = arith.constant 0 : index
    %c0_13 = arith.constant 0 : index
    %6 = vector.load %arg1[%c0_10, %c0_11, %c0_12, %c0_13] : memref<1x16x16x16xf32, #tpu.memory_space<vmem>>, vector<1x16x16x16xf32>
    %7 = vector.shape_cast %6 : vector<1x16x16x16xf32> to vector<16x16x16xf32>
    %8 = vector.shape_cast %7 : vector<16x16x16xf32> to vector<256x16xf32>
    %9 = arith.truncf %8 : vector<256x16xf32> to vector<256x16xbf16>
    %c0_14 = arith.constant 0 : index
    %c0_15 = arith.constant 0 : index
    %10 = vector.load %arg2[%c0_14, %c0_15] : memref<16x128xbf16, #tpu.memory_space<vmem>>, vector<16x128xbf16>
    %cst_16 = arith.constant dense<0.000000e+00> : vector<256x128xf32>
    %11 = tpu.matmul %9, %10, %cst_16 {dimension_numbers = #tpu.dot_dimension_numbers<[1], [0], [0], [1], [0, 0, 1, 1], [], []>} : vector<256x16xbf16>, vector<16x128xbf16>, vector<256x128xf32> -> vector<256x128xf32>
    %c0_17 = arith.constant 0 : index
    %c0_18 = arith.constant 0 : index
    %12 = vector.load %arg3[%c0_17, %c0_18] : memref<1x128xf32, #tpu.memory_space<vmem>>, vector<1x128xf32>
    %13 = vector.broadcast %12 : vector<1x128xf32> to vector<256x128xf32>
    %14 = arith.addf %11, %13 : vector<256x128xf32>
    %cst_19 = arith.constant 0.000000e+00 : f32
    %15 = vector.broadcast %cst_19 : f32 to vector<256x128xf32>
    %16 = arith.maximumf %14, %15 : vector<256x128xf32>
    %17 = vector.shape_cast %16 : vector<256x128xf32> to vector<16x16x128xf32>
    %18 = arith.truncf %17 : vector<16x16x128xf32> to vector<16x16x128xbf16>
    %c1_20 = arith.constant 1 : index
    %c1_21 = arith.constant 1 : index
    %c0_22 = arith.constant 0 : index
    %19 = vector.load %arg9[%c1_20, %c1_21, %c0_22] : memref<18x18x128xbf16, #tpu.memory_space<vmem>>, vector<16x16x128xbf16>
    tpu.vector_store %arg9[%c1_20, %c1_21, %c0_22], %18 {strides = array<i32>} : memref<18x18x128xbf16, #tpu.memory_space<vmem>>, vector<16x16x128xbf16>,
    %cst_23 = arith.constant 0.000000e+00 : f32
    %20 = vector.broadcast %cst_23 : f32 to vector<256x128xf32>
    %c0_24 = arith.constant 0 : index
    %c0_25 = arith.constant 0 : index
    %c0_26 = arith.constant 0 : index
    %21 = vector.load %arg9[%c0_24, %c0_25, %c0_26] : memref<18x18x128xbf16, #tpu.memory_space<vmem>>, vector<16x16x128xbf16>
    %22 = vector.shape_cast %21 : vector<16x16x128xbf16> to vector<256x128xbf16>
    %c0_27 = arith.constant 0 : index
    %c0_28 = arith.constant 0 : index
    %23 = vector.load %arg4[%c0_27, %c0_28] : memref<1152x128xbf16, #tpu.memory_space<vmem>>, vector<128x128xbf16>
    %cst_29 = arith.constant dense<0.000000e+00> : vector<256x128xf32>
    %24 = tpu.matmul %22, %23, %cst_29 {dimension_numbers = #tpu.dot_dimension_numbers<[1], [0], [0], [1], [0, 0, 1, 1], [], []>} : vector<256x128xbf16>, vector<128x128xbf16>, vector<256x128xf32> -> vector<256x128xf32>
    %25 = arith.addf %20, %24 : vector<256x128xf32>
    %c0_30 = arith.constant 0 : index
    %c1_31 = arith.constant 1 : index
    %c0_32 = arith.constant 0 : index
    %26 = vector.load %arg9[%c0_30, %c1_31, %c0_32] : memref<18x18x128xbf16, #tpu.memory_space<vmem>>, vector<16x16x128xbf16>
    %27 = vector.shape_cast %26 : vector<16x16x128xbf16> to vector<256x128xbf16>
    %c128 = arith.constant 128 : index
    %c0_33 = arith.constant 0 : index
    %28 = vector.load %arg4[%c128, %c0_33] : memref<1152x128xbf16, #tpu.memory_space<vmem>>, vector<128x128xbf16>
    %cst_34 = arith.constant dense<0.000000e+00> : vector<256x128xf32>
    %29 = tpu.matmul %27, %28, %cst_34 {dimension_numbers = #tpu.dot_dimension_numbers<[1], [0], [0], [1], [0, 0, 1, 1], [], []>} : vector<256x128xbf16>, vector<128x128xbf16>, vector<256x128xf32> -> vector<256x128xf32>
    %30 = arith.addf %25, %29 : vector<256x128xf32>
    %c0_35 = arith.constant 0 : index
    %c2 = arith.constant 2 : index
    %c0_36 = arith.constant 0 : index
    %31 = vector.load %arg9[%c0_35, %c2, %c0_36] : memref<18x18x128xbf16, #tpu.memory_space<vmem>>, vector<16x16x128xbf16>
    %32 = vector.shape_cast %31 : vector<16x16x128xbf16> to vector<256x128xbf16>
    %c256 = arith.constant 256 : index
    %c0_37 = arith.constant 0 : index
    %33 = vector.load %arg4[%c256, %c0_37] : memref<1152x128xbf16, #tpu.memory_space<vmem>>, vector<128x128xbf16>
    %cst_38 = arith.constant dense<0.000000e+00> : vector<256x128xf32>
    %34 = tpu.matmul %32, %33, %cst_38 {dimension_numbers = #tpu.dot_dimension_numbers<[1], [0], [0], [1], [0, 0, 1, 1], [], []>} : vector<256x128xbf16>, vector<128x128xbf16>, vector<256x128xf32> -> vector<256x128xf32>
    %35 = arith.addf %30, %34 : vector<256x128xf32>
    %c1_39 = arith.constant 1 : index
    %c0_40 = arith.constant 0 : index
    %c0_41 = arith.constant 0 : index
    %36 = vector.load %arg9[%c1_39, %c0_40, %c0_41] : memref<18x18x128xbf16, #tpu.memory_space<vmem>>, vector<16x16x128xbf16>
    %37 = vector.shape_cast %36 : vector<16x16x128xbf16> to vector<256x128xbf16>
    %c384 = arith.constant 384 : index
    %c0_42 = arith.constant 0 : index
    %38 = vector.load %arg4[%c384, %c0_42] : memref<1152x128xbf16, #tpu.memory_space<vmem>>, vector<128x128xbf16>
    %cst_43 = arith.constant dense<0.000000e+00> : vector<256x128xf32>
    %39 = tpu.matmul %37, %38, %cst_43 {dimension_numbers = #tpu.dot_dimension_numbers<[1], [0], [0], [1], [0, 0, 1, 1], [], []>} : vector<256x128xbf16>, vector<128x128xbf16>, vector<256x128xf32> -> vector<256x128xf32>
    %40 = arith.addf %35, %39 : vector<256x128xf32>
    %c1_44 = arith.constant 1 : index
    %c1_45 = arith.constant 1 : index
    %c0_46 = arith.constant 0 : index
    %41 = vector.load %arg9[%c1_44, %c1_45, %c0_46] : memref<18x18x128xbf16, #tpu.memory_space<vmem>>, vector<16x16x128xbf16>
    %42 = vector.shape_cast %41 : vector<16x16x128xbf16> to vector<256x128xbf16>
    %c512 = arith.constant 512 : index
    %c0_47 = arith.constant 0 : index
    %43 = vector.load %arg4[%c512, %c0_47] : memref<1152x128xbf16, #tpu.memory_space<vmem>>, vector<128x128xbf16>
    %cst_48 = arith.constant dense<0.000000e+00> : vector<256x128xf32>
    %44 = tpu.matmul %42, %43, %cst_48 {dimension_numbers = #tpu.dot_dimension_numbers<[1], [0], [0], [1], [0, 0, 1, 1], [], []>} : vector<256x128xbf16>, vector<128x128xbf16>, vector<256x128xf32> -> vector<256x128xf32>
    %45 = arith.addf %40, %44 : vector<256x128xf32>
    %c1_49 = arith.constant 1 : index
    %c2_50 = arith.constant 2 : index
    %c0_51 = arith.constant 0 : index
    %46 = vector.load %arg9[%c1_49, %c2_50, %c0_51] : memref<18x18x128xbf16, #tpu.memory_space<vmem>>, vector<16x16x128xbf16>
    %47 = vector.shape_cast %46 : vector<16x16x128xbf16> to vector<256x128xbf16>
    %c640 = arith.constant 640 : index
    %c0_52 = arith.constant 0 : index
    %48 = vector.load %arg4[%c640, %c0_52] : memref<1152x128xbf16, #tpu.memory_space<vmem>>, vector<128x128xbf16>
    %cst_53 = arith.constant dense<0.000000e+00> : vector<256x128xf32>
    %49 = tpu.matmul %47, %48, %cst_53 {dimension_numbers = #tpu.dot_dimension_numbers<[1], [0], [0], [1], [0, 0, 1, 1], [], []>} : vector<256x128xbf16>, vector<128x128xbf16>, vector<256x128xf32> -> vector<256x128xf32>
    %50 = arith.addf %45, %49 : vector<256x128xf32>
    %c2_54 = arith.constant 2 : index
    %c0_55 = arith.constant 0 : index
    %c0_56 = arith.constant 0 : index
    %51 = vector.load %arg9[%c2_54, %c0_55, %c0_56] : memref<18x18x128xbf16, #tpu.memory_space<vmem>>, vector<16x16x128xbf16>
    %52 = vector.shape_cast %51 : vector<16x16x128xbf16> to vector<256x128xbf16>
    %c768 = arith.constant 768 : index
    %c0_57 = arith.constant 0 : index
    %53 = vector.load %arg4[%c768, %c0_57] : memref<1152x128xbf16, #tpu.memory_space<vmem>>, vector<128x128xbf16>
    %cst_58 = arith.constant dense<0.000000e+00> : vector<256x128xf32>
    %54 = tpu.matmul %52, %53, %cst_58 {dimension_numbers = #tpu.dot_dimension_numbers<[1], [0], [0], [1], [0, 0, 1, 1], [], []>} : vector<256x128xbf16>, vector<128x128xbf16>, vector<256x128xf32> -> vector<256x128xf32>
    %55 = arith.addf %50, %54 : vector<256x128xf32>
    %c2_59 = arith.constant 2 : index
    %c1_60 = arith.constant 1 : index
    %c0_61 = arith.constant 0 : index
    %56 = vector.load %arg9[%c2_59, %c1_60, %c0_61] : memref<18x18x128xbf16, #tpu.memory_space<vmem>>, vector<16x16x128xbf16>
    %57 = vector.shape_cast %56 : vector<16x16x128xbf16> to vector<256x128xbf16>
    %c896 = arith.constant 896 : index
    %c0_62 = arith.constant 0 : index
    %58 = vector.load %arg4[%c896, %c0_62] : memref<1152x128xbf16, #tpu.memory_space<vmem>>, vector<128x128xbf16>
    %cst_63 = arith.constant dense<0.000000e+00> : vector<256x128xf32>
    %59 = tpu.matmul %57, %58, %cst_63 {dimension_numbers = #tpu.dot_dimension_numbers<[1], [0], [0], [1], [0, 0, 1, 1], [], []>} : vector<256x128xbf16>, vector<128x128xbf16>, vector<256x128xf32> -> vector<256x128xf32>
    %60 = arith.addf %55, %59 : vector<256x128xf32>
    %c2_64 = arith.constant 2 : index
    %c2_65 = arith.constant 2 : index
    %c0_66 = arith.constant 0 : index
    %61 = vector.load %arg9[%c2_64, %c2_65, %c0_66] : memref<18x18x128xbf16, #tpu.memory_space<vmem>>, vector<16x16x128xbf16>
    %62 = vector.shape_cast %61 : vector<16x16x128xbf16> to vector<256x128xbf16>
    %c1024 = arith.constant 1024 : index
    %c0_67 = arith.constant 0 : index
    %63 = vector.load %arg4[%c1024, %c0_67] : memref<1152x128xbf16, #tpu.memory_space<vmem>>, vector<128x128xbf16>
    %cst_68 = arith.constant dense<0.000000e+00> : vector<256x128xf32>
    %64 = tpu.matmul %62, %63, %cst_68 {dimension_numbers = #tpu.dot_dimension_numbers<[1], [0], [0], [1], [0, 0, 1, 1], [], []>} : vector<256x128xbf16>, vector<128x128xbf16>, vector<256x128xf32> -> vector<256x128xf32>
    %65 = arith.addf %60, %64 : vector<256x128xf32>
    %c0_69 = arith.constant 0 : index
    %c0_70 = arith.constant 0 : index
    %66 = vector.load %arg5[%c0_69, %c0_70] : memref<1x128xf32, #tpu.memory_space<vmem>>, vector<1x128xf32>
    %67 = vector.broadcast %66 : vector<1x128xf32> to vector<256x128xf32>
    %68 = arith.addf %65, %67 : vector<256x128xf32>
    %cst_71 = arith.constant 0.000000e+00 : f32
    %69 = vector.broadcast %cst_71 : f32 to vector<256x128xf32>
    %70 = arith.maximumf %68, %69 : vector<256x128xf32>
    %71 = arith.truncf %70 : vector<256x128xf32> to vector<256x128xbf16>
    %c0_72 = arith.constant 0 : index
    %c0_73 = arith.constant 0 : index
    %72 = vector.load %arg6[%c0_72, %c0_73] : memref<128x16xbf16, #tpu.memory_space<vmem>>, vector<128x16xbf16>
    %cst_74 = arith.constant dense<0.000000e+00> : vector<256x16xf32>
    %73 = tpu.matmul %71, %72, %cst_74 {dimension_numbers = #tpu.dot_dimension_numbers<[1], [0], [0], [1], [0, 0, 1, 1], [], []>} : vector<256x128xbf16>, vector<128x16xbf16>, vector<256x16xf32> -> vector<256x16xf32>
    %c0_75 = arith.constant 0 : index
    %c0_76 = arith.constant 0 : index
    %c0_77 = arith.constant 0 : index
    %c0_78 = arith.constant 0 : index
    %74 = vector.load %arg1[%c0_75, %c0_76, %c0_77, %c0_78] : memref<1x16x16x16xf32, #tpu.memory_space<vmem>>, vector<1x16x16x16xf32>
    %75 = vector.shape_cast %74 : vector<1x16x16x16xf32> to vector<16x16x16xf32>
    %76 = vector.shape_cast %75 : vector<16x16x16xf32> to vector<256x16xf32>
    %c0_79 = arith.constant 0 : index
    %c0_80 = arith.constant 0 : index
    %77 = vector.load %arg7[%c0_79, %c0_80] : memref<1x16xf32, #tpu.memory_space<vmem>>, vector<1x16xf32>
    %78 = vector.broadcast %77 : vector<1x16xf32> to vector<256x16xf32>
    %79 = arith.addf %73, %78 : vector<256x16xf32>
    %80 = arith.addf %79, %76 : vector<256x16xf32>
    %cst_81 = arith.constant 0.000000e+00 : f32
    %81 = vector.broadcast %cst_81 : f32 to vector<256x16xf32>
    %82 = arith.maximumf %80, %81 : vector<256x16xf32>
    %83 = vector.shape_cast %82 : vector<256x16xf32> to vector<16x16x16xf32>
    %c0_82 = arith.constant 0 : index
    %c0_83 = arith.constant 0 : index
    %c0_84 = arith.constant 0 : index
    %c0_85 = arith.constant 0 : index
    %84 = vector.load %arg8[%c0_82, %c0_83, %c0_84, %c0_85] : memref<1x16x16x16xf32, #tpu.memory_space<vmem>>, vector<1x16x16x16xf32>
    %85 = vector.shape_cast %84 : vector<1x16x16x16xf32> to vector<16x16x16xf32>
    %86 = vector.shape_cast %83 : vector<16x16x16xf32> to vector<1x16x16x16xf32>
    tpu.vector_store %arg8[%c0_82, %c0_83, %c0_84, %c0_85], %86 {strides = array<i32>} : memref<1x16x16x16xf32, #tpu.memory_space<vmem>>, vector<1x16x16x16xf32>,
    return
  }
  func.func @transform_0(%arg0: i32) -> (i32, i32, i32, i32) {
    %c0_i32 = arith.constant 0 : i32
    %c0_i32_0 = arith.constant 0 : i32
    %c0_i32_1 = arith.constant 0 : i32
    %c0_i32_2 = arith.constant 0 : i32
    return %arg0, %c0_i32, %c0_i32_0, %c0_i32_1 : i32, i32, i32, i32
  }
  func.func @transform_1(%arg0: i32) -> (i32, i32) {
    %c0_i32 = arith.constant 0 : i32
    %c0_i32_0 = arith.constant 0 : i32
    %c0_i32_1 = arith.constant 0 : i32
    return %c0_i32, %c0_i32_0 : i32, i32
  }
  func.func @transform_2(%arg0: i32) -> (i32, i32) {
    %c0_i32 = arith.constant 0 : i32
    %c0_i32_0 = arith.constant 0 : i32
    %c0_i32_1 = arith.constant 0 : i32
    return %c0_i32, %c0_i32_0 : i32, i32
  }
  func.func @transform_3(%arg0: i32) -> (i32, i32) {
    %c0_i32 = arith.constant 0 : i32
    %c0_i32_0 = arith.constant 0 : i32
    %c0_i32_1 = arith.constant 0 : i32
    return %c0_i32, %c0_i32_0 : i32, i32
  }
  func.func @transform_4(%arg0: i32) -> (i32, i32) {
    %c0_i32 = arith.constant 0 : i32
    %c0_i32_0 = arith.constant 0 : i32
    %c0_i32_1 = arith.constant 0 : i32
    return %c0_i32, %c0_i32_0 : i32, i32
  }
  func.func @transform_5(%arg0: i32) -> (i32, i32) {
    %c0_i32 = arith.constant 0 : i32
    %c0_i32_0 = arith.constant 0 : i32
    %c0_i32_1 = arith.constant 0 : i32
    return %c0_i32, %c0_i32_0 : i32, i32
  }
  func.func @transform_6(%arg0: i32) -> (i32, i32) {
    %c0_i32 = arith.constant 0 : i32
    %c0_i32_0 = arith.constant 0 : i32
    %c0_i32_1 = arith.constant 0 : i32
    return %c0_i32, %c0_i32_0 : i32, i32
  }
  func.func @transform_7(%arg0: i32) -> (i32, i32, i32, i32) {
    %c0_i32 = arith.constant 0 : i32
    %c0_i32_0 = arith.constant 0 : i32
    %c0_i32_1 = arith.constant 0 : i32
    %c0_i32_2 = arith.constant 0 : i32
    return %arg0, %c0_i32, %c0_i32_0, %c0_i32_1 : i32, i32, i32, i32
  }
}

</mosaic_0001>

<bundles_post_ra>
// kernel: bottleneck_forward.1
= control target key start
LH: loop header
LB: loop body
LE: loop exit
PB: predicated region body
PF: predicated region fallthrough
CT: control target
= control target key end

     0   :  { %12 = vsyncpa [#allocation4], 0  ;;  %s9025_s0 = inlined_call_operand.vmem [shape: f32[2,16,16,16], index: 0, kind: input, shape index: {}]   ;;  %s9026_s1 = inlined_call_operand.vmem [shape: bf16[16,128], index: 1, kind: input, shape index: {}]   ;;  %s9027_s2 = inlined_call_operand.vmem [shape: f32[1,128], index: 2, kind: input, shape index: {}]   ;;  %s9028_s3 = inlined_call_operand.vmem [shape: bf16[1152,128], index: 3, kind: input, shape index: {}]   ;;  %s9029_s4 = inlined_call_operand.vmem [shape: f32[1,128], index: 4, kind: input, shape index: {}]   ;;  %s9030_s5 = inlined_call_operand.vmem [shape: bf16[128,16], index: 5, kind: input, shape index: {}]   ;;  %s9031_s6 = inlined_call_operand.vmem [shape: f32[1,16], index: 6, kind: input, shape index: {}]   ;;  %s9032_s7 = inlined_call_operand.hbm [shape: f32[2,16,16,16], index: 7, kind: output, shape index: {}]  }
   0x1   :  { %14 = vsyncpa [#allocation4 + $0x1], 0  ;;  %s6610_s24 = smov 0   ;;  %s6612_s25 = smov 0  }
   0x2   :  { %s6614_s26 = smov 0   ;;  %s6616_s27 = smov 0  }
   0x3 LB: > { %s6631_s28 = sadd.s32 4294967295, %s6565_s27   ;;  %s5684_s29 = sadd.s32 4294967294, %s6565_s27   ;;  %s6565_s27 = sphi %s6616_s27, %s9275_s27   ;;  %s6561_s26 = sphi %s6614_s26, %s9274_s26   ;;  %s6557_s25 = sphi %s6612_s25, %s9273_s25   ;;  %s6553_s24 = sphi %s6610_s24, %s9272_s24  }
   0x4   : > { %s6635_s30 = sadd.s32 1, %s6565_s27   ;;  %s179_s8 = sadd.s32 1, %s6561_s26 }
   0x5   : > { %s176_s9 = ssub.s32 %s6565_s27, %s6635_s30  ;;  %p189_p0 = scmp.ne.s32.totalorder %s6561_s26, %s6557_s25 }
   0x6   : > { %p177_p1 = scmp.eq.s32.totalorder %s176_s9, 0  ;;  %p190_p2 = scmp.eq.s32.totalorder %s6631_s28, 1 }
   0x7   : > { %p195_p3 = scmp.ne.s32.totalorder %s6557_s25, %s6553_s24  ;;  %p196_p4 = scmp.eq.s32.totalorder %s5684_s29, 1 }
   0x8   : > { %s6646_s10 = scalar_select %p177_p1, %s6561_s26, %s179_s8  }
   0x9   : > { %p6648_p5 = por %p190_p2, %p189_p0  ;;  %p6652_p6 = por %p196_p4, %p195_p3 }
   0xa   : > { %p5687_p7 = scmp.ge.s32.totalorder %s6565_s27, 1  ;;  %p240_p8 = scmp.lt.s32.totalorder %s6565_s27, 3 }
   0xc   : > { %p241_p9 = pnand %p5687_p7, %p240_p8 }
   0xe   : > { %244 = sbr.rel (%p241_p9) target bundleno = 1298 (0x512), region = 48 }
  0x13   : > { %v6277_v0 = vld [vmem:[%s9026_s1] sm:$0xff]  ;;  %p272_p10 = scmp.lt.s32.totalorder %s6631_s28, 1  ;;  %vm447_vm0 = vcmask 130048   ;;  %v6686_v16 = vld [vmem:[%s9028_s3 + $0x38] sm:$0xff]  ;;  %v6694_v20 = vld [vmem:[%s9028_s3 + $0x30] sm:$0xff]  ;;  %vm286_vm1 = vcmask 1040384  }
  0x14   : > { %503 = vmatpush.bf16.msra.mxu0 %v6277_v0  ;;  %6407 = vmatpush.bf16.msra.mxu3 %v6277_v0  ;;  %v6309_v21 = vld [vmem:[%s9028_s3 + $0x78] sm:$0xff]  ;;  %vm287_vm2 = vsmask.f32 256  ;;  %v6704_v22 = vld [vmem:[%s9028_s3 + $0x28] sm:$0xff]  ;;  %v6718_v26 = vld [vmem:[%s9028_s3 + $0x20] sm:$0xff]  ;;  %v6567_v36 = vmov 0  }
  0x15   : > { %s273_s15 = scalar_select %p272_p10, %s6631_s28, 1  ;;  %1897 = vmatpush.bf16.msra.mxu2 %v6686_v16  ;;  %vm6708_vm3 = vmand %vm286_vm1, %vm287_vm2  ;;  %v289_v24 = vld [vmem:[#allocation2 + $0xc] sm:$0x1]  ;;  %1664 = vmatpush.bf16.msra.mxu1 %v6309_v21  ;;  %v6308_v29 = vld [vmem:[%s9028_s3 + $0x70] sm:$0xff]  ;;  %vm337_vm4 = vsmask.f32 7938 }
  0x16   : > { %v290_v25 = vsel %vm6708_vm3, 0, %v289_v24  ;;  %v6729_v30 = vld [vmem:[%s9028_s3 + $0x18] sm:$0xff]  ;;  %v6307_v32 = vld [vmem:[%s9028_s3 + $0x68] sm:$0xff]  ;;  %v6738_v33 = vld [vmem:[%s9028_s3 + $0x10] sm:$0xff]  ;;  %278 = vst [vmem:[#allocation2] sm:$0xf] %v6567_v36 }
  0x17   : > { %s6276_s16 = sshll.u32 %s273_s15, 8  ;;  %291 = vst [vmem:[#allocation2 + $0xc] sm:$0x1] %v290_v25  ;;  %v6306_v34 = vld [vmem:[%s9028_s3 + $0x60] sm:$0xff]  ;;  %v6748_v35 = vld [vmem:[%s9028_s3 + $0x8] sm:$0xff]  ;;  %vm6752_vm5 = vmand %vm286_vm1, %vm337_vm4  ;;  %vm971_vm9 = vcmask 1043456  }
  0x18   : > { %s6666_s19 = scalar_lea.vmem %s9025_s0, %s6276_s16  ;;  %6408 = vmatpush.bf16.msrb.mxu3 %v6309_v21  ;;  %279 = vst [vmem:[#allocation2 + $0x4] sm:$0xf] %v6567_v36  ;;  %v339_v38 = vld [vmem:[#allocation2 + $0x14] sm:$0x1]  ;;  %v6305_v39 = vld [vmem:[%s9028_s3 + $0x58] sm:$0xff]  ;;  %v6767_v43 = vld [vmem:[%s9028_s3] sm:$0xff] }
  0x19   : > { %v387_v1 = vld [vmem:[%s6666_s19] sm:$0xff]  ;;  %v388_v2 = vld [vmem:[%s6666_s19 + $0x8] sm:$0xff]  ;;  %v389_v4 = vld [vmem:[%s6666_s19 + $0x10] sm:$0xff]  ;;  %1898 = vmatpush.bf16.msra.mxu2 %v6694_v20  ;;  %1665 = vmatpush.bf16.msra.mxu1 %v6308_v29  ;;  %280 = vst [vmem:[#allocation2 + $0x8] sm:$0x1] %v6567_v36  ;;  %v340_v42 = vsel %vm6752_vm5, 0, %v339_v38 }
  0x1a   : > { %v419_v3 = vpack.c.bf16 %v388_v2, %v387_v1  ;;  %v390_v5 = vld [vmem:[%s6666_s19 + $0x18] sm:$0xff]  ;;  %v391_v7 = vld [vmem:[%s6666_s19 + $0x20] sm:$0xff]  ;;  %v392_v8 = vld [vmem:[%s6666_s19 + $0x28] sm:$0xff]  ;;  %282 = vst [vmem:[#allocation2 + $0xcc] sm:$0xf] %v6567_v36  ;;  %vm2034_vm13 = vcmask 1042432  }
  0x1b   : > { %v420_v6 = vpack.c.bf16 %v390_v5, %v389_v4  ;;  %v421_v9 = vpack.c.bf16 %v392_v8, %v391_v7  ;;  %v393_v10 = vld [vmem:[%s6666_s19 + $0x30] sm:$0xff]  ;;  %v394_v11 = vld [vmem:[%s6666_s19 + $0x38] sm:$0xff]  ;;  %v395_v13 = vld [vmem:[%s6666_s19 + $0x40] sm:$0xff]  ;;  %283 = vst [vmem:[#allocation2 + $0xd0] sm:$0xf] %v6567_v36  ;;  %vm2035_vm14 = vcmask 1046532  }
  0x1c   : > { %5695 = vmatmul.msk.bf16.vlgmr.msra.gmra.mxu0 %vm447_vm0, %v419_v3  ;;  %v422_v12 = vpack.c.bf16 %v394_v11, %v393_v10  ;;  %v396_v14 = vld [vmem:[%s6666_s19 + $0x48] sm:$0xff]  ;;  %v397_v17 = vld [vmem:[%s6666_s19 + $0x50] sm:$0xff]  ;;  %v398_v18 = vld [vmem:[%s6666_s19 + $0x58] sm:$0xff]  ;;  %6409 = vmatpush.bf16.msrb.mxu3 %v6308_v29  ;;  %341 = vst [vmem:[#allocation2 + $0x14] sm:$0x1] %v340_v42  ;;  %s269_s21 = sand.u32 1, %s6557_s25  }
  0x1d   : > { %v423_v15 = vpack.c.bf16 %v396_v14, %v395_v13  ;;  %v424_v19 = vpack.c.bf16 %v398_v18, %v397_v17  ;;  %1899 = vmatpush.bf16.msra.mxu2 %v6704_v22  ;;  %v399_v27 = vld [vmem:[%s6666_s19 + $0x60] sm:$0xff]  ;;  %v400_v28 = vld [vmem:[%s6666_s19 + $0x68] sm:$0xff]  ;;  %1666 = vmatpush.bf16.msra.mxu1 %v6307_v32  ;;  %v401_v40 = vld [vmem:[%s6666_s19 + $0x70] sm:$0xff]  ;;  %284 = vst [vmem:[#allocation2 + $0xd4] sm:$0x1] %v6567_v36  ;;  %s5688_s22 = sshll.u32 %s269_s21, 8 }
  0x1e   : > { %v425_v31 = vpack.c.bf16 %v400_v28, %v399_v27  ;;  %v402_v41 = vld [vmem:[%s6666_s19 + $0x78] sm:$0xff]  ;;  %v1085_v44 = vld [vmem:[#allocation2] sm:$0xf]  ;;  %v6304_v46 = vld [vmem:[%s9028_s3 + $0x50] sm:$0xff]  ;;  %vm1149_vm6 = vsmask.f32 3328 }
  0x1f   : > { %v426_v45 = vpack.c.bf16 %v402_v41, %v401_v40  ;;  %v6278_v47 = vld [vmem:[#allocation2] sm:$0xff]  ;;  %v1153_v48 = vshrl.u32 %v1085_v44, 16  ;;  %v1156_v49 = vshll.u32 %v1085_v44, 16  ;;  %v6303_v56 = vld [vmem:[%s9028_s3 + $0x48] sm:$0xff]  ;;  %v292_v61 = vld [vmem:[#allocation2 + $0x18] sm:$0x1] }
  0x20   : > { %6410 = vmatpush.bf16.msrb.mxu3 %v6307_v32  ;;  %v1086_v50 = vld [vmem:[#allocation2 + $0x4] sm:$0xf]  ;;  %v1133_v55 = vld [vmem:[#allocation2 + $0x8] sm:$0x1]  ;;  %v293_v62 = vsel %vm6708_vm3, 0, %v292_v61  ;;  %vm6805_vm10 = vmand %vm971_vm9, %vm337_vm4  ;;  %s8807_s23 = scalar_lea.vmem [#allocation3], %s5688_s22 }
  0x21   : > { %1900 = vmatpush.bf16.msra.mxu2 %v6718_v26  ;;  %1667 = vmatpush.bf16.msra.mxu1 %v6306_v34  ;;  %v1155_v51 = vrot.slane %v1153_v48, 4  ;;  %v1158_v52 = vrot.slane %v1156_v49, 5  ;;  %v1162_v53 = vshll.u32 %v1086_v50, 16  ;;  %v1166_v54 = vshrl.u32 %v1086_v50, 16  ;;  %294 = vst [vmem:[#allocation2 + $0x18] sm:$0x1] %v293_v62  ;;  %vm7043_vm15 = vmor %vm2034_vm13, %vm2035_vm14 }
  0x22   : > { %v1172_v60 = vshll.u32 %v1133_v55, 16  ;;  %vm1150_vm7 = vsmask.f32 7440  ;;  %v6302_v3 = vld [vmem:[%s9028_s3 + $0x40] sm:$0xff]  ;;  %v404_v10 = vld [vmem:[%s6666_s19 + $0x88] sm:$0xff]  ;;  %v405_v40 = vld [vmem:[%s6666_s19 + $0x90] sm:$0xff] }
  0x23   : > { %v1159_v57 = vor.u32 %v1158_v52, %v1155_v51  ;;  %v1164_v58 = vrot.slane %v1162_v53, 5  ;;  %v1168_v59 = vrot.slane %v1166_v54, 4  ;;  %vm6779_vm8 = vmor %vm1149_vm6, %vm1150_vm7  ;;  %v342_v11 = vld [vmem:[#allocation2 + $0x20] sm:$0x1]  ;;  %v295_v21 = vld [vmem:[#allocation2 + $0x24] sm:$0x1] }
  0x24   : > { %6411 = vmatpush.bf16.msrb.mxu3 %v6306_v34  ;;  %v1174_v2 = vrot.slane %v1172_v60, 5  ;;  %v343_v13 = vsel %vm6752_vm5, 0, %v342_v11  ;;  %v296_v25 = vsel %vm6708_vm3, 0, %v295_v21  ;;  %v973_v36 = vld [vmem:[#allocation2 + $0xc] sm:$0xf]  ;;  %v406_v41 = vld [vmem:[%s6666_s19 + $0x98] sm:$0xff] }
  0x25   : > { %1901 = vmatpush.bf16.msra.mxu2 %v6729_v30  ;;  %1668 = vmatpush.bf16.msra.mxu1 %v6305_v39  ;;  %v1160_v63 = vrot.slane %v1159_v57, 4  ;;  %v1169_v1 = vor.u32 %v1168_v59, %v1164_v58  ;;  %344 = vst [vmem:[#allocation2 + $0x20] sm:$0x1] %v343_v13  ;;  %v345_v42 = vld [vmem:[#allocation2 + $0x2c] sm:$0x1]  ;;  %v428_v48 = vpack.c.bf16 %v406_v41, %v405_v40  ;;  %v6341_v59 = vld [vmem:[%s9028_s3 + $0xf8] sm:$0xff] }
  0x26   : > { %297 = vst [vmem:[#allocation2 + $0x24] sm:$0x1] %v296_v25  ;;  %vm649_vm11 = vsmask.f32 4368  ;;  %v977_v54 = vld [vmem:[#allocation2 + $0x14] sm:$0x1]  ;;  %2590 = vmatpush.bf16.msrb.mxu0 %v6341_v59 }
  0x27   : > { %v1165_v4 = vsel %vm6779_vm8, %v1160_v63, %v1164_v58  ;;  %v1170_v5 = vrot.slane %v1169_v1, 4  ;;  %vm6817_vm12 = vmor %vm287_vm2, %vm649_vm11  ;;  %v298_v60 = vld [vmem:[#allocation2 + $0x30] sm:$0x1]  ;;  %v408_v21 = vld [vmem:[%s6666_s19 + $0xa8] sm:$0xff]  ;;  %s6406_s29 = sshll.u32 %s6631_s28, 8  ;;  %s5619_s14 = sshll.u32 %s8807_s23, 4  ;;  %s5620_s14 = int_to_ptr.vmem [resolvable:$true] %s5619_s14 }
  0x28   : > { %6412 = vmatpush.bf16.msrb.mxu3 %v6305_v39  ;;  %v980_v11 = vld [vmem:[#allocation2 + $0x18] sm:$0xf]  ;;  %s5618_s13 = scalar_lea.hbm %s9032_s7, %s6406_s29  ;;  %s5607_s28 = scalar_lea.sflag [#allocation4], %s269_s21 }
  0x29   : > { %1902 = vmatpush.bf16.msra.mxu2 %v6738_v33  ;;  %1669 = vmatpush.bf16.msra.mxu1 %v6304_v46  ;;  %v1175_v7 = vsel %vm6779_vm8, %v1170_v5, %v1174_v2  ;;  %v299_v2 = vsel %vm6708_vm3, 0, %v298_v60  ;;  %s5621_s15 = sshll.u32 %s5618_s13, 4  ;;  %s6523_s20 = scalar_lea.hbm %s9032_s7, 512  ;;  %s5622_s15 = int_to_ptr.hbm [resolvable:$true] %s5621_s15 }
  0x2a   : > { %v1553_v8 = vunpack.c.l.b16 %v1175_v7  ;;  %300 = vst [vmem:[#allocation2 + $0x30] sm:$0x1] %v299_v2  ;;  %s6517_s16 = sshra.s32 %s5622_s15, 4  ;;  %s6518_s16 = int_to_ptr.hbm [resolvable:$true] %s6517_s16 }
  0x2b   : > { %s6519_s17 = scalar_lea.hbm %s6518_s16, 256  ;;  %p6524_p0 = scmp.lt.s32.totalorder %s6518_s16, %s9032_s7 }
  0x2c   : > { %5696 = vmatmul.msk.bf16.gmra.mxu0 %vm447_vm0, %v420_v6  ;;  %6413 = vmatpush.bf16.msrb.mxu3 %v6304_v46  ;;  %v1552_v6 = vunpack.c.l.b16 %v1165_v4  ;;  %v346_v46 = vsel %vm6752_vm5, 0, %v345_v42  ;;  %p6520_p11 = scmp.ne.s32.totalorder %s6518_s16, %s6519_s17  ;;  %p6525_p1 = scmp.lt.s32.totalorder %s6523_s20, %s6519_s17 }
  0x2d   : > { %1903 = vmatpush.bf16.msra.mxu2 %v6748_v35  ;;  %1670 = vmatpush.bf16.msra.mxu1 %v6303_v56  ;;  %347 = vst [vmem:[#allocation2 + $0x2c] sm:$0x1] %v346_v46 }
  0x2e   : > { %v1584_v14 = vpack.c.b16 %v1553_v8, %v1552_v6  ;;  %v6340_v6 = vld [vmem:[%s9028_s3 + $0xf0] sm:$0xff]  ;;  %p6521_p12 = pnand %p6520_p11, %p6648_p5  ;;  %p6526_p2 = por %p6525_p1, %p6524_p0 }
  0x2f   : > { %2591 = vmatpush.bf16.msrb.mxu0 %v6340_v6 }
  0x30   : > { %6414 = vmatpush.bf16.msrb.mxu3 %v6303_v56  ;;  %p6522_p13 = pneg %p6521_p12 }
  0x31   : > { %1904 = vmatpush.bf16.msra.mxu2 %v6767_v43  ;;  %1671 = vmatpush.bf16.msra.mxu1 %v6302_v3 }
  0x32   : > { %p6527_p3 = pnand %p6526_p2, %p6522_p13 }
  0x34   : > { %1905 = vmatmul.bf16.vlgmr.msra.gmra.mxu2 %v6278_v47  ;;  %6415 = vmatpush.bf16.msrb.mxu3 %v6302_v3 }
  0x35   : > { %1672 = vmatmul.bf16.vlgmr.msra.gmra.mxu1 %v1584_v14 }
  0x3c   : > { %5697 = vmatmul.msk.bf16.gmra.mxu0 %vm447_vm0, %v421_v9  ;;  %v403_v9 = vld [vmem:[%s6666_s19 + $0x80] sm:$0xff] }
  0x4c   : > { %5698 = vmatmul.msk.bf16.gmra.mxu0 %vm447_vm0, %v422_v12  ;;  %v6795_v12 = vld [vmem:[%s9027_s2] ss:$0 sm:$0xff] }
  0x5c   : > { %5699 = vmatmul.msk.bf16.gmra.mxu0 %vm447_vm0, %v423_v15  ;;  %v427_v15 = vpack.c.bf16 %v404_v10, %v403_v9 }
  0x6c   : > { %5700 = vmatmul.msk.bf16.gmra.mxu0 %vm447_vm0, %v424_v19 }
  0x7c   : > { %5701 = vmatmul.msk.bf16.gmra.mxu0 %vm447_vm0, %v425_v31 }
  0x8c   : > { %5702 = vmatmul.msk.bf16.gmra.mxu0 %vm447_vm0, %v426_v45 }
  0x99   : > { %v505_v17 = vpop.f32.mrf.mxu0 }
  0x9a   : > { %v506_v18 = vadd.f32 %v6795_v12, %v505_v17 }
  0x9c   : > { %v585_v19 = vmax.f32 %v506_v18, 0.0  ;;  %5703 = vmatmul.msk.bf16.gmra.mxu0 %vm447_vm0, %v427_v15  ;;  %v6339_v18 = vld [vmem:[%s9028_s3 + $0xe8] sm:$0xff] }
  0x9d   : > { %2592 = vmatpush.bf16.msrb.mxu0 %v6339_v18 }
  0x9e   : > { %v617_v24 = vpack.c.bf16 %v585_v19, %v585_v19  ;;  %v407_v19 = vld [vmem:[%s6666_s19 + $0xa0] sm:$0xff] }
  0x9f   : > { %v429_v42 = vpack.c.bf16 %v408_v21, %v407_v19 }
  0xa0   : > { %v652_v27 = vshrl.u32 %v617_v24, 16  ;;  %v655_v31 = vshll.u32 %v617_v24, 16  ;;  %v348_v24 = vld [vmem:[#allocation2 + $0x38] sm:$0x1] }
  0xa1   : > { %v507_v28 = vpop.f32.mrf.mxu0 }
  0xa2   : > { %v654_v29 = vrot.slane %v652_v27, 7  ;;  %v508_v32 = vadd.f32 %v6795_v12, %v507_v28 }
  0xa4   : > { %v657_v38 = vor.u32 %v655_v31, %v654_v29  ;;  %v586_v39 = vmax.f32 %v508_v32, 0.0  ;;  %v658_v55 = vrot.slane %v654_v29, 4  ;;  %v349_v31 = vsel %vm6752_vm5, 0, %v348_v24  ;;  %v413_v32 = vld [vmem:[%s6666_s19 + $0xd0] sm:$0xff] }
  0xa5   : > { %350 = vst [vmem:[#allocation2 + $0x38] sm:$0x1] %v349_v31  ;;  %v6335_v31 = vld [vmem:[%s9028_s3 + $0xc8] sm:$0xff] }
  0xa6   : > { %v974_v44 = vsel %vm6805_vm10, %v657_v38, %v973_v36  ;;  %v618_v45 = vpack.c.bf16 %v586_v39, %v586_v39 }
  0xa7   : > { %975 = vst [vmem:[#allocation2 + $0xc] sm:$0xf] %v974_v44  ;;  %v414_v44 = vld [vmem:[%s6666_s19 + $0xd8] sm:$0xff] }
  0xa8   : > { %v660_v47 = vshrl.u32 %v618_v45, 16  ;;  %v663_v51 = vshll.u32 %v618_v45, 16 }
  0xa9   : > { %v510_v49 = vpop.f32.mrf.mxu0 }
  0xaa   : > { %v662_v50 = vrot.slane %v660_v47, 7  ;;  %v511_v52 = vadd.f32 %v6795_v12, %v510_v49  ;;  %v432_v49 = vpack.c.bf16 %v414_v44, %v413_v32  ;;  %v409_v32 = vld [vmem:[%s6666_s19 + $0xb0] sm:$0xff] }
  0xac   : > { %v665_v56 = vor.u32 %v663_v51, %v662_v50  ;;  %v667_v57 = vrot.slane %v662_v50, 4  ;;  %v587_v58 = vmax.f32 %v511_v52, 0.0  ;;  %5704 = vmatmul.msk.bf16.gmra.mxu0 %vm447_vm0, %v428_v48  ;;  %v6338_v50 = vld [vmem:[%s9028_s3 + $0xe0] sm:$0xff]  ;;  %5708 = vmatmul.msk.bf16.vlgmr.msra.gmra.mxu3 %vm447_vm0, %v432_v49 }
  0xad   : > { %2593 = vmatpush.bf16.msrb.mxu0 %v6338_v50  ;;  %6416 = vmatpush.bf16.msra.mxu3 %v6686_v16 }
  0xae   : > { %v666_v61 = vsel %vm6817_vm12, %v658_v55, %v665_v56  ;;  %v978_v62 = vsel %vm6708_vm3, %v667_v57, %v977_v54  ;;  %v619_v63 = vpack.c.bf16 %v587_v58, %v587_v58  ;;  %v1087_v1 = vld [vmem:[#allocation2 + $0xc] sm:$0xf]  ;;  %v984_v55 = vld [vmem:[#allocation2 + $0x20] sm:$0x1] }
  0xaf   : > { %976 = vst [vmem:[#allocation2 + $0x10] sm:$0xf] %v666_v61  ;;  %v1177_v3 = vshrl.u32 %v1087_v1, 16  ;;  %v1180_v4 = vshll.u32 %v1087_v1, 16 }
  0xb0   : > { %979 = vst [vmem:[#allocation2 + $0x14] sm:$0x1] %v978_v62  ;;  %v669_v5 = vshrl.u32 %v619_v63, 16  ;;  %v672_v9 = vshll.u32 %v619_v63, 16  ;;  %v6337_v62 = vld [vmem:[%s9028_s3 + $0xd8] sm:$0xff] }
  0xb1   : > { %v512_v7 = vpop.f32.mrf.mxu0  ;;  %v1179_v13 = vrot.slane %v1177_v3, 4  ;;  %v1182_v14 = vrot.slane %v1180_v4, 5  ;;  %v301_v3 = vld [vmem:[#allocation2 + $0x3c] sm:$0x1]  ;;  %2594 = vmatpush.bf16.msrb.mxu0 %v6337_v62  ;;  %6417 = vmatpush.bf16.msra.mxu3 %v6694_v20  ;;  %v991_v62 = vld [vmem:[#allocation2 + $0x2c] sm:$0x1] }
  0xb2   : > { %v671_v8 = vrot.slane %v669_v5, 7  ;;  %v513_v10 = vadd.f32 %v6795_v12, %v512_v7 }
  0xb3   : > { %v1183_v38 = vor.u32 %v1182_v14, %v1179_v13 }
  0xb4   : > { %v674_v15 = vor.u32 %v672_v9, %v671_v8  ;;  %v588_v17 = vmax.f32 %v513_v10, 0.0  ;;  %v675_v58 = vrot.slane %v671_v8, 4  ;;  %v302_v8 = vsel %vm6708_vm3, 0, %v301_v3 }
  0xb5   : > { %v1184_v56 = vrot.slane %v1183_v38, 4  ;;  %303 = vst [vmem:[#allocation2 + $0x3c] sm:$0x1] %v302_v8  ;;  %6418 = vmatpush.bf16.msra.mxu3 %v6704_v22  ;;  %v351_v38 = vld [vmem:[#allocation2 + $0x44] sm:$0x1] }
  0xb6   : > { %v981_v25 = vsel %vm6805_vm10, %v674_v15, %v980_v11  ;;  %v620_v27 = vpack.c.bf16 %v588_v17, %v588_v17  ;;  %v6279_v28 = vld [vmem:[#allocation2 + $0xc] sm:$0xff]  ;;  %v352_v44 = vsel %vm6752_vm5, 0, %v351_v38  ;;  %v304_v8 = vld [vmem:[#allocation2 + $0x48] sm:$0x1]  ;;  %v411_v38 = vld [vmem:[%s6666_s19 + $0xc0] sm:$0xff] }
  0xb7   : > { %v1088_v29 = vld [vmem:[#allocation2 + $0x10] sm:$0xf]  ;;  %982 = vst [vmem:[#allocation2 + $0x18] sm:$0xf] %v981_v25  ;;  %v1134_v36 = vld [vmem:[#allocation2 + $0x14] sm:$0x1]  ;;  %1910 = vmatmul.bf16.gmra.mxu2 %v6279_v28 }
  0xb8   : > { %v1186_v39 = vshll.u32 %v1088_v29, 16  ;;  %v1190_v40 = vshrl.u32 %v1088_v29, 16  ;;  %v677_v41 = vshrl.u32 %v620_v27, 16  ;;  %v1196_v48 = vshll.u32 %v1134_v36, 16  ;;  %v6336_v17 = vld [vmem:[%s9028_s3 + $0xd0] sm:$0xff]  ;;  %v410_v36 = vld [vmem:[%s6666_s19 + $0xb8] sm:$0xff] }
  0xb9   : > { %v515_v45 = vpop.f32.mrf.mxu0  ;;  %v680_v52 = vshll.u32 %v620_v27, 16  ;;  %v987_v25 = vld [vmem:[#allocation2 + $0x24] sm:$0xf]  ;;  %2595 = vmatpush.bf16.msrb.mxu0 %v6336_v17  ;;  %v430_v50 = vpack.c.bf16 %v410_v36, %v409_v32  ;;  %6419 = vmatpush.bf16.msra.mxu3 %v6718_v26  ;;  %353 = vst [vmem:[#allocation2 + $0x44] sm:$0x1] %v352_v44 }
  0xba   : > { %v1188_v46 = vrot.slane %v1186_v39, 5  ;;  %v1192_v47 = vrot.slane %v1190_v40, 4  ;;  %v679_v51 = vrot.slane %v677_v41, 7  ;;  %v516_v54 = vadd.f32 %v6795_v12, %v515_v45  ;;  %v415_v45 = vld [vmem:[%s6666_s19 + $0xe0] sm:$0xff] }
  0xbb   : > { %v1198_v2 = vrot.slane %v1196_v48, 5 }
  0xbc   : > { %v1193_v57 = vor.u32 %v1192_v47, %v1188_v46  ;;  %v682_v59 = vor.u32 %v680_v52, %v679_v51  ;;  %v684_v60 = vrot.slane %v679_v51, 4  ;;  %v589_v61 = vmax.f32 %v516_v54, 0.0  ;;  %5705 = vmatmul.msk.bf16.gmra.mxu0 %vm447_vm0, %v429_v42  ;;  %v416_v51 = vld [vmem:[%s6666_s19 + $0xe8] sm:$0xff] }
  0xbd   : > { %v1189_v63 = vsel %vm6779_vm8, %v1184_v56, %v1188_v46  ;;  %2596 = vmatpush.bf16.msrb.mxu0 %v6335_v31  ;;  %6420 = vmatpush.bf16.msra.mxu3 %v6729_v30 }
  0xbe   : > { %v1194_v1 = vrot.slane %v1193_v57, 4  ;;  %v683_v4 = vsel %vm6817_vm12, %v675_v58, %v682_v59  ;;  %v985_v5 = vsel %vm6708_vm3, %v684_v60, %v984_v55  ;;  %v621_v6 = vpack.c.bf16 %v589_v61, %v589_v61  ;;  %v1089_v7 = vld [vmem:[#allocation2 + $0x18] sm:$0xf]  ;;  %v6334_v58 = vld [vmem:[%s9028_s3 + $0xc0] sm:$0xff] }
  0xbf   : > { %983 = vst [vmem:[#allocation2 + $0x1c] sm:$0xf] %v683_v4  ;;  %v1201_v9 = vshrl.u32 %v1089_v7, 16  ;;  %v1204_v10 = vshll.u32 %v1089_v7, 16  ;;  %v1554_v13 = vunpack.c.l.b16 %v1189_v63  ;;  %v433_v57 = vpack.c.bf16 %v416_v51, %v415_v45 }
  0xc0   : > { %v1199_v16 = vsel %vm6779_vm8, %v1194_v1, %v1198_v2  ;;  %986 = vst [vmem:[#allocation2 + $0x20] sm:$0x1] %v985_v5  ;;  %v686_v11 = vshrl.u32 %v621_v6, 16  ;;  %v689_v19 = vshll.u32 %v621_v6, 16 }
  0xc1   : > { %v1555_v14 = vunpack.c.l.b16 %v1199_v16  ;;  %v517_v15 = vpop.f32.mrf.mxu0  ;;  %v1203_v27 = vrot.slane %v1201_v9, 4  ;;  %v1206_v28 = vrot.slane %v1204_v10, 5  ;;  %5709 = vmatmul.msk.bf16.gmra.mxu3 %vm447_vm0, %v433_v57  ;;  %2597 = vmatpush.bf16.msrb.mxu0 %v6334_v58  ;;  %v998_v58 = vld [vmem:[#allocation2 + $0x38] sm:$0x1] }
  0xc2   : > { %v688_v18 = vrot.slane %v686_v11, 7  ;;  %v518_v21 = vadd.f32 %v6795_v12, %v517_v15  ;;  %6421 = vmatpush.bf16.msra.mxu3 %v6738_v33 }
  0xc3   : > { %v1585_v24 = vpack.c.b16 %v1555_v14, %v1554_v13  ;;  %v1207_v47 = vor.u32 %v1206_v28, %v1203_v27  ;;  %v305_v13 = vsel %vm6708_vm3, 0, %v304_v8 }
  0xc4   : > { %v691_v29 = vor.u32 %v689_v19, %v688_v18  ;;  %v590_v20 = vmax.f32 %v518_v21, 0.0  ;;  %v692_v26 = vrot.slane %v688_v18, 4  ;;  %306 = vst [vmem:[#allocation2 + $0x48] sm:$0x1] %v305_v13 }
  0xc5   : > { %1677 = vmatmul.bf16.gmra.mxu1 %v1585_v24  ;;  %v1208_v63 = vrot.slane %v1207_v47, 4 }
  0xc6   : > { %v988_v39 = vsel %vm6805_vm10, %v691_v29, %v987_v25  ;;  %v622_v40 = vpack.c.bf16 %v590_v20, %v590_v20  ;;  %v6280_v41 = vld [vmem:[#allocation2 + $0x18] sm:$0xff]  ;;  %v994_v29 = vld [vmem:[#allocation2 + $0x30] sm:$0xf]  ;;  %6422 = vmatpush.bf16.msra.mxu3 %v6748_v35 }
  0xc7   : > { %v1090_v42 = vld [vmem:[#allocation2 + $0x1c] sm:$0xf]  ;;  %989 = vst [vmem:[#allocation2 + $0x24] sm:$0xf] %v988_v39  ;;  %v1135_v46 = vld [vmem:[#allocation2 + $0x20] sm:$0x1]  ;;  %1915 = vmatmul.bf16.gmra.mxu2 %v6280_v41 }
  0xc8   : > { %v1210_v48 = vshll.u32 %v1090_v42, 16  ;;  %v1214_v49 = vshrl.u32 %v1090_v42, 16  ;;  %v694_v22 = vshrl.u32 %v622_v40, 16  ;;  %v1220_v56 = vshll.u32 %v1135_v46, 16  ;;  %v412_v39 = vld [vmem:[%s6666_s19 + $0xc8] sm:$0xff] }
  0xc9   : > { %v520_v52 = vpop.f32.mrf.mxu0  ;;  %v697_v60 = vshll.u32 %v622_v40, 16 }
  0xca   : > { %v1212_v54 = vrot.slane %v1210_v48, 5  ;;  %v1216_v55 = vrot.slane %v1214_v49, 4  ;;  %v696_v59 = vrot.slane %v694_v22, 7  ;;  %v521_v61 = vadd.f32 %v6795_v12, %v520_v52  ;;  %6423 = vmatpush.bf16.msra.mxu3 %v6767_v43  ;;  %v354_v52 = vld [vmem:[#allocation2 + $0x50] sm:$0x1] }
  0xcb   : > { %v1222_v7 = vrot.slane %v1220_v56, 5  ;;  %v431_v49 = vpack.c.bf16 %v412_v39, %v411_v38  ;;  %v355_v57 = vsel %vm6752_vm5, 0, %v354_v52 }
  0xcc   : > { %v1217_v1 = vor.u32 %v1216_v55, %v1212_v54  ;;  %v699_v2 = vor.u32 %v697_v60, %v696_v59  ;;  %v701_v3 = vrot.slane %v696_v59, 4  ;;  %v591_v4 = vmax.f32 %v521_v61, 0.0  ;;  %5706 = vmatmul.msk.bf16.gmra.mxu0 %vm447_vm0, %v430_v50  ;;  %356 = vst [vmem:[#allocation2 + $0x50] sm:$0x1] %v355_v57 }
  0xcd   : > { %v1213_v5 = vsel %vm6779_vm8, %v1208_v63, %v1212_v54 }
  0xce   : > { %v1218_v6 = vrot.slane %v1217_v1, 4  ;;  %v700_v16 = vsel %vm6817_vm12, %v692_v26, %v699_v2  ;;  %v992_v9 = vsel %vm6708_vm3, %v701_v3, %v991_v62  ;;  %v623_v10 = vpack.c.bf16 %v591_v4, %v591_v4  ;;  %v1091_v11 = vld [vmem:[#allocation2 + $0x24] sm:$0xf] }
  0xcf   : > { %990 = vst [vmem:[#allocation2 + $0x28] sm:$0xf] %v700_v16  ;;  %v1225_v14 = vshrl.u32 %v1091_v11, 16  ;;  %v1228_v15 = vshll.u32 %v1091_v11, 16  ;;  %v1556_v18 = vunpack.c.l.b16 %v1213_v5 }
  0xd0   : > { %v1223_v30 = vsel %vm6779_vm8, %v1218_v6, %v1222_v7  ;;  %993 = vst [vmem:[#allocation2 + $0x2c] sm:$0x1] %v992_v9  ;;  %v703_v17 = vshrl.u32 %v623_v10, 16  ;;  %v706_v25 = vshll.u32 %v623_v10, 16  ;;  %v307_v9 = vld [vmem:[#allocation2 + $0x54] sm:$0x1] }
  0xd1   : > { %v1557_v19 = vunpack.c.l.b16 %v1223_v30  ;;  %v522_v21 = vpop.f32.mrf.mxu0  ;;  %v1227_v20 = vrot.slane %v1225_v14, 4  ;;  %v1230_v31 = vrot.slane %v1228_v15, 5  ;;  %v308_v30 = vsel %vm6708_vm3, 0, %v307_v9 }
  0xd2   : > { %v705_v24 = vrot.slane %v703_v17, 7  ;;  %v523_v27 = vadd.f32 %v6795_v12, %v522_v21  ;;  %309 = vst [vmem:[#allocation2 + $0x54] sm:$0x1] %v308_v30  ;;  %v1001_v21 = vld [vmem:[#allocation2 + $0x3c] sm:$0xf] }
  0xd3   : > { %v1586_v28 = vpack.c.b16 %v1557_v19, %v1556_v18  ;;  %v1231_v45 = vor.u32 %v1230_v31, %v1227_v20 }
  0xd4   : > { %v708_v32 = vor.u32 %v706_v25, %v705_v24  ;;  %v592_v36 = vmax.f32 %v523_v27, 0.0  ;;  %v709_v61 = vrot.slane %v705_v24, 4 }
  0xd5   : > { %1682 = vmatmul.bf16.gmra.mxu1 %v1586_v28  ;;  %v1232_v59 = vrot.slane %v1231_v45, 4 }
  0xd6   : > { %v995_v33 = vsel %vm6805_vm10, %v708_v32, %v994_v29  ;;  %v624_v40 = vpack.c.bf16 %v592_v36, %v592_v36  ;;  %v6281_v41 = vld [vmem:[#allocation2 + $0x24] sm:$0xff] }
  0xd7   : > { %v1092_v42 = vld [vmem:[#allocation2 + $0x28] sm:$0xf]  ;;  %996 = vst [vmem:[#allocation2 + $0x30] sm:$0xf] %v995_v33  ;;  %v1136_v44 = vld [vmem:[#allocation2 + $0x2c] sm:$0x1]  ;;  %1920 = vmatmul.bf16.gmra.mxu2 %v6281_v41 }
  0xd8   : > { %v1234_v46 = vshll.u32 %v1092_v42, 16  ;;  %v1238_v47 = vshrl.u32 %v1092_v42, 16  ;;  %v711_v48 = vshrl.u32 %v624_v40, 16  ;;  %v1244_v51 = vshll.u32 %v1136_v44, 16 }
  0xd9   : > { %v525_v22 = vpop.f32.mrf.mxu0  ;;  %v714_v55 = vshll.u32 %v624_v40, 16 }
  0xda   : > { %v1236_v35 = vrot.slane %v1234_v46, 5  ;;  %v1240_v50 = vrot.slane %v1238_v47, 4  ;;  %v713_v54 = vrot.slane %v711_v48, 7  ;;  %v526_v56 = vadd.f32 %v6795_v12, %v525_v22  ;;  %v357_v46 = vld [vmem:[#allocation2 + $0x5c] sm:$0x1]  ;;  %v6318_v22 = vld [vmem:[#allocation2 + $0xc] sm:$0xff] }
  0xdb   : > { %v1246_v2 = vrot.slane %v1244_v51, 5 }
  0xdc   : > { %v1241_v60 = vor.u32 %v1240_v50, %v1236_v35  ;;  %v716_v62 = vor.u32 %v714_v55, %v713_v54  ;;  %v718_v63 = vrot.slane %v713_v54, 4  ;;  %v593_v43 = vmax.f32 %v526_v56, 0.0  ;;  %5707 = vmatmul.msk.bf16.gmra.mxu0 %vm447_vm0, %v431_v49  ;;  %v1005_v50 = vld [vmem:[#allocation2 + $0x44] sm:$0x1] }
  0xdd   : > { %v1237_v1 = vsel %vm6779_vm8, %v1232_v59, %v1236_v35  ;;  %v358_v35 = vsel %vm6752_vm5, 0, %v357_v46 }
  0xde   : > { %v1242_v26 = vrot.slane %v1241_v60, 4  ;;  %v717_v3 = vsel %vm6817_vm12, %v709_v61, %v716_v62  ;;  %v999_v4 = vsel %vm6708_vm3, %v718_v63, %v998_v58  ;;  %v625_v5 = vpack.c.bf16 %v593_v43, %v593_v43  ;;  %v1093_v6 = vld [vmem:[#allocation2 + $0x30] sm:$0xf]  ;;  %359 = vst [vmem:[#allocation2 + $0x5c] sm:$0x1] %v358_v35 }
  0xdf   : > { %997 = vst [vmem:[#allocation2 + $0x34] sm:$0xf] %v717_v3  ;;  %v1249_v8 = vshrl.u32 %v1093_v6, 16  ;;  %v1252_v16 = vshll.u32 %v1093_v6, 16  ;;  %v1558_v11 = vunpack.c.l.b16 %v1237_v1  ;;  %v310_v3 = vld [vmem:[#allocation2 + $0x60] sm:$0x1] }
  0xe0   : > { %v1247_v7 = vsel %vm6779_vm8, %v1242_v26, %v1246_v2  ;;  %1000 = vst [vmem:[#allocation2 + $0x38] sm:$0x1] %v999_v4  ;;  %v720_v10 = vshrl.u32 %v625_v5, 16  ;;  %v723_v17 = vshll.u32 %v625_v5, 16 }
  0xe1   : > { %v1559_v13 = vunpack.c.l.b16 %v1247_v7  ;;  %v527_v14 = vpop.f32.mrf.mxu0  ;;  %v1251_v24 = vrot.slane %v1249_v8, 4  ;;  %v1254_v25 = vrot.slane %v1252_v16, 5  ;;  %v311_v7 = vsel %vm6708_vm3, 0, %v310_v3 }
  0xe2   : > { %v722_v15 = vrot.slane %v720_v10, 7  ;;  %v528_v18 = vadd.f32 %v6795_v12, %v527_v14  ;;  %312 = vst [vmem:[#allocation2 + $0x60] sm:$0x1] %v311_v7 }
  0xe3   : > { %v1587_v19 = vpack.c.b16 %v1559_v13, %v1558_v11  ;;  %v1255_v38 = vor.u32 %v1254_v25, %v1251_v24  ;;  %v1008_v13 = vld [vmem:[#allocation2 + $0x48] sm:$0xf] }
  0xe4   : > { %v725_v27 = vor.u32 %v723_v17, %v722_v15  ;;  %v594_v28 = vmax.f32 %v528_v18, 0.0  ;;  %v726_v54 = vrot.slane %v722_v15, 4 }
  0xe5   : > { %1687 = vmatmul.bf16.gmra.mxu1 %v1587_v19  ;;  %v1256_v51 = vrot.slane %v1255_v38, 4 }
  0xe6   : > { %v1002_v29 = vsel %vm6805_vm10, %v725_v27, %v1001_v21  ;;  %v626_v20 = vpack.c.bf16 %v594_v28, %v594_v28  ;;  %v6282_v31 = vld [vmem:[#allocation2 + $0x30] sm:$0xff] }
  0xe7   : > { %v1094_v32 = vld [vmem:[#allocation2 + $0x34] sm:$0xf]  ;;  %1003 = vst [vmem:[#allocation2 + $0x3c] sm:$0xf] %v1002_v29  ;;  %v1137_v36 = vld [vmem:[#allocation2 + $0x38] sm:$0x1]  ;;  %1925 = vmatmul.bf16.gmra.mxu2 %v6282_v31 }
  0xe8   : > { %v1258_v39 = vshll.u32 %v1094_v32, 16  ;;  %v1262_v33 = vshrl.u32 %v1094_v32, 16  ;;  %v728_v40 = vshrl.u32 %v626_v20, 16  ;;  %v1268_v45 = vshll.u32 %v1137_v36, 16 }
  0xe9   : > { %v530_v41 = vpop.f32.mrf.mxu0  ;;  %v731_v48 = vshll.u32 %v626_v20, 16 }
  0xea   : > { %v1260_v42 = vrot.slane %v1258_v39, 5  ;;  %v1264_v44 = vrot.slane %v1262_v33, 4  ;;  %v730_v47 = vrot.slane %v728_v40, 7  ;;  %v531_v49 = vadd.f32 %v6795_v12, %v530_v41  ;;  %v360_v39 = vld [vmem:[#allocation2 + $0x68] sm:$0x1] }
  0xeb   : > { %v1270_v60 = vrot.slane %v1268_v45, 5  ;;  %v1012_v45 = vld [vmem:[#allocation2 + $0x50] sm:$0x1] }
  0xec   : > { %v1265_v52 = vor.u32 %v1264_v44, %v1260_v42  ;;  %v733_v55 = vor.u32 %v731_v48, %v730_v47  ;;  %v735_v56 = vrot.slane %v730_v47, 4  ;;  %v595_v57 = vmax.f32 %v531_v49, 0.0  ;;  %2598 = vmatmul.bf16.vlgmr.msrb.gmra.mxu0 %v6318_v22 }
  0xed   : > { %v1261_v58 = vsel %vm6779_vm8, %v1256_v51, %v1260_v42  ;;  %v6319_v42 = vld [vmem:[#allocation2 + $0x18] sm:$0xff]  ;;  %v361_v44 = vsel %vm6752_vm5, 0, %v360_v39 }
  0xee   : > { %v1266_v59 = vrot.slane %v1265_v52, 4  ;;  %v734_v61 = vsel %vm6817_vm12, %v726_v54, %v733_v55  ;;  %v1006_v62 = vsel %vm6708_vm3, %v735_v56, %v1005_v50  ;;  %v627_v63 = vpack.c.bf16 %v595_v57, %v595_v57  ;;  %v1095_v43 = vld [vmem:[#allocation2 + $0x3c] sm:$0xf]  ;;  %362 = vst [vmem:[#allocation2 + $0x68] sm:$0x1] %v361_v44 }
  0xef   : > { %1004 = vst [vmem:[#allocation2 + $0x40] sm:$0xf] %v734_v61  ;;  %v1273_v26 = vshrl.u32 %v1095_v43, 16  ;;  %v1276_v2 = vshll.u32 %v1095_v43, 16  ;;  %v1560_v5 = vunpack.c.l.b16 %v1261_v58  ;;  %v313_v61 = vld [vmem:[#allocation2 + $0x6c] sm:$0x1] }
  0xf0   : > { %v1271_v1 = vsel %vm6779_vm8, %v1266_v59, %v1270_v60  ;;  %1007 = vst [vmem:[#allocation2 + $0x44] sm:$0x1] %v1006_v62  ;;  %v737_v4 = vshrl.u32 %v627_v63, 16  ;;  %v740_v9 = vshll.u32 %v627_v63, 16 }
  0xf1   : > { %v1561_v6 = vunpack.c.l.b16 %v1271_v1  ;;  %v532_v8 = vpop.f32.mrf.mxu0  ;;  %v1275_v30 = vrot.slane %v1273_v26, 4  ;;  %v1278_v14 = vrot.slane %v1276_v2, 5  ;;  %v314_v1 = vsel %vm6708_vm3, 0, %v313_v61 }
  0xf2   : > { %v739_v16 = vrot.slane %v737_v4, 7  ;;  %v533_v10 = vadd.f32 %v6795_v12, %v532_v8  ;;  %315 = vst [vmem:[#allocation2 + $0x6c] sm:$0x1] %v314_v1 }
  0xf3   : > { %v1588_v11 = vpack.c.b16 %v1561_v6, %v1560_v5  ;;  %v1279_v27 = vor.u32 %v1278_v14, %v1275_v30  ;;  %v1015_v6 = vld [vmem:[#allocation2 + $0x54] sm:$0xf] }
  0xf4   : > { %v742_v15 = vor.u32 %v740_v9, %v739_v16  ;;  %v596_v17 = vmax.f32 %v533_v10, 0.0  ;;  %v743_v48 = vrot.slane %v739_v16, 4 }
  0xf5   : > { %1692 = vmatmul.bf16.gmra.mxu1 %v1588_v11  ;;  %v1280_v46 = vrot.slane %v1279_v27, 4 }
  0xf6   : > { %v1009_v18 = vsel %vm6805_vm10, %v742_v15, %v1008_v13  ;;  %v628_v19 = vpack.c.bf16 %v596_v17, %v596_v17  ;;  %v6283_v21 = vld [vmem:[#allocation2 + $0x3c] sm:$0xff] }
  0xf7   : > { %v1096_v24 = vld [vmem:[#allocation2 + $0x40] sm:$0xf]  ;;  %1010 = vst [vmem:[#allocation2 + $0x48] sm:$0xf] %v1009_v18  ;;  %v1138_v25 = vld [vmem:[#allocation2 + $0x44] sm:$0x1]  ;;  %1930 = vmatmul.bf16.gmra.mxu2 %v6283_v21 }
  0xf8   : > { %v1282_v28 = vshll.u32 %v1096_v24, 16  ;;  %v1286_v29 = vshrl.u32 %v1096_v24, 16  ;;  %v745_v20 = vshrl.u32 %v628_v19, 16  ;;  %v1292_v38 = vshll.u32 %v1138_v25, 16 }
  0xf9   : > { %v535_v31 = vpop.f32.mrf.mxu0  ;;  %v748_v40 = vshll.u32 %v628_v19, 16 }
  0xfa   : > { %v1284_v32 = vrot.slane %v1282_v28, 5  ;;  %v1288_v36 = vrot.slane %v1286_v29, 4  ;;  %v747_v33 = vrot.slane %v745_v20, 7  ;;  %v536_v41 = vadd.f32 %v6795_v12, %v535_v31  ;;  %v363_v28 = vld [vmem:[#allocation2 + $0x74] sm:$0x1] }
  0xfb   : > { %v1294_v52 = vrot.slane %v1292_v38, 5  ;;  %v1019_v38 = vld [vmem:[#allocation2 + $0x5c] sm:$0x1] }
  0xfc   : > { %v1289_v47 = vor.u32 %v1288_v36, %v1284_v32  ;;  %v750_v49 = vor.u32 %v748_v40, %v747_v33  ;;  %v752_v22 = vrot.slane %v747_v33, 4  ;;  %v597_v35 = vmax.f32 %v536_v41, 0.0  ;;  %2603 = vmatmul.bf16.gmra.mxu0 %v6319_v42 }
  0xfd   : > { %v1285_v50 = vsel %vm6779_vm8, %v1280_v46, %v1284_v32  ;;  %v6320_v32 = vld [vmem:[#allocation2 + $0x24] sm:$0xff]  ;;  %v364_v36 = vsel %vm6752_vm5, 0, %v363_v28  ;;  %v418_v28 = vld [vmem:[%s6666_s19 + $0xf8] sm:$0xff] }
  0xfe   : > { %v1290_v51 = vrot.slane %v1289_v47, 4  ;;  %v751_v54 = vsel %vm6817_vm12, %v743_v48, %v750_v49  ;;  %v1013_v55 = vsel %vm6708_vm3, %v752_v22, %v1012_v45  ;;  %v629_v56 = vpack.c.bf16 %v597_v35, %v597_v35  ;;  %v1097_v57 = vld [vmem:[#allocation2 + $0x48] sm:$0xf]  ;;  %365 = vst [vmem:[#allocation2 + $0x74] sm:$0x1] %v364_v36 }
  0xff   : > { %1011 = vst [vmem:[#allocation2 + $0x4c] sm:$0xf] %v751_v54  ;;  %v1297_v59 = vshrl.u32 %v1097_v57, 16  ;;  %v1300_v60 = vshll.u32 %v1097_v57, 16  ;;  %v1562_v63 = vunpack.c.l.b16 %v1285_v50  ;;  %v316_v54 = vld [vmem:[#allocation2 + $0x78] sm:$0x1] }
 0x100   : > { %v1295_v58 = vsel %vm6779_vm8, %v1290_v51, %v1294_v52  ;;  %1014 = vst [vmem:[#allocation2 + $0x50] sm:$0x1] %v1013_v55  ;;  %v754_v62 = vshrl.u32 %v629_v56, 16  ;;  %v757_v3 = vshll.u32 %v629_v56, 16 }
 0x101   : > { %v1563_v43 = vunpack.c.l.b16 %v1295_v58  ;;  %v537_v26 = vpop.f32.mrf.mxu0  ;;  %v1299_v7 = vrot.slane %v1297_v59, 4  ;;  %v1302_v8 = vrot.slane %v1300_v60, 5  ;;  %v317_v58 = vsel %vm6708_vm3, 0, %v316_v54 }
 0x102   : > { %v756_v2 = vrot.slane %v754_v62, 7  ;;  %v538_v4 = vadd.f32 %v6795_v12, %v537_v26  ;;  %318 = vst [vmem:[#allocation2 + $0x78] sm:$0x1] %v317_v58 }
 0x103   : > { %v1589_v5 = vpack.c.b16 %v1563_v43, %v1562_v63  ;;  %v1303_v15 = vor.u32 %v1302_v8, %v1299_v7  ;;  %v1022_v43 = vld [vmem:[#allocation2 + $0x60] sm:$0xf] }
 0x104   : > { %v759_v16 = vor.u32 %v757_v3, %v756_v2  ;;  %v598_v9 = vmax.f32 %v538_v4, 0.0  ;;  %v760_v40 = vrot.slane %v756_v2, 4 }
 0x105   : > { %1697 = vmatmul.bf16.gmra.mxu1 %v1589_v5  ;;  %v1304_v39 = vrot.slane %v1303_v15, 4 }
 0x106   : > { %v1016_v10 = vsel %vm6805_vm10, %v759_v16, %v1015_v6  ;;  %v630_v11 = vpack.c.bf16 %v598_v9, %v598_v9  ;;  %v6284_v13 = vld [vmem:[#allocation2 + $0x48] sm:$0xff] }
 0x107   : > { %v1098_v30 = vld [vmem:[#allocation2 + $0x4c] sm:$0xf]  ;;  %1017 = vst [vmem:[#allocation2 + $0x54] sm:$0xf] %v1016_v10  ;;  %v1139_v14 = vld [vmem:[#allocation2 + $0x50] sm:$0x1]  ;;  %1935 = vmatmul.bf16.gmra.mxu2 %v6284_v13 }
 0x108   : > { %v1306_v17 = vshll.u32 %v1098_v30, 16  ;;  %v1310_v18 = vshrl.u32 %v1098_v30, 16  ;;  %v762_v19 = vshrl.u32 %v630_v11, 16  ;;  %v1316_v27 = vshll.u32 %v1139_v14, 16 }
 0x109   : > { %v540_v21 = vpop.f32.mrf.mxu0  ;;  %v765_v20 = vshll.u32 %v630_v11, 16 }
 0x10a   : > { %v1308_v24 = vrot.slane %v1306_v17, 5  ;;  %v1312_v25 = vrot.slane %v1310_v18, 4  ;;  %v764_v29 = vrot.slane %v762_v19, 7  ;;  %v541_v31 = vadd.f32 %v6795_v12, %v540_v21  ;;  %v366_v17 = vld [vmem:[#allocation2 + $0x80] sm:$0x1] }
 0x10b   : > { %v1318_v47 = vrot.slane %v1316_v27, 5  ;;  %v417_v27 = vld [vmem:[%s6666_s19 + $0xf0] sm:$0xff] }
 0x10c   : > { %v1313_v33 = vor.u32 %v1312_v25, %v1308_v24  ;;  %v767_v41 = vor.u32 %v765_v20, %v764_v29  ;;  %v769_v42 = vrot.slane %v764_v29, 4  ;;  %v599_v44 = vmax.f32 %v541_v31, 0.0  ;;  %2608 = vmatmul.bf16.gmra.mxu0 %v6320_v32  ;;  %v1026_v29 = vld [vmem:[#allocation2 + $0x68] sm:$0x1] }
 0x10d   : > { %v1309_v45 = vsel %vm6779_vm8, %v1304_v39, %v1308_v24  ;;  %v6321_v24 = vld [vmem:[#allocation2 + $0x30] sm:$0xff]  ;;  %v367_v25 = vsel %vm6752_vm5, 0, %v366_v17  ;;  %v434_v32 = vpack.c.bf16 %v418_v28, %v417_v27  ;;  %v6357_v27 = vld [vmem:[%s9028_s3 + $0x178] sm:$0xff] }
 0x10e   : > { %v1314_v46 = vrot.slane %v1313_v33, 4  ;;  %v768_v48 = vsel %vm6817_vm12, %v760_v40, %v767_v41  ;;  %v1020_v49 = vsel %vm6708_vm3, %v769_v42, %v1019_v38  ;;  %v631_v22 = vpack.c.bf16 %v599_v44, %v599_v44  ;;  %v1099_v35 = vld [vmem:[#allocation2 + $0x54] sm:$0xf]  ;;  %368 = vst [vmem:[#allocation2 + $0x80] sm:$0x1] %v367_v25  ;;  %v6322_v25 = vld [vmem:[#allocation2 + $0x3c] sm:$0xff]  ;;  %3696 = vmatpush.bf16.msrb.mxu2 %v6357_v27 }
 0x10f   : > { %1018 = vst [vmem:[#allocation2 + $0x58] sm:$0xf] %v768_v48  ;;  %v1321_v51 = vshrl.u32 %v1099_v35, 16  ;;  %v1324_v52 = vshll.u32 %v1099_v35, 16  ;;  %v1564_v56 = vunpack.c.l.b16 %v1309_v45  ;;  %5710 = vmatmul.msk.bf16.gmra.mxu3 %vm447_vm0, %v434_v32  ;;  %v1906_v48 = vpop.f32.mrf.mxu2  ;;  %v1033_v28 = vld [vmem:[#allocation2 + $0x74] sm:$0x1] }
 0x110   : > { %v1319_v50 = vsel %vm6779_vm8, %v1314_v46, %v1318_v47  ;;  %1021 = vst [vmem:[#allocation2 + $0x5c] sm:$0x1] %v1020_v49  ;;  %v771_v55 = vshrl.u32 %v631_v22, 16  ;;  %v774_v61 = vshll.u32 %v631_v22, 16  ;;  %v1673_v49 = vpop.f32.mrf.mxu1 }
 0x111   : > { %v1565_v57 = vunpack.c.l.b16 %v1319_v50  ;;  %v542_v59 = vpop.f32.mrf.mxu0  ;;  %v1323_v1 = vrot.slane %v1321_v51, 4  ;;  %v1326_v26 = vrot.slane %v1324_v52, 5  ;;  %v319_v50 = vld [vmem:[#allocation2 + $0x84] sm:$0x1] }
 0x112   : > { %v773_v60 = vrot.slane %v771_v55, 7  ;;  %v543_v62 = vadd.f32 %v6795_v12, %v542_v59  ;;  %v6988_v55 = vadd.f32 %v1906_v48, %v1673_v49  ;;  %v322_v49 = vld [vmem:[#allocation2 + $0x90] sm:$0x1] }
 0x113   : > { %v1590_v63 = vpack.c.b16 %v1565_v57, %v1564_v56  ;;  %v1327_v16 = vor.u32 %v1326_v26, %v1323_v1  ;;  %v320_v57 = vsel %vm6708_vm3, 0, %v319_v50 }
 0x114   : > { %v776_v2 = vor.u32 %v774_v61, %v773_v60  ;;  %v600_v3 = vmax.f32 %v543_v62, 0.0  ;;  %v777_v36 = vrot.slane %v773_v60, 4  ;;  %v6995_v60 = vld [vmem:[%s9027_s2] ss:$0 sm:$0xff]  ;;  %321 = vst [vmem:[#allocation2 + $0x84] sm:$0x1] %v320_v57 }
 0x115   : > { %1702 = vmatmul.bf16.gmra.mxu1 %v1590_v63  ;;  %v1328_v20 = vrot.slane %v1327_v16, 4  ;;  %v1029_v63 = vld [vmem:[#allocation2 + $0x6c] sm:$0xf] }
 0x116   : > { %v1023_v4 = vsel %vm6805_vm10, %v776_v2, %v1022_v43  ;;  %v632_v5 = vpack.c.bf16 %v600_v3, %v600_v3  ;;  %v6285_v6 = vld [vmem:[#allocation2 + $0x54] sm:$0xff] }
 0x117   : > { %v1100_v7 = vld [vmem:[#allocation2 + $0x58] sm:$0xf]  ;;  %1024 = vst [vmem:[#allocation2 + $0x60] sm:$0xf] %v1023_v4  ;;  %v1140_v8 = vld [vmem:[#allocation2 + $0x5c] sm:$0x1]  ;;  %1940 = vmatmul.bf16.gmra.mxu2 %v6285_v6 }
 0x118   : > { %v1330_v9 = vshll.u32 %v1100_v7, 16  ;;  %v1334_v10 = vshrl.u32 %v1100_v7, 16  ;;  %v779_v11 = vshrl.u32 %v632_v5, 16  ;;  %v1340_v15 = vshll.u32 %v1140_v8, 16 }
 0x119   : > { %v545_v13 = vpop.f32.mrf.mxu0  ;;  %v782_v19 = vshll.u32 %v632_v5, 16 }
 0x11a   : > { %v1332_v30 = vrot.slane %v1330_v9, 5  ;;  %v1336_v14 = vrot.slane %v1334_v10, 4  ;;  %v781_v18 = vrot.slane %v779_v11, 7  ;;  %v546_v21 = vadd.f32 %v6795_v12, %v545_v13  ;;  %v6349_v11 = vld [vmem:[%s9028_s3 + $0x138] sm:$0xff]  ;;  %v369_v13 = vld [vmem:[#allocation2 + $0x8c] sm:$0x1] }
 0x11b   : > { %v1342_v41 = vrot.slane %v1340_v15, 5  ;;  %3271 = vmatpush.bf16.msrb.mxu1 %v6349_v11 }
 0x11c   : > { %v1337_v31 = vor.u32 %v1336_v14, %v1332_v30  ;;  %v784_v38 = vor.u32 %v782_v19, %v781_v18  ;;  %v786_v39 = vrot.slane %v781_v18, 4  ;;  %v601_v33 = vmax.f32 %v546_v21, 0.0  ;;  %2613 = vmatmul.bf16.gmra.mxu0 %v6321_v24 }
 0x11d   : > { %v1333_v40 = vsel %vm6779_vm8, %v1328_v20, %v1332_v30  ;;  %v370_v18 = vsel %vm6752_vm5, 0, %v369_v13  ;;  %v7039_v13 = vpop.f32.mrf.mxu1 }
 0x11e   : > { %v1338_v12 = vrot.slane %v1337_v31, 4  ;;  %v785_v42 = vsel %vm6817_vm12, %v777_v36, %v784_v38  ;;  %v1027_v44 = vsel %vm6708_vm3, %v786_v39, %v1026_v29  ;;  %v633_v45 = vpack.c.bf16 %v601_v33, %v601_v33  ;;  %v1101_v46 = vld [vmem:[#allocation2 + $0x60] sm:$0xf]  ;;  %371 = vst [vmem:[#allocation2 + $0x8c] sm:$0x1] %v370_v18 }
 0x11f   : > { %1025 = vst [vmem:[#allocation2 + $0x64] sm:$0xf] %v785_v42  ;;  %v1345_v22 = vshrl.u32 %v1101_v46, 16  ;;  %v1348_v35 = vshll.u32 %v1101_v46, 16  ;;  %v1566_v52 = vunpack.c.l.b16 %v1333_v40 }
 0x120   : > { %v1343_v47 = vsel %vm6779_vm8, %v1338_v12, %v1342_v41  ;;  %1028 = vst [vmem:[#allocation2 + $0x68] sm:$0x1] %v1027_v44  ;;  %v788_v51 = vshrl.u32 %v633_v45, 16  ;;  %v791_v59 = vshll.u32 %v633_v45, 16  ;;  %v6356_v45 = vld [vmem:[%s9028_s3 + $0x170] sm:$0xff] }
 0x121   : > { %v1567_v54 = vunpack.c.l.b16 %v1343_v47  ;;  %v547_v56 = vpop.f32.mrf.mxu0  ;;  %v1347_v43 = vrot.slane %v1345_v22, 4  ;;  %v1350_v1 = vrot.slane %v1348_v35, 5  ;;  %3697 = vmatpush.bf16.msrb.mxu2 %v6356_v45  ;;  %9048 = vst [vmem:[#allocation7_spill] sm:$0xff] %v7039_v13 }
 0x122   : > { %v790_v58 = vrot.slane %v788_v51, 7  ;;  %v548_v61 = vadd.f32 %v6995_v60, %v547_v56  ;;  %v323_v51 = vsel %vm6708_vm3, 0, %v322_v49  ;;  %v2711_v56 = vld [vmem:[#allocation2 + $0xc] sm:$0xf] }
 0x123   : > { %v1591_v62 = vpack.c.b16 %v1567_v54, %v1566_v52  ;;  %v1351_v8 = vor.u32 %v1350_v1, %v1347_v43  ;;  %v7022_v54 = vpop.f32.mrf.mxu2  ;;  %324 = vst [vmem:[#allocation2 + $0x90] sm:$0x1] %v323_v51 }
 0x124   : > { %v793_v26 = vor.u32 %v791_v59, %v790_v58  ;;  %v602_v2 = vmax.f32 %v548_v61, 0.0  ;;  %v794_v31 = vrot.slane %v790_v58, 4  ;;  %9047 = vst [vmem:[#allocation6_spill] sm:$0xff] %v7022_v54 }
 0x125   : > { %1707 = vmatmul.bf16.gmra.mxu1 %v1591_v62  ;;  %v1352_v29 = vrot.slane %v1351_v8, 4  ;;  %v6355_v62 = vld [vmem:[%s9028_s3 + $0x168] sm:$0xff] }
 0x126   : > { %v1030_v3 = vsel %vm6805_vm10, %v793_v26, %v1029_v63  ;;  %v634_v4 = vpack.c.bf16 %v602_v2, %v602_v2  ;;  %v6286_v5 = vld [vmem:[#allocation2 + $0x60] sm:$0xff]  ;;  %v1036_v63 = vld [vmem:[#allocation2 + $0x78] sm:$0xf]  ;;  %v7030_v26 = vld [vmem:[#allocation2 + $0x10] sm:$0xf]  ;;  %3698 = vmatpush.bf16.msrb.mxu2 %v6355_v62 }
 0x127   : > { %v1102_v6 = vld [vmem:[#allocation2 + $0x64] sm:$0xf]  ;;  %1031 = vst [vmem:[#allocation2 + $0x6c] sm:$0xf] %v1030_v3  ;;  %v1141_v7 = vld [vmem:[#allocation2 + $0x68] sm:$0x1]  ;;  %1945 = vmatmul.bf16.gmra.mxu2 %v6286_v5 }
 0x128   : > { %v1354_v16 = vshll.u32 %v1102_v6, 16  ;;  %v1358_v9 = vshrl.u32 %v1102_v6, 16  ;;  %v796_v10 = vshrl.u32 %v634_v4, 16  ;;  %v1364_v17 = vshll.u32 %v1141_v7, 16  ;;  %v3392_v5 = vld [vmem:[#allocation2 + $0xc] sm:$0xe] }
 0x129   : > { %v550_v30 = vpop.f32.mrf.mxu0  ;;  %v799_v21 = vshll.u32 %v634_v4, 16  ;;  %v2760_v4 = vshrl.u32 %v2711_v56, 16  ;;  %v2763_v6 = vshll.u32 %v2711_v56, 16  ;;  %v3458_v11 = vrot.slane %v7030_v26, 5 }
 0x12a   : > { %v1356_v14 = vrot.slane %v1354_v16, 5  ;;  %v1360_v15 = vrot.slane %v1358_v9, 4  ;;  %v798_v19 = vrot.slane %v796_v10, 7  ;;  %v551_v24 = vadd.f32 %v6995_v60, %v550_v30  ;;  %v6354_v10 = vld [vmem:[%s9028_s3 + $0x160] sm:$0xff] }
 0x12b   : > { %v1366_v40 = vrot.slane %v1364_v17, 5  ;;  %3699 = vmatpush.bf16.msrb.mxu2 %v6354_v10 }
 0x12c   : > { %v1361_v20 = vor.u32 %v1360_v15, %v1356_v14  ;;  %v801_v32 = vor.u32 %v799_v21, %v798_v19  ;;  %v803_v36 = vrot.slane %v798_v19, 4  ;;  %v603_v38 = vmax.f32 %v551_v24, 0.0  ;;  %2618 = vmatmul.bf16.gmra.mxu0 %v6322_v25  ;;  %v7047_v21 = vld [vmem:[#allocation2 + $0x14] sm:$0x1] }
 0x12d   : > { %v1357_v39 = vsel %vm6779_vm8, %v1352_v29, %v1356_v14  ;;  %v6015_v24 = vrot.slane %v3392_v5, 9  ;;  %v7049_v25 = vrot.slane %v2760_v4, 4 }
 0x12e   : > { %v1362_v33 = vrot.slane %v1361_v20, 4  ;;  %v802_v12 = vsel %vm6817_vm12, %v794_v31, %v801_v32  ;;  %v1034_v41 = vsel %vm6708_vm3, %v803_v36, %v1033_v28  ;;  %v635_v42 = vpack.c.bf16 %v603_v38, %v603_v38  ;;  %v1103_v44 = vld [vmem:[#allocation2 + $0x6c] sm:$0xf]  ;;  %v372_v31 = vld [vmem:[#allocation2 + $0x98] sm:$0x1] }
 0x12f   : > { %1032 = vst [vmem:[#allocation2 + $0x70] sm:$0xf] %v802_v12  ;;  %v1369_v47 = vshrl.u32 %v1103_v44, 16  ;;  %v1372_v48 = vshll.u32 %v1103_v44, 16  ;;  %v1568_v35 = vunpack.c.l.b16 %v1357_v39  ;;  %v7051_v32 = vrot.slane %v2763_v6, 5  ;;  %v6348_v12 = vld [vmem:[%s9028_s3 + $0x130] sm:$0xff] }
 0x130   : > { %v1367_v46 = vsel %vm6779_vm8, %v1362_v33, %v1366_v40  ;;  %1035 = vst [vmem:[#allocation2 + $0x74] sm:$0x1] %v1034_v41  ;;  %v805_v22 = vshrl.u32 %v635_v42, 16  ;;  %v808_v58 = vshll.u32 %v635_v42, 16  ;;  %v6323_v33 = vld [vmem:[#allocation2 + $0x48] sm:$0xff]  ;;  %v373_v40 = vsel %vm6752_vm5, 0, %v372_v31  ;;  %3272 = vmatpush.bf16.msrb.mxu1 %v6348_v12 }
 0x131   : > { %v1569_v50 = vunpack.c.l.b16 %v1367_v46  ;;  %v552_v52 = vpop.f32.mrf.mxu0  ;;  %v1371_v43 = vrot.slane %v1369_v47, 4  ;;  %v1374_v1 = vrot.slane %v1372_v48, 5  ;;  %v6353_v41 = vld [vmem:[%s9028_s3 + $0x158] sm:$0xff]  ;;  %v1040_v42 = vld [vmem:[#allocation2 + $0x80] sm:$0x1]  ;;  %v7064_v47 = vsel %vm7043_vm15, %v6015_v24, %v3458_v11  ;;  %v6351_v31 = vld [vmem:[%s9028_s3 + $0x148] sm:$0xff] }
 0x132   : > { %v7024_v57 = vrot.slane %v805_v22, 7  ;;  %v553_v59 = vadd.f32 %v6995_v60, %v552_v52  ;;  %374 = vst [vmem:[#allocation2 + $0x98] sm:$0x1] %v373_v40  ;;  %v3460_v48 = vrot.slane %v3458_v11, 4  ;;  %3700 = vmatpush.bf16.msrb.mxu2 %v6353_v41  ;;  %v325_v6 = vld [vmem:[#allocation2 + $0x9c] sm:$0x1]  ;;  %v2766_v40 = vor.u32 %v7051_v32, %v7049_v25 }
 0x133   : > { %v1592_v61 = vpack.c.b16 %v1569_v50, %v1568_v35  ;;  %v1375_v14 = vor.u32 %v1374_v1, %v1371_v43  ;;  %v6347_v43 = vld [vmem:[%s9028_s3 + $0x128] sm:$0xff]  ;;  %v6352_v1 = vld [vmem:[%s9028_s3 + $0x150] sm:$0xff]  ;;  %v326_v10 = vsel %vm6708_vm3, 0, %v325_v6  ;;  %v3584_v12 = vunpack.c.l.b16 %v7064_v47  ;;  %v6325_v47 = vld [vmem:[#allocation2 + $0x60] sm:$0xff] }
 0x134   : > { %v810_v2 = vor.u32 %v808_v58, %v7024_v57  ;;  %v604_v3 = vmax.f32 %v553_v59, 0.0  ;;  %v811_v49 = vrot.slane %v7024_v57, 4  ;;  %v3461_v58 = vrot.slane %v7047_v21, 5  ;;  %3273 = vmatpush.bf16.msrb.mxu1 %v6347_v43  ;;  %327 = vst [vmem:[#allocation2 + $0x9c] sm:$0x1] %v326_v10 }
 0x135   : > { %1712 = vmatmul.bf16.gmra.mxu1 %v1592_v61  ;;  %v1376_v45 = vrot.slane %v1375_v14, 4 }
 0x136   : > { %v1037_v7 = vsel %vm6805_vm10, %v810_v2, %v1036_v63  ;;  %v636_v8 = vpack.c.bf16 %v604_v3, %v604_v3  ;;  %v6287_v16 = vld [vmem:[#allocation2 + $0x6c] sm:$0xff]  ;;  %v570_v63 = vpop.f32.mrf.mxu3  ;;  %v2769_v2 = vshll.u32 %v7030_v26, 16  ;;  %3701 = vmatpush.bf16.msrb.mxu2 %v6352_v1 }
 0x137   : > { %v1104_v9 = vld [vmem:[#allocation2 + $0x70] sm:$0xf]  ;;  %1038 = vst [vmem:[#allocation2 + $0x78] sm:$0xf] %v1037_v7  ;;  %v1142_v30 = vld [vmem:[#allocation2 + $0x74] sm:$0x1]  ;;  %1950 = vmatmul.bf16.gmra.mxu2 %v6287_v16  ;;  %v7085_v7 = vsel %vm7043_vm15, %v3460_v48, %v3461_v58 }
 0x138   : > { %v1378_v15 = vshll.u32 %v1104_v9, 16  ;;  %v1382_v17 = vshrl.u32 %v1104_v9, 16  ;;  %v813_v18 = vshrl.u32 %v636_v8, 16  ;;  %v1388_v20 = vshll.u32 %v1142_v30, 16 }
 0x139   : > { %v555_v27 = vpop.f32.mrf.mxu0  ;;  %v816_v38 = vshll.u32 %v636_v8, 16  ;;  %v3585_v41 = vunpack.c.l.b16 %v7085_v7 }
 0x13a   : > { %v1380_v28 = vrot.slane %v1378_v15, 5  ;;  %v1384_v29 = vrot.slane %v1382_v17, 4  ;;  %v815_v36 = vrot.slane %v813_v18, 7  ;;  %v556_v39 = vadd.f32 %v6995_v60, %v555_v27  ;;  %v1911_v44 = vpop.f32.mrf.mxu2  ;;  %3702 = vmatpush.bf16.msrb.mxu2 %v6351_v31 }
 0x13b   : > { %v1390_v56 = vrot.slane %v1388_v20, 5  ;;  %v2773_v18 = vshrl.u32 %v7030_v26, 16  ;;  %v6346_v20 = vld [vmem:[%s9028_s3 + $0x120] sm:$0xff] }
 0x13c   : > { %v1385_v46 = vor.u32 %v1384_v29, %v1380_v28  ;;  %v818_v22 = vor.u32 %v816_v38, %v815_v36  ;;  %v820_v35 = vrot.slane %v815_v36, 4  ;;  %v605_v50 = vmax.f32 %v556_v39, 0.0  ;;  %2623 = vmatmul.bf16.gmra.mxu0 %v6323_v33  ;;  %v1043_v36 = vld [vmem:[#allocation2 + $0x84] sm:$0xf]  ;;  %3274 = vmatpush.bf16.msrb.mxu1 %v6346_v20 }
 0x13d   : > { %v1381_v51 = vsel %vm6779_vm8, %v1376_v45, %v1380_v28 }
 0x13e   : > { %v1386_v52 = vrot.slane %v1385_v46, 4  ;;  %v819_v59 = vsel %vm6817_vm12, %v811_v49, %v818_v22  ;;  %v1041_v61 = vsel %vm6708_vm3, %v820_v35, %v1040_v42  ;;  %v637_v57 = vpack.c.bf16 %v605_v50, %v605_v50  ;;  %v1105_v62 = vld [vmem:[#allocation2 + $0x78] sm:$0xf]  ;;  %v572_v35 = vpop.f32.mrf.mxu3 }
 0x13f   : > { %1039 = vst [vmem:[#allocation2 + $0x7c] sm:$0xf] %v819_v59  ;;  %v1393_v4 = vshrl.u32 %v1105_v62, 16  ;;  %v1396_v5 = vshll.u32 %v1105_v62, 16  ;;  %v1570_v16 = vunpack.c.l.b16 %v1381_v51  ;;  %v7106_v42 = vrot.slane %v2769_v2, 5  ;;  %v6345_v50 = vld [vmem:[%s9028_s3 + $0x118] sm:$0xff] }
 0x140   : > { %v1391_v3 = vsel %vm6779_vm8, %v1386_v52, %v1390_v56  ;;  %1042 = vst [vmem:[#allocation2 + $0x80] sm:$0x1] %v1041_v61  ;;  %v822_v8 = vshrl.u32 %v637_v57, 16  ;;  %v825_v11 = vshll.u32 %v637_v57, 16  ;;  %v7115_v51 = vrot.slane %v2773_v18, 4  ;;  %v6350_v2 = vld [vmem:[%s9028_s3 + $0x140] sm:$0xff]  ;;  %3275 = vmatpush.bf16.msrb.mxu1 %v6345_v50 }
 0x141   : > { %v1571_v9 = vunpack.c.l.b16 %v1391_v3  ;;  %v557_v30 = vpop.f32.mrf.mxu0  ;;  %v1395_v15 = vrot.slane %v1393_v4, 4  ;;  %v1398_v17 = vrot.slane %v1396_v5, 5  ;;  %v571_v59 = vadd.f32 %v6995_v60, %v570_v63  ;;  %3703 = vmatpush.bf16.msrb.mxu2 %v6350_v2  ;;  %v1047_v18 = vld [vmem:[#allocation2 + $0x8c] sm:$0x1] }
 0x142   : > { %v1678_v14 = vpop.f32.mrf.mxu1  ;;  %v7090_v24 = vrot.slane %v822_v8, 7  ;;  %v558_v27 = vadd.f32 %v6995_v60, %v557_v30  ;;  %v1913_v38 = vpop.f32.mrf.mxu2  ;;  %v573_v61 = vadd.f32 %v6995_v60, %v572_v35  ;;  %v328_v8 = vld [vmem:[#allocation2 + $0xa8] sm:$0x1]  ;;  %v6324_v30 = vld [vmem:[#allocation2 + $0x54] sm:$0xff] }
 0x143   : > { %v7093_v28 = vadd.f32 %v1911_v44, %v1678_v14  ;;  %v1593_v29 = vpack.c.b16 %v1571_v9, %v1570_v16  ;;  %v1399_v33 = vor.u32 %v1398_v17, %v1395_v15  ;;  %v2779_v44 = vshll.u32 %v7047_v21, 16  ;;  %v375_v15 = vld [vmem:[#allocation2 + $0xa4] sm:$0x1]  ;;  %v6344_v17 = vld [vmem:[%s9028_s3 + $0x110] sm:$0xff] }
 0x144   : > { %v827_v39 = vor.u32 %v825_v11, %v7090_v24  ;;  %v606_v26 = vmax.f32 %v558_v27, 0.0  ;;  %v828_v45 = vrot.slane %v7090_v24, 4  ;;  %v611_v16 = vmax.f32 %v571_v59, 0.0  ;;  %3276 = vmatpush.bf16.msrb.mxu1 %v6344_v17 }
 0x145   : > { %1717 = vmatmul.bf16.gmra.mxu1 %v1593_v29  ;;  %v1400_v43 = vrot.slane %v1399_v33, 4  ;;  %v612_v9 = vmax.f32 %v573_v61, 0.0  ;;  %v329_v20 = vsel %vm6708_vm3, 0, %v328_v8 }
 0x146   : > { %v1044_v46 = vsel %vm6805_vm10, %v827_v39, %v1043_v36  ;;  %v638_v48 = vpack.c.bf16 %v606_v26, %v606_v26  ;;  %v6288_v49 = vld [vmem:[#allocation2 + $0x78] sm:$0xff]  ;;  %v643_v31 = vpack.c.bf16 %v611_v16, %v611_v16  ;;  %330 = vst [vmem:[#allocation2 + $0xa8] sm:$0x1] %v329_v20 }
 0x147   : > { %v1106_v22 = vld [vmem:[#allocation2 + $0x7c] sm:$0xf]  ;;  %1045 = vst [vmem:[#allocation2 + $0x84] sm:$0xf] %v1044_v46  ;;  %v1143_v52 = vld [vmem:[#allocation2 + $0x80] sm:$0x1]  ;;  %1955 = vmatmul.bf16.gmra.mxu2 %v6288_v49 }
 0x148   : > { %v1402_v56 = vshll.u32 %v1106_v22, 16  ;;  %v1406_v58 = vshrl.u32 %v1106_v22, 16  ;;  %v830_v57 = vshrl.u32 %v638_v48, 16  ;;  %v833_v62 = vshll.u32 %v638_v48, 16  ;;  %v378_v22 = vld [vmem:[#allocation2 + $0xb0] sm:$0x1] }
 0x149   : > { %v1412_v1 = vshll.u32 %v1143_v52, 16  ;;  %v560_v3 = vpop.f32.mrf.mxu0  ;;  %v873_v46 = vshrl.u32 %v643_v31, 16  ;;  %v876_v48 = vshll.u32 %v643_v31, 16  ;;  %v376_v49 = vsel %vm6752_vm5, 0, %v375_v15  ;;  %v381_v20 = vld [vmem:[#allocation2 + $0xbc] sm:$0x1] }
 0x14a   : > { %v1680_v4 = vpop.f32.mrf.mxu1  ;;  %v1404_v5 = vrot.slane %v1402_v56, 5  ;;  %v1408_v6 = vrot.slane %v1406_v58, 4  ;;  %v832_v63 = vrot.slane %v830_v57, 7  ;;  %v561_v10 = vadd.f32 %v6995_v60, %v560_v3  ;;  %v1916_v24 = vpop.f32.mrf.mxu2  ;;  %377 = vst [vmem:[#allocation2 + $0xa4] sm:$0x1] %v376_v49 }
 0x14b   : > { %v7123_v11 = vadd.f32 %v1913_v38, %v1680_v4  ;;  %v1414_v14 = vrot.slane %v1412_v1, 5  ;;  %v379_v56 = vsel %vm6752_vm5, 0, %v378_v22  ;;  %v875_v61 = vrot.slane %v873_v46, 7  ;;  %v575_v3 = vpop.f32.mrf.mxu3  ;;  %v6343_v4 = vld [vmem:[%s9028_s3 + $0x108] sm:$0xff] }
 0x14c   : > { %v1405_v27 = vsel %vm6779_vm8, %v1400_v43, %v1404_v5  ;;  %v1409_v29 = vor.u32 %v1408_v6, %v1404_v5  ;;  %v835_v36 = vor.u32 %v833_v62, %v832_v63  ;;  %v837_v38 = vrot.slane %v832_v63, 4  ;;  %2628 = vmatmul.bf16.gmra.mxu0 %v6324_v30  ;;  %v7145_v5 = vld [vmem:[#allocation2 + $0x18] sm:$0xe]  ;;  %v1050_v6 = vld [vmem:[#allocation2 + $0x90] sm:$0xf]  ;;  %3277 = vmatpush.bf16.msrb.mxu1 %v6343_v4 }
 0x14d   : > { %v607_v39 = vmax.f32 %v561_v10, 0.0  ;;  %v1572_v26 = vunpack.c.l.b16 %v1405_v27  ;;  %v644_v57 = vpack.c.bf16 %v612_v9, %v612_v9  ;;  %v878_v63 = vor.u32 %v876_v48, %v875_v61  ;;  %380 = vst [vmem:[#allocation2 + $0xb0] sm:$0x1] %v379_v56  ;;  %v331_v27 = vld [vmem:[#allocation2 + $0xb4] sm:$0x1] }
 0x14e   : > { %v1410_v33 = vrot.slane %v1409_v29, 4  ;;  %v836_v35 = vsel %vm6817_vm12, %v828_v45, %v835_v36  ;;  %v1048_v50 = vsel %vm6708_vm3, %v837_v38, %v1047_v18  ;;  %v1107_v58 = vld [vmem:[#allocation2 + $0x84] sm:$0xf]  ;;  %v879_v10 = vrot.slane %v875_v61, 4  ;;  %v1064_v36 = vld [vmem:[#allocation2 + $0xa8] sm:$0xf] }
 0x14f   : > { %v639_v52 = vpack.c.bf16 %v607_v39, %v607_v39  ;;  %1046 = vst [vmem:[#allocation2 + $0x88] sm:$0xf] %v836_v35  ;;  %v1417_v62 = vshrl.u32 %v1107_v58, 16  ;;  %v1420_v2 = vshll.u32 %v1107_v58, 16  ;;  %v881_v9 = vshrl.u32 %v644_v57, 16  ;;  %v6342_v29 = vld [vmem:[%s9028_s3 + $0x100] sm:$0xff] }
 0x150   : > { %v1415_v59 = vsel %vm6779_vm8, %v1410_v33, %v1414_v14  ;;  %1049 = vst [vmem:[#allocation2 + $0x8c] sm:$0x1] %v1048_v50  ;;  %v884_v30 = vshll.u32 %v644_v57, 16  ;;  %v332_v46 = vsel %vm6708_vm3, 0, %v331_v27  ;;  %v7163_v49 = vrot.slane %v2766_v40, 4  ;;  %3278 = vmatpush.bf16.msrb.mxu1 %v6342_v29 }
 0x151   : > { %v839_v43 = vshrl.u32 %v639_v52, 16  ;;  %v842_v1 = vshll.u32 %v639_v52, 16  ;;  %v1573_v45 = vunpack.c.l.b16 %v1415_v59  ;;  %v562_v8 = vpop.f32.mrf.mxu0  ;;  %v883_v38 = vrot.slane %v881_v9, 7  ;;  %333 = vst [vmem:[#allocation2 + $0xb4] sm:$0x1] %v332_v46 }
 0x152   : > { %v1683_v16 = vpop.f32.mrf.mxu1  ;;  %v563_v15 = vadd.f32 %v6995_v60, %v562_v8  ;;  %v1918_v31 = vpop.f32.mrf.mxu2  ;;  %v1419_v39 = vrot.slane %v1417_v62, 4  ;;  %v1422_v33 = vrot.slane %v1420_v2, 5  ;;  %v7167_v50 = vrot.slane %v2779_v44, 5 }
 0x153   : > { %v7147_v14 = vrot.slane %v839_v43, 7  ;;  %v7150_v17 = vadd.f32 %v1916_v24, %v1683_v16  ;;  %v1594_v18 = vpack.c.b16 %v1573_v45, %v1572_v26  ;;  %v1065_v26 = vsel %vm6805_vm10, %v878_v63, %v1064_v36 }
 0x154   : > { %v608_v24 = vmax.f32 %v563_v15, 0.0  ;;  %1066 = vst [vmem:[#allocation2 + $0xa8] sm:$0xf] %v1065_v26  ;;  %v886_v22 = vor.u32 %v884_v30, %v883_v38  ;;  %v888_v35 = vrot.slane %v883_v38, 4  ;;  %v6016_v52 = vrot.slane %v7145_v5, 9 }
 0x155   : > { %v844_v48 = vor.u32 %v842_v1, %v7147_v14  ;;  %1722 = vmatmul.bf16.gmra.mxu1 %v1594_v18  ;;  %v576_v57 = vadd.f32 %v6995_v60, %v575_v3  ;;  %v382_v25 = vsel %vm6752_vm5, 0, %v381_v20  ;;  %v1423_v40 = vor.u32 %v1422_v33, %v1419_v39  ;;  %v1068_v45 = vld [vmem:[#allocation2 + $0xb0] sm:$0x1]  ;;  %v577_v3 = vpop.f32.mrf.mxu3 }
 0x156   : > { %v640_v58 = vpack.c.bf16 %v608_v24, %v608_v24  ;;  %v6289_v59 = vld [vmem:[#allocation2 + $0x84] sm:$0xff]  ;;  %v887_v21 = vsel %vm6817_vm12, %v879_v10, %v886_v22  ;;  %v2776_v62 = vor.u32 %v7115_v51, %v7106_v42  ;;  %v7183_v2 = vpack.c.b16 %v3585_v41, %v3584_v12  ;;  %383 = vst [vmem:[#allocation2 + $0xbc] sm:$0x1] %v382_v25  ;;  %v1054_v12 = vld [vmem:[#allocation2 + $0x98] sm:$0x1] }
 0x157   : > { %v1051_v56 = vsel %vm6805_vm10, %v844_v48, %v1050_v6  ;;  %v1108_v61 = vld [vmem:[#allocation2 + $0x88] sm:$0xf]  ;;  %v1144_v32 = vld [vmem:[#allocation2 + $0x8c] sm:$0x1]  ;;  %1960 = vmatmul.bf16.gmra.mxu2 %v6289_v59  ;;  %1067 = vst [vmem:[#allocation2 + $0xac] sm:$0xf] %v887_v21  ;;  %v1069_v8 = vsel %vm6708_vm3, %v888_v35, %v1068_v45  ;;  %v578_v27 = vadd.f32 %v6995_v60, %v577_v3 }
 0x158   : > { %1052 = vst [vmem:[#allocation2 + $0x90] sm:$0xf] %v1051_v56  ;;  %v1426_v44 = vshll.u32 %v1108_v61, 16  ;;  %v847_v43 = vshrl.u32 %v640_v58, 16  ;;  %v850_v1 = vshll.u32 %v640_v58, 16  ;;  %v1430_v63 = vshrl.u32 %v1108_v61, 16 }
 0x159   : > { %v565_v4 = vpop.f32.mrf.mxu0  ;;  %v1436_v51 = vshll.u32 %v1144_v32, 16  ;;  %1070 = vst [vmem:[#allocation2 + $0xb0] sm:$0x1] %v1069_v8  ;;  %v613_v7 = vmax.f32 %v576_v57, 0.0  ;;  %v1424_v15 = vrot.slane %v1423_v40, 4  ;;  %v7191_v29 = vrot.slane %v2776_v62, 4 }
 0x15a   : > { %v1685_v6 = vpop.f32.mrf.mxu1  ;;  %v1428_v16 = vrot.slane %v1426_v44, 5  ;;  %v849_v10 = vrot.slane %v847_v43, 7  ;;  %v566_v9 = vadd.f32 %v6995_v60, %v565_v4  ;;  %v1921_v41 = vpop.f32.mrf.mxu2  ;;  %v1432_v18 = vrot.slane %v1430_v63, 4  ;;  %v7206_v3 = vld [vmem:[#allocation2 + $0x1c] sm:$0xf] }
 0x15b   : > { %v7188_v30 = vadd.f32 %v1918_v31, %v1685_v6  ;;  %v845_v20 = vrot.slane %v7147_v14, 4  ;;  %v645_v46 = vpack.c.bf16 %v613_v7, %v613_v7  ;;  %v614_v48 = vmax.f32 %v578_v27, 0.0  ;;  %v1071_v63 = vld [vmem:[#allocation2 + $0xb4] sm:$0xf] }
 0x15c   : > { %v852_v36 = vor.u32 %v850_v1, %v849_v10  ;;  %v854_v38 = vrot.slane %v849_v10, 4  ;;  %v609_v39 = vmax.f32 %v566_v9, 0.0  ;;  %2633 = vmatmul.bf16.gmra.mxu0 %v6325_v47  ;;  %v1429_v31 = vsel %vm6779_vm8, %v1424_v15, %v1428_v16  ;;  %v1057_v10 = vld [vmem:[#allocation2 + $0x9c] sm:$0xf] }
 0x15d   : > { %v1433_v33 = vor.u32 %v1432_v18, %v1428_v16  ;;  %v1438_v35 = vrot.slane %v1436_v51, 5  ;;  %v890_v56 = vshrl.u32 %v645_v46, 16  ;;  %v893_v58 = vshll.u32 %v645_v46, 16  ;;  %v2714_v51 = vld [vmem:[#allocation2 + $0x18] sm:$0xf] }
 0x15e   : > { %v853_v24 = vsel %vm6817_vm12, %v845_v20, %v852_v36  ;;  %v1055_v26 = vsel %vm6708_vm3, %v854_v38, %v1054_v12  ;;  %v641_v22 = vpack.c.bf16 %v609_v39, %v609_v39  ;;  %v646_v59 = vpack.c.bf16 %v614_v48, %v614_v48  ;;  %v1075_v36 = vld [vmem:[#allocation2 + $0xbc] sm:$0x1] }
 0x15f   : > { %1053 = vst [vmem:[#allocation2 + $0x94] sm:$0xf] %v853_v24  ;;  %v1434_v14 = vrot.slane %v1433_v33, 4  ;;  %v1574_v25 = vunpack.c.l.b16 %v1429_v31  ;;  %v1109_v21 = vld [vmem:[#allocation2 + $0x90] sm:$0xf]  ;;  %v2772_v32 = vsel %vm6779_vm8, %v7163_v49, %v7106_v42  ;;  %v892_v43 = vrot.slane %v890_v56, 7 }
 0x160   : > { %1056 = vst [vmem:[#allocation2 + $0x98] sm:$0x1] %v1055_v26  ;;  %v856_v61 = vshrl.u32 %v641_v22, 16  ;;  %v859_v57 = vshll.u32 %v641_v22, 16  ;;  %v898_v1 = vshrl.u32 %v646_v59, 16  ;;  %v901_v45 = vshll.u32 %v646_v59, 16 }
 0x161   : > { %v567_v40 = vpop.f32.mrf.mxu0  ;;  %v1439_v62 = vsel %vm6779_vm8, %v1434_v14, %v1438_v35  ;;  %v895_v47 = vor.u32 %v893_v58, %v892_v43  ;;  %v896_v7 = vrot.slane %v892_v43, 4  ;;  %v1441_v15 = vshrl.u32 %v1109_v21, 16  ;;  %v7219_v22 = vld [vmem:[#allocation2 + $0x20] sm:$0x1] }
 0x162   : > { %v1688_v44 = vpop.f32.mrf.mxu1  ;;  %v7208_v4 = vrot.slane %v856_v61, 7  ;;  %v568_v6 = vadd.f32 %v6995_v60, %v567_v40  ;;  %v1575_v16 = vunpack.c.l.b16 %v1439_v62  ;;  %v1923_v9 = vpop.f32.mrf.mxu2  ;;  %v900_v12 = vrot.slane %v898_v1, 7 }
 0x163   : > { %v7211_v8 = vadd.f32 %v1921_v41, %v1688_v44  ;;  %v3465_v38 = vrot.slane %v7206_v3, 5  ;;  %v1072_v60 = vsel %vm6805_vm10, %v895_v47, %v1071_v63  ;;  %v2784_v31 = vshrl.u32 %v2714_v51, 16  ;;  %v6326_v63 = vld [vmem:[#allocation2 + $0x6c] sm:$0xff]  ;;  %v1061_v47 = vld [vmem:[#allocation2 + $0xa4] sm:$0x1] }
 0x164   : > { %v861_v18 = vor.u32 %v859_v57, %v7208_v4  ;;  %v610_v27 = vmax.f32 %v568_v6, 0.0  ;;  %v1595_v20 = vpack.c.b16 %v1575_v16, %v1574_v25  ;;  %v903_v41 = vor.u32 %v901_v45, %v900_v12  ;;  %1073 = vst [vmem:[#allocation2 + $0xb4] sm:$0xf] %v1072_v60 }
 0x165   : > { %v905_v39 = vrot.slane %v900_v12, 4  ;;  %v1443_v24 = vrot.slane %v1441_v15, 4  ;;  %v1444_v26 = vshll.u32 %v1109_v21, 16  ;;  %v2782_v25 = vsel %vm6779_vm8, %v7191_v29, %v7167_v50 }
 0x166   : > { %v1058_v33 = vsel %vm6805_vm10, %v861_v18, %v1057_v10  ;;  %v642_v46 = vpack.c.bf16 %v610_v27, %v610_v27  ;;  %1727 = vmatmul.bf16.gmra.mxu1 %v1595_v20  ;;  %v1110_v48 = vld [vmem:[#allocation2 + $0x94] sm:$0xf]  ;;  %v904_v35 = vsel %vm6817_vm12, %v896_v7, %v903_v41  ;;  %v3467_v21 = vrot.slane %v3465_v38, 4 }
 0x167   : > { %1059 = vst [vmem:[#allocation2 + $0x9c] sm:$0xf] %v1058_v33  ;;  %v1076_v14 = vsel %vm6708_vm3, %v905_v39, %v1075_v36  ;;  %v1145_v56 = vld [vmem:[#allocation2 + $0x98] sm:$0x1]  ;;  %v1450_v58 = vshll.u32 %v1110_v48, 16  ;;  %v1454_v59 = vshrl.u32 %v1110_v48, 16  ;;  %3704 = vmatmul.bf16.vlgmr.msrb.gmra.mxu2 %v7183_v2  ;;  %v3160_v48 = vunpack.c.l.b16 %v2782_v25 }
 0x168   : > { %v864_v61 = vshrl.u32 %v642_v46, 16  ;;  %1074 = vst [vmem:[#allocation2 + $0xb8] sm:$0xf] %v904_v35  ;;  %v1446_v57 = vrot.slane %v1444_v26, 5  ;;  %v1460_v1 = vshll.u32 %v1145_v56, 16  ;;  %v2787_v45 = vshll.u32 %v2714_v51, 16 }
 0x169   : > { %v7232_v44 = vpop.f32.mrf.mxu0  ;;  %1077 = vst [vmem:[#allocation2 + $0xbc] sm:$0x1] %v1076_v14  ;;  %v1452_v62 = vrot.slane %v1450_v58, 5  ;;  %v1456_v43 = vrot.slane %v1454_v59, 4  ;;  %v867_v2 = vshll.u32 %v642_v46, 16  ;;  %v3468_v29 = vrot.slane %v7219_v22, 5 }
 0x16a   : > { %v1690_v40 = vpop.f32.mrf.mxu1  ;;  %9051 = vst [vmem:[#allocation8_spill] sm:$0xff] %v7232_v44  ;;  %v866_v6 = vrot.slane %v864_v61, 7  ;;  %v1447_v10 = vor.u32 %v1446_v57, %v1443_v24  ;;  %v1926_v7 = vpop.f32.mrf.mxu2  ;;  %v2793_v12 = vshll.u32 %v7206_v3, 16  ;;  %v2797_v15 = vshrl.u32 %v7206_v3, 16 }
 0x16b   : > { %v7234_v16 = vadd.f32 %v1923_v9, %v1690_v40  ;;  %v1457_v50 = vor.u32 %v1456_v43, %v1452_v62  ;;  %v862_v18 = vrot.slane %v7208_v4, 4  ;;  %v1462_v9 = vrot.slane %v1460_v1, 5 }
 0x16c   : > { %v869_v27 = vor.u32 %v867_v2, %v866_v6  ;;  %v871_v20 = vrot.slane %v866_v6, 4  ;;  %2638 = vmatmul.bf16.gmra.mxu0 %v6326_v63  ;;  %v1448_v51 = vrot.slane %v1447_v10, 4  ;;  %v2786_v60 = vrot.slane %v2784_v31, 4 }
 0x16d   : > { %v1458_v36 = vrot.slane %v1457_v50, 4  ;;  %v2789_v41 = vrot.slane %v2787_v45, 5  ;;  %v3469_v26 = vsel %vm7043_vm15, %v3467_v21, %v3468_v29  ;;  %v7250_v58 = vrot.slane %v2793_v12, 5 }
 0x16e   : > { %v870_v39 = vsel %vm6817_vm12, %v862_v18, %v869_v27  ;;  %v1062_v33 = vsel %vm6708_vm3, %v871_v20, %v1061_v47  ;;  %v1453_v46 = vsel %vm6779_vm8, %v1448_v51, %v1452_v62  ;;  %v1111_v24 = vld [vmem:[#allocation2 + $0x9c] sm:$0xf]  ;;  %v2799_v59 = vrot.slane %v2797_v15, 4  ;;  %v7265_v62 = vld [vmem:[#allocation2 + $0x28] sm:$0xf] }
 0x16f   : > { %1060 = vst [vmem:[#allocation2 + $0xa0] sm:$0xf] %v870_v39  ;;  %v1463_v4 = vsel %vm6779_vm8, %v1458_v36, %v1462_v9  ;;  %v1465_v31 = vshrl.u32 %v1111_v24, 16  ;;  %v1468_v35 = vshll.u32 %v1111_v24, 16  ;;  %v1576_v14 = vunpack.c.l.b16 %v1453_v46  ;;  %v3394_v18 = vld [vmem:[#allocation2 + $0x24] sm:$0xe] }
 0x170   : > { %1063 = vst [vmem:[#allocation2 + $0xa4] sm:$0x1] %v1062_v33  ;;  %v1577_v56 = vunpack.c.l.b16 %v1463_v4  ;;  %v3159_v25 = vunpack.c.l.b16 %v2772_v32  ;;  %v3466_v21 = vsel %vm7043_vm15, %v6016_v52, %v3465_v38  ;;  %v2790_v40 = vor.u32 %v2789_v41, %v2786_v60  ;;  %v2717_v38 = vld [vmem:[#allocation2 + $0x24] sm:$0xf]  ;;  %v1113_v27 = vld [vmem:[#allocation2 + $0xa8] sm:$0xf] }
 0x171   : > { %v7252_v57 = vpop.f32.mrf.mxu0  ;;  %v3587_v45 = vunpack.c.l.b16 %v3469_v26  ;;  %v2803_v6 = vshll.u32 %v7219_v22, 16  ;;  %v1467_v63 = vrot.slane %v1465_v31, 4  ;;  %v1470_v42 = vrot.slane %v1468_v35, 5  ;;  %v1114_v36 = vld [vmem:[#allocation2 + $0xac] sm:$0xf]  ;;  %v6327_v31 = vld [vmem:[#allocation2 + $0x78] sm:$0xff] }
 0x172   : > { %v1693_v61 = vpop.f32.mrf.mxu1  ;;  %9052 = vst [vmem:[#allocation9_spill] sm:$0xff] %v7252_v57  ;;  %v1596_v1 = vpack.c.b16 %v1577_v56, %v1576_v14  ;;  %v1928_v2 = vpop.f32.mrf.mxu2  ;;  %v3191_v49 = vpack.c.b16 %v3160_v48, %v3159_v25  ;;  %v3586_v32 = vunpack.c.l.b16 %v3466_v21  ;;  %v2800_v5 = vor.u32 %v2799_v59, %v7250_v58  ;;  %v2719_v24 = vld [vmem:[#allocation2 + $0x2c] sm:$0x1] }
 0x173   : > { %v7267_v43 = vadd.f32 %v1926_v7, %v1693_v61  ;;  %v3472_v3 = vrot.slane %v7265_v62, 5  ;;  %v2791_v52 = vrot.slane %v2790_v40, 4  ;;  %v2805_v7 = vrot.slane %v2803_v6, 5 }
 0x174   : > { %1732 = vmatmul.bf16.vlgmr.msrb.gmra.mxu3 %v1596_v1  ;;  %v3617_v10 = vpack.c.b16 %v3587_v45, %v3586_v32  ;;  %v1471_v29 = vor.u32 %v1470_v42, %v1467_v63  ;;  %v2801_v20 = vrot.slane %v2800_v5, 4  ;;  %v2808_v9 = vshrl.u32 %v2717_v38, 16 }
 0x175   : > { %9053 = vst [vmem:[#allocation10_spill] sm:$0xff] %v7267_v43  ;;  %v2796_v15 = vsel %vm6779_vm8, %v2791_v52, %v7250_v58  ;;  %v3474_v51 = vrot.slane %v3472_v3, 4  ;;  %v2817_v60 = vshll.u32 %v7265_v62, 16  ;;  %v2821_v4 = vshrl.u32 %v7265_v62, 16 }
 0x176   : > { %3279 = vmatmul.bf16.vlgmr.msrb.gmra.mxu1 %v3191_v49  ;;  %v1112_v47 = vld [vmem:[#allocation2 + $0xa0] sm:$0xf]  ;;  %v1489_v35 = vshrl.u32 %v1113_v27, 16  ;;  %v1492_v14 = vshll.u32 %v1113_v27, 16  ;;  %v2811_v56 = vshll.u32 %v2717_v38, 16  ;;  %v1472_v59 = vrot.slane %v1471_v29, 4 }
 0x177   : > { %v1146_v50 = vld [vmem:[#allocation2 + $0xa4] sm:$0x1]  ;;  %v1474_v12 = vshll.u32 %v1112_v47, 16  ;;  %v1478_v22 = vshrl.u32 %v1112_v47, 16  ;;  %3709 = vmatmul.bf16.gmra.mxu2 %v3617_v10  ;;  %v1498_v25 = vshll.u32 %v1114_v36, 16  ;;  %v1502_v21 = vshrl.u32 %v1114_v36, 16 }
 0x178   : > { %v1484_v48 = vshll.u32 %v1146_v50, 16  ;;  %v2806_v40 = vsel %vm6779_vm8, %v2801_v20, %v2805_v7  ;;  %v6017_v1 = vrot.slane %v3394_v18, 9  ;;  %v3475_v45 = vrot.slane %v2719_v24, 5 }
 0x179   : > { %v7276_v39 = vpop.f32.mrf.mxu0  ;;  %v1476_v33 = vrot.slane %v1474_v12, 5  ;;  %v1480_v46 = vrot.slane %v1478_v22, 4  ;;  %v7283_v6 = vrot.slane %v2817_v60, 5  ;;  %v2823_v42 = vrot.slane %v2821_v4, 4  ;;  %v1147_v22 = vld [vmem:[#allocation2 + $0xb0] sm:$0x1] }
 0x17a   : > { %v1695_v41 = vpop.f32.mrf.mxu1  ;;  %9054 = vst [vmem:[#allocation11_spill] sm:$0xff] %v7276_v39  ;;  %v1931_v58 = vpop.f32.mrf.mxu2  ;;  %v1486_v63 = vrot.slane %v1484_v48, 5  ;;  %v3476_v49 = vsel %vm7043_vm15, %v3474_v51, %v3475_v45  ;;  %v1491_v32 = vrot.slane %v1489_v35, 4  ;;  %v2810_v5 = vrot.slane %v2808_v9, 4  ;;  %v7298_v9 = vld [vmem:[#allocation2 + $0x34] sm:$0xf] }
 0x17b   : > { %v7279_v26 = vadd.f32 %v1928_v2, %v1695_v41  ;;  %v1481_v61 = vor.u32 %v1480_v46, %v1476_v33  ;;  %v1477_v62 = vsel %vm6779_vm8, %v1472_v59, %v1476_v33  ;;  %v2813_v52 = vrot.slane %v2811_v56, 5 }
 0x17c   : > { %2643 = vmatmul.bf16.gmra.mxu0 %v6327_v31  ;;  %v1494_v10 = vrot.slane %v1492_v14, 5  ;;  %v7291_v47 = vrot.slane %v1498_v25, 5  ;;  %v1504_v7 = vrot.slane %v1502_v21, 4  ;;  %v1578_v50 = vunpack.c.l.b16 %v1477_v62  ;;  %v3395_v21 = vld [vmem:[#allocation2 + $0x30] sm:$0xe] }
 0x17d   : > { %9055 = vst [vmem:[#allocation12_spill] sm:$0xff] %v7279_v26  ;;  %v1482_v2 = vrot.slane %v1481_v61, 4  ;;  %v3162_v12 = vunpack.c.l.b16 %v2806_v40  ;;  %v3161_v20 = vunpack.c.l.b16 %v2796_v15  ;;  %v3473_v51 = vsel %vm7043_vm15, %v6017_v1, %v3472_v3 }
 0x17e   : > { %v2824_v36 = vor.u32 %v2823_v42, %v7283_v6  ;;  %v3589_v33 = vunpack.c.l.b16 %v3476_v49  ;;  %v2814_v46 = vor.u32 %v2813_v52, %v2810_v5  ;;  %v1495_v4 = vor.u32 %v1494_v10, %v1491_v32 }
 0x17f   : > { %v1487_v38 = vsel %vm6779_vm8, %v1482_v2, %v1486_v63  ;;  %v1505_v31 = vor.u32 %v1504_v7, %v7291_v47  ;;  %v1508_v35 = vshll.u32 %v1147_v22, 16  ;;  %v2827_v14 = vshll.u32 %v2719_v24, 16  ;;  %v1115_v2 = vld [vmem:[#allocation2 + $0xb4] sm:$0xf]  ;;  %v1116_v24 = vld [vmem:[#allocation2 + $0xb8] sm:$0xf] }
 0x180   : > { %v1579_v29 = vunpack.c.l.b16 %v1487_v38  ;;  %v3192_v15 = vpack.c.b16 %v3162_v12, %v3161_v20  ;;  %v3588_v56 = vunpack.c.l.b16 %v3473_v51  ;;  %v3479_v3 = vrot.slane %v7298_v9, 5  ;;  %v2720_v38 = vld [vmem:[#allocation2 + $0x30] sm:$0xf]  ;;  %v6328_v7 = vld [vmem:[#allocation2 + $0x84] sm:$0xff] }
 0x181   : > { %v7293_v27 = vpop.f32.mrf.mxu0  ;;  %v2825_v59 = vrot.slane %v2824_v36, 4  ;;  %v2815_v25 = vrot.slane %v2814_v46, 4  ;;  %v1496_v40 = vrot.slane %v1495_v4, 4  ;;  %v1506_v1 = vrot.slane %v1505_v31, 4 }
 0x182   : > { %v1698_v18 = vpop.f32.mrf.mxu1  ;;  %9056 = vst [vmem:[#allocation13_spill] sm:$0xff] %v7293_v27  ;;  %v1597_v41 = vpack.c.b16 %v1579_v29, %v1578_v50  ;;  %v1933_v48 = vpop.f32.mrf.mxu2  ;;  %v3618_v61 = vpack.c.b16 %v3589_v33, %v3588_v56  ;;  %v1510_v45 = vrot.slane %v1508_v35, 5  ;;  %v2829_v62 = vrot.slane %v2827_v14, 5  ;;  %v1148_v14 = vld [vmem:[#allocation2 + $0xbc] sm:$0x1] }
 0x183   : > { %v7300_v60 = vadd.f32 %v1931_v58, %v1698_v18  ;;  %v7304_v58 = vld [vmem:[#allocation2 + $0x38] sm:$0x1]  ;;  %v3481_v63 = vrot.slane %v3479_v3, 4  ;;  %v2820_v32 = vsel %vm6779_vm8, %v2815_v25, %v7283_v6  ;;  %v6018_v52 = vrot.slane %v3395_v21, 9 }
 0x184   : > { %1737 = vmatmul.bf16.gmra.mxu3 %v1597_v41  ;;  %v2830_v5 = vsel %vm6779_vm8, %v2825_v59, %v2829_v62  ;;  %v3482_v50 = vrot.slane %v7304_v58, 5  ;;  %v1513_v29 = vshrl.u32 %v1115_v2, 16  ;;  %v1516_v12 = vshll.u32 %v1115_v2, 16  ;;  %v7327_v59 = vld [vmem:[#allocation2 + $0x1c] sm:$0xf] }
 0x185   : > { %9057 = vst [vmem:[#allocation14_spill] sm:$0xff] %v7300_v60  ;;  %v1501_v18 = vsel %vm6779_vm8, %v1496_v40, %v7291_v47  ;;  %v1511_v6 = vsel %vm6779_vm8, %v1506_v1, %v1510_v45  ;;  %v1522_v20 = vshll.u32 %v1116_v24, 16  ;;  %v1526_v51 = vshrl.u32 %v1116_v24, 16  ;;  %v4812_v1 = vld [vmem:[#allocation2 + $0x18] sm:$0xe] }
 0x186   : > { %3284 = vmatmul.bf16.gmra.mxu1 %v3192_v15  ;;  %v3164_v36 = vunpack.c.l.b16 %v2830_v5  ;;  %v3483_v41 = vsel %vm7043_vm15, %v3481_v63, %v3482_v50  ;;  %v2832_v33 = vshrl.u32 %v2720_v38, 16  ;;  %v3163_v46 = vunpack.c.l.b16 %v2820_v32  ;;  %v7333_v2 = vld [vmem:[#allocation2 + $0x20] sm:$0x1]  ;;  %v7339_v5 = vld [vmem:[#allocation2 + $0x28] sm:$0xf] }
 0x187   : > { %3714 = vmatmul.bf16.gmra.mxu2 %v3618_v61  ;;  %v2841_v4 = vshll.u32 %v7298_v9, 16  ;;  %v2845_v31 = vshrl.u32 %v7298_v9, 16  ;;  %v1580_v47 = vunpack.c.l.b16 %v1501_v18  ;;  %v1581_v35 = vunpack.c.l.b16 %v1511_v6  ;;  %v4813_v18 = vld [vmem:[#allocation2 + $0x24] sm:$0xe] }
 0x188   : > { %v1515_v15 = vrot.slane %v1513_v29, 4  ;;  %v1518_v56 = vrot.slane %v1516_v12, 5  ;;  %v3591_v61 = vunpack.c.l.b16 %v3483_v41  ;;  %v7329_v25 = vrot.slane %v1522_v20, 5  ;;  %v7344_v29 = vld [vmem:[#allocation2 + $0x40] sm:$0xf] }
 0x189   : > { %v7306_v49 = vpop.f32.mrf.mxu0  ;;  %v1528_v21 = vrot.slane %v1526_v51, 4  ;;  %v2835_v40 = vshll.u32 %v2720_v38, 16  ;;  %v3193_v45 = vpack.c.b16 %v3164_v36, %v3163_v46  ;;  %v1532_v24 = vshll.u32 %v1148_v14, 16 }
 0x18a   : > { %v1700_v42 = vpop.f32.mrf.mxu1  ;;  %9058 = vst [vmem:[#allocation15_spill] sm:$0xff] %v7306_v49  ;;  %v1936_v22 = vpop.f32.mrf.mxu2  ;;  %v2847_v32 = vrot.slane %v2845_v31, 4  ;;  %v1598_v38 = vpack.c.b16 %v1581_v35, %v1580_v47  ;;  %v1519_v50 = vor.u32 %v1518_v56, %v1515_v15  ;;  %v6191_v12 = vrot.slane %v4812_v1, 9  ;;  %v6290_v49 = vld [vmem:[#allocation2 + $0x90] sm:$0xff] }
 0x18b   : > { %v7313_v10 = vadd.f32 %v1933_v48, %v1700_v42  ;;  %v3480_v48 = vsel %vm7043_vm15, %v6018_v52, %v3479_v3  ;;  %v7331_v3 = vrot.slane %v2832_v33, 4  ;;  %v7337_v42 = vrot.slane %v2841_v4, 5  ;;  %v7348_v33 = vld [vmem:[#allocation2 + $0x2c] sm:$0x1] }
 0x18c   : > { %2648 = vmatmul.bf16.gmra.mxu0 %v6328_v7  ;;  %v3590_v62 = vunpack.c.l.b16 %v3480_v48  ;;  %v4878_v52 = vrot.slane %v7327_v59, 5  ;;  %v1529_v51 = vor.u32 %v1528_v21, %v7329_v25  ;;  %v2837_v36 = vrot.slane %v2835_v40, 5 }
 0x18d   : > { %9059 = vst [vmem:[#allocation16_spill] sm:$0xff] %v7313_v10  ;;  %v2851_v41 = vshll.u32 %v7304_v58, 16  ;;  %v4881_v4 = vrot.slane %v7333_v2, 5  ;;  %v4885_v31 = vrot.slane %v7339_v5, 5  ;;  %v1534_v47 = vrot.slane %v1532_v24, 5 }
 0x18e   : > { %v3619_v20 = vpack.c.b16 %v3591_v61, %v3590_v62  ;;  %v4879_v46 = vsel %vm7043_vm15, %v6191_v12, %v4878_v52  ;;  %v4880_v48 = vrot.slane %v4878_v52, 4  ;;  %v2848_v35 = vor.u32 %v2847_v32, %v7337_v42 }
 0x18f   : > { %v3486_v58 = vrot.slane %v7344_v29, 5  ;;  %v6192_v14 = vrot.slane %v4813_v18, 9  ;;  %v1520_v15 = vrot.slane %v1519_v50, 4  ;;  %v4887_v61 = vrot.slane %v4885_v31, 4  ;;  %v2723_v50 = vld [vmem:[#allocation2 + $0x3c] sm:$0xf] }
 0x190   : > { %v4882_v56 = vsel %vm7043_vm15, %v4880_v48, %v4881_v4  ;;  %v4888_v21 = vrot.slane %v7348_v33, 5  ;;  %v1530_v40 = vrot.slane %v1529_v51, 4  ;;  %v5004_v1 = vunpack.c.l.b16 %v4879_v46  ;;  %v7373_v48 = vld [vmem:[#allocation2 + $0x44] sm:$0x1] }
 0x191   : > { %v7335_v63 = vpop.f32.mrf.mxu0  ;;  %v5005_v62 = vunpack.c.l.b16 %v4882_v56  ;;  %v2838_v24 = vor.u32 %v2837_v36, %v7331_v3  ;;  %v2853_v46 = vrot.slane %v2851_v41, 5  ;;  %v1525_v36 = vsel %vm6779_vm8, %v1520_v15, %v7329_v25  ;;  %v6316_v41 = vld [vmem:[%s9028_s3 + $0xb0] sm:$0xff] }
 0x192   : > { %v1703_v9 = vpop.f32.mrf.mxu1  ;;  %9060 = vst [vmem:[#allocation17_spill] sm:$0xff] %v7335_v63  ;;  %v1938_v6 = vpop.f32.mrf.mxu2  ;;  %v2865_v15 = vshll.u32 %v7344_v29, 16 }
 0x193   : > { %v7342_v7 = vadd.f32 %v1936_v22, %v1703_v9  ;;  %v6317_v22 = vld [vmem:[%s9028_s3 + $0xb8] sm:$0xff]  ;;  %v4886_v9 = vsel %vm7043_vm15, %v6192_v14, %v4885_v31  ;;  %v7369_v12 = vpack.c.b16 %v5005_v62, %v5004_v1  ;;  %v1535_v31 = vsel %vm6779_vm8, %v1530_v40, %v1534_v47 }
 0x194   : > { %1742 = vmatmul.bf16.gmra.mxu3 %v1598_v38  ;;  %v2849_v38 = vrot.slane %v2848_v35, 4  ;;  %v5006_v4 = vunpack.c.l.b16 %v4886_v9  ;;  %v3396_v35 = vld [vmem:[#allocation2 + $0x3c] sm:$0xe]  ;;  %v3488_v14 = vrot.slane %v3486_v58, 4  ;;  %v2839_v56 = vrot.slane %v2838_v24, 4 }
 0x195   : > { %9061 = vst [vmem:[#allocation18_spill] sm:$0xff] %v7342_v7  ;;  %2277 = vmatpush.bf16.msrb.mxu3 %v6317_v22  ;;  %v6329_v22 = vld [vmem:[#allocation2 + $0x90] sm:$0xff]  ;;  %v3489_v47 = vrot.slane %v7373_v48, 5  ;;  %v2869_v40 = vshrl.u32 %v7344_v29, 16  ;;  %v1582_v62 = vunpack.c.l.b16 %v1525_v36  ;;  %v1583_v9 = vunpack.c.l.b16 %v1535_v31  ;;  %v7764_v7 = vld [vmem:[#allocation2 + $0x68] sm:$0x1] }
 0x196   : > { %3289 = vmatmul.bf16.gmra.mxu1 %v3193_v45  ;;  %v4889_v45 = vsel %vm7043_vm15, %v4887_v61, %v4888_v21  ;;  %v2856_v61 = vshrl.u32 %v2723_v50, 16  ;;  %v2859_v21 = vshll.u32 %v2723_v50, 16  ;;  %v2854_v25 = vsel %vm6779_vm8, %v2849_v38, %v2853_v46 }
 0x197   : > { %3719 = vmatmul.bf16.gmra.mxu2 %v3619_v20  ;;  %v5007_v18 = vunpack.c.l.b16 %v4889_v45  ;;  %v334_v20 = vld [vmem:[#allocation2 + $0xc0] sm:$0x1]  ;;  %v2844_v24 = vsel %vm6779_vm8, %v2839_v56, %v7337_v42  ;;  %v6019_v45 = vrot.slane %v3396_v35, 9  ;;  %v3166_v50 = vunpack.c.l.b16 %v2854_v25  ;;  %v384_v56 = vld [vmem:[#allocation2 + $0xc8] sm:$0x1] }
 0x198   : > { %v2861_v38 = vrot.slane %v2859_v21, 5  ;;  %v2871_v36 = vrot.slane %v2869_v40, 4  ;;  %v6470_v42 = vld [vmem:[%s9027_s2] ss:$0 sm:$0xff]  ;;  %v7408_v21 = vld [vmem:[#allocation2 + $0x4c] sm:$0xf] }
 0x199   : > { %v7367_v52 = vpop.f32.mrf.mxu0  ;;  %v7385_v1 = vpack.c.b16 %v5007_v18, %v5006_v4  ;;  %2278 = vmatpush.bf16.msrb.mxu3 %v6316_v41  ;;  %v2858_v18 = vrot.slane %v2856_v61, 4  ;;  %v3487_v29 = vsel %vm7043_vm15, %v6019_v45, %v3486_v58  ;;  %v7401_v4 = vrot.slane %v2865_v15, 5 }
 0x19a   : > { %v1705_v32 = vpop.f32.mrf.mxu1  ;;  %9062 = vst [vmem:[#allocation19_spill] sm:$0xff] %v7367_v52  ;;  %v1941_v3 = vpop.f32.mrf.mxu2  ;;  %v385_v58 = vsel %vm6752_vm5, 0, %v384_v56  ;;  %v3592_v40 = vunpack.c.l.b16 %v3487_v29  ;;  %v3493_v37 = vrot.slane %v7408_v21, 5  ;;  %v7421_v29 = vld [vmem:[#allocation2 + $0x50] sm:$0x1] }
 0x19b   : > { %v7371_v51 = vadd.f32 %v1938_v6, %v1705_v32  ;;  %v335_v6 = vsel %vm6708_vm3, 0, %v334_v20  ;;  %v3490_v32 = vsel %vm7043_vm15, %v3488_v14, %v3489_v47  ;;  %v1599_v14 = vpack.c.b16 %v1583_v9, %v1582_v62  ;;  %v7412_v47 = vld [vmem:[#allocation2 + $0x34] sm:$0xf]  ;;  %386 = vst [vmem:[#allocation2 + $0xc8] sm:$0x1] %v385_v58 }
 0x19c   : > { %2653 = vmatmul.bf16.gmra.mxu0 %v6329_v22  ;;  %336 = vst [vmem:[#allocation2 + $0xc0] sm:$0x1] %v335_v6  ;;  %v580_v22 = vpop.f32.mrf.mxu3  ;;  %v3165_v6 = vunpack.c.l.b16 %v2844_v24  ;;  %v3593_v41 = vunpack.c.l.b16 %v3490_v32  ;;  %v2862_v45 = vor.u32 %v2861_v38, %v2858_v18  ;;  %v2872_v62 = vor.u32 %v2871_v36, %v7401_v4  ;;  %v4814_v18 = vld [vmem:[#allocation2 + $0x30] sm:$0xe] }
 0x19d   : > { %9063 = vst [vmem:[#allocation20_spill] sm:$0xff] %v7371_v51  ;;  %v581_v31 = vadd.f32 %v6470_v42, %v580_v22  ;;  %v2875_v9 = vshll.u32 %v7373_v48, 16  ;;  %v4892_v22 = vrot.slane %v7412_v47, 5 }
 0x19e   : > { %v3194_v15 = vpack.c.b16 %v3166_v50, %v3165_v6  ;;  %v3620_v32 = vpack.c.b16 %v3593_v41, %v3592_v40  ;;  %v2863_v38 = vrot.slane %v2862_v45, 4  ;;  %v2873_v6 = vrot.slane %v2872_v62, 4  ;;  %v6330_v40 = vld [vmem:[#allocation2 + $0x9c] sm:$0xff] }
 0x19f   : > { %v615_v25 = vmax.f32 %v581_v31, 0.0  ;;  %v3397_v31 = vld [vmem:[#allocation2 + $0x48] sm:$0xe]  ;;  %v2877_v48 = vrot.slane %v2875_v9, 5  ;;  %v6193_v45 = vrot.slane %v4814_v18, 9  ;;  %v6389_v18 = vld [vmem:[%s9028_s3 + $0x1f8] sm:$0xff] }
 0x1a0   : > { %v2868_v62 = vsel %vm6779_vm8, %v2863_v38, %v7401_v4  ;;  %v6020_v9 = vrot.slane %v3397_v31, 9  ;;  %4691 = vmatpush.bf16.msra.mxu0 %v6389_v18 }
 0x1a1   : > { %v7397_v20 = vpop.f32.mrf.mxu0  ;;  %v647_v24 = vpack.c.bf16 %v615_v25, %v615_v25  ;;  %v7425_v25 = vld [vmem:[#allocation2 + $0x38] sm:$0x1]  ;;  %v4893_v4 = vsel %vm7043_vm15, %v6193_v45, %v4892_v22 }
 0x1a2   : > { %v1708_v46 = vpop.f32.mrf.mxu1  ;;  %9064 = vst [vmem:[#allocation21_spill] sm:$0xff] %v7397_v20  ;;  %v1943_v61 = vpop.f32.mrf.mxu2  ;;  %v4895_v38 = vrot.slane %v7425_v25, 5  ;;  %v3494_v52 = vsel %vm7043_vm15, %v6020_v9, %v3493_v37  ;;  %v5008_v34 = vunpack.c.l.b16 %v4893_v4  ;;  %v6388_v4 = vld [vmem:[%s9028_s3 + $0x1f0] sm:$0xff] }
 0x1a3   : > { %v7406_v35 = vadd.f32 %v1941_v3, %v1708_v46  ;;  %v6315_v3 = vld [vmem:[%s9028_s3 + $0xa8] sm:$0xff]  ;;  %v907_v50 = vshrl.u32 %v647_v24, 16  ;;  %v910_v46 = vshll.u32 %v647_v24, 16  ;;  %v1078_v24 = vld [vmem:[#allocation2 + $0xc0] sm:$0xf] }
 0x1a4   : > { %1747 = vmatmul.bf16.gmra.mxu3 %v1599_v14  ;;  %v582_v14 = vpop.f32.mrf.mxu3  ;;  %4692 = vmatpush.bf16.msra.mxu0 %v6388_v4 }
 0x1a5   : > { %9065 = vst [vmem:[#allocation22_spill] sm:$0xff] %v7406_v35  ;;  %2279 = vmatpush.bf16.msrb.mxu3 %v6315_v3  ;;  %v7423_v56 = vrot.slane %v907_v50, 7  ;;  %v583_v41 = vadd.f32 %v6470_v42, %v582_v14  ;;  %v3495_v3 = vrot.slane %v3493_v37, 4  ;;  %v3496_v14 = vrot.slane %v7421_v29, 5 }
 0x1a6   : > { %3294 = vmatmul.bf16.gmra.mxu1 %v3194_v15 }
 0x1a7   : > { %3724 = vmatmul.bf16.gmra.mxu2 %v3620_v32  ;;  %v4894_v32 = vrot.slane %v4892_v22, 4  ;;  %v912_v50 = vor.u32 %v910_v46, %v7423_v56  ;;  %v616_v42 = vmax.f32 %v583_v41, 0.0  ;;  %v2878_v46 = vsel %vm6779_vm8, %v2873_v6, %v2877_v48 }
 0x1a8   : > { %v3497_v63 = vsel %vm7043_vm15, %v3495_v3, %v3496_v14  ;;  %v3168_v45 = vunpack.c.l.b16 %v2878_v46  ;;  %v913_v37 = vrot.slane %v7423_v56, 4  ;;  %v7467_v46 = vld [vmem:[#allocation2 + $0x40] sm:$0xf]  ;;  %v7469_v56 = vld [vmem:[#allocation2 + $0x58] sm:$0xf] }
 0x1a9   : > { %v7429_v15 = vpop.f32.mrf.mxu0  ;;  %v1079_v31 = vsel %vm6805_vm10, %v912_v50, %v1078_v24  ;;  %v648_v41 = vpack.c.bf16 %v616_v42, %v616_v42  ;;  %v4896_v22 = vsel %vm7043_vm15, %v4894_v32, %v4895_v38  ;;  %v3167_v32 = vunpack.c.l.b16 %v2868_v62 }
 0x1aa   : > { %v1710_v36 = vpop.f32.mrf.mxu1  ;;  %9067 = vst [vmem:[#allocation24_spill] sm:$0xff] %v7429_v15  ;;  %v1946_v20 = vpop.f32.mrf.mxu2  ;;  %v2893_v15 = vshrl.u32 %v7408_v21, 16  ;;  %v5009_v24 = vunpack.c.l.b16 %v4896_v22  ;;  %v3595_v38 = vunpack.c.l.b16 %v3497_v63  ;;  %v6313_v63 = vld [vmem:[%s9028_s3 + $0x98] sm:$0xff]  ;;  %v3500_v53 = vrot.slane %v7469_v56, 5 }
 0x1ab   : > { %v7427_v58 = vadd.f32 %v1943_v61, %v1710_v36  ;;  %v6314_v61 = vld [vmem:[%s9028_s3 + $0xa0] sm:$0xff]  ;;  %v2889_v36 = vshll.u32 %v7408_v21, 16  ;;  %1080 = vst [vmem:[#allocation2 + $0xc0] sm:$0xf] %v1079_v31  ;;  %v915_v6 = vshrl.u32 %v648_v41, 16  ;;  %v918_v48 = vshll.u32 %v648_v41, 16 }
 0x1ac   : > { %2658 = vmatmul.bf16.gmra.mxu0 %v6330_v40  ;;  %v2726_v40 = vld [vmem:[#allocation2 + $0x48] sm:$0xf]  ;;  %2280 = vmatpush.bf16.msrb.mxu3 %v6314_v61  ;;  %v2895_v3 = vrot.slane %v2893_v15, 4  ;;  %v7460_v14 = vpack.c.b16 %v5009_v24, %v5008_v34  ;;  %v3594_v41 = vunpack.c.l.b16 %v3494_v52  ;;  %v4815_v34 = vld [vmem:[#allocation2 + $0x3c] sm:$0xe]  ;;  %v4899_v24 = vrot.slane %v7467_v46, 5 }
 0x1ad   : > { %9066 = vst [vmem:[#allocation23_spill] sm:$0xff] %v7427_v58  ;;  %v2880_v50 = vshrl.u32 %v2726_v40, 16  ;;  %v2883_v42 = vshll.u32 %v2726_v40, 16  ;;  %v7457_v21 = vrot.slane %v2889_v36, 5  ;;  %v917_v9 = vrot.slane %v915_v6, 7 }
 0x1ae   : > { %v1082_v31 = vld [vmem:[#allocation2 + $0xc8] sm:$0x1]  ;;  %v4901_v23 = vrot.slane %v4899_v24, 4 }
 0x1af   : > { %v920_v40 = vor.u32 %v918_v48, %v917_v9  ;;  %v922_v22 = vrot.slane %v917_v9, 4  ;;  %v2882_v6 = vrot.slane %v2880_v50, 4  ;;  %v2885_v62 = vrot.slane %v2883_v42, 5  ;;  %v6387_v50 = vld [vmem:[%s9028_s3 + $0x1e8] sm:$0xff] }
 0x1b0   : > { %2281 = vmatpush.bf16.msrb.mxu3 %v6313_v63  ;;  %v2899_v42 = vshll.u32 %v7421_v29, 16  ;;  %4693 = vmatpush.bf16.msra.mxu0 %v6387_v50  ;;  %v6386_v29 = vld [vmem:[%s9028_s3 + $0x1e0] sm:$0xff]  ;;  %v3502_v63 = vrot.slane %v3500_v53, 4 }
 0x1b1   : > { %v7471_v15 = vpop.f32.mrf.mxu0  ;;  %v921_v52 = vsel %vm6817_vm12, %v913_v37, %v920_v40  ;;  %v1083_v48 = vsel %vm6708_vm3, %v922_v22, %v1082_v31  ;;  %v6194_v37 = vrot.slane %v4815_v34, 9  ;;  %v2886_v9 = vor.u32 %v2885_v62, %v2882_v6  ;;  %v2729_v31 = vld [vmem:[#allocation2 + $0x54] sm:$0xf]  ;;  %v6331_v40 = vld [vmem:[#allocation2 + $0xa8] sm:$0xff]  ;;  %v7494_v22 = vld [vmem:[#allocation2 + $0x5c] sm:$0x1] }
 0x1b2   : > { %v1713_v61 = vpop.f32.mrf.mxu1  ;;  %v1948_v36 = vpop.f32.mrf.mxu2  ;;  %9069 = vst [vmem:[#allocation26_spill] sm:$0xff] %v7471_v15  ;;  %v2901_v62 = vrot.slane %v2899_v42, 5  ;;  %v2913_v34 = vshll.u32 %v7469_v56, 16  ;;  %v2904_v42 = vshrl.u32 %v2729_v31, 16 }
 0x1b3   : > { %v7462_v18 = vadd.f32 %v1946_v20, %v1713_v61  ;;  %v3195_v20 = vpack.c.b16 %v3168_v45, %v3167_v32  ;;  %v2896_v61 = vor.u32 %v2895_v3, %v7457_v21  ;;  %v3621_v45 = vpack.c.b16 %v3595_v38, %v3594_v41  ;;  %1081 = vst [vmem:[#allocation2 + $0xc4] sm:$0xf] %v921_v52 }
 0x1b4   : > { %1965 = vmatmul.bf16.vlgmr.msra.gmra.mxu3 %v6290_v49  ;;  %v7482_v49 = vld [vmem:[#allocation2 + $0x44] sm:$0x1]  ;;  %1084 = vst [vmem:[#allocation2 + $0xc8] sm:$0x1] %v1083_v48  ;;  %v4900_v4 = vsel %vm7043_vm15, %v6194_v37, %v4899_v24  ;;  %v2917_v52 = vshrl.u32 %v7469_v56, 16  ;;  %v2887_v24 = vrot.slane %v2886_v9, 4  ;;  %4694 = vmatpush.bf16.msra.mxu0 %v6386_v29 }
 0x1b5   : > { %9068 = vst [vmem:[#allocation25_spill] sm:$0xff] %v7462_v18  ;;  %v4902_v3 = vrot.slane %v7482_v49, 5  ;;  %v2897_v38 = vrot.slane %v2896_v61, 4  ;;  %v3398_v48 = vld [vmem:[#allocation2 + $0x54] sm:$0xe]  ;;  %v5010_v61 = vunpack.c.l.b16 %v4900_v4  ;;  %v3503_v37 = vrot.slane %v7494_v22, 5 }
 0x1b6   : > { %3299 = vmatmul.bf16.gmra.mxu1 %v3195_v20  ;;  %v6385_v56 = vld [vmem:[%s9028_s3 + $0x1d8] sm:$0xff]  ;;  %v2892_v9 = vsel %vm6779_vm8, %v2887_v24, %v7457_v21  ;;  %v6021_v4 = vrot.slane %v3398_v48, 9  ;;  %v2919_v29 = vrot.slane %v2917_v52, 4  ;;  %v2906_v15 = vrot.slane %v2904_v42, 4 }
 0x1b7   : > { %3729 = vmatmul.bf16.gmra.mxu2 %v3621_v45  ;;  %v4903_v20 = vsel %vm7043_vm15, %v4901_v23, %v4902_v3  ;;  %v2902_v50 = vsel %vm6779_vm8, %v2897_v38, %v2901_v62  ;;  %v2907_v3 = vshll.u32 %v2729_v31, 16  ;;  %v3504_v38 = vsel %vm7043_vm15, %v3502_v63, %v3503_v37  ;;  %v7523_v62 = vld [vmem:[#allocation2 + $0x64] sm:$0xf]  ;;  %v6291_v31 = vld [vmem:[#allocation2 + $0x9c] sm:$0xff]  ;;  %v4816_v63 = vld [vmem:[#allocation2 + $0x48] sm:$0xe] }
 0x1b8   : > { %v5011_v45 = vunpack.c.l.b16 %v4903_v20  ;;  %v3170_v20 = vunpack.c.l.b16 %v2902_v50  ;;  %4695 = vmatpush.bf16.msra.mxu0 %v6385_v56  ;;  %v3169_v24 = vunpack.c.l.b16 %v2892_v9  ;;  %v3597_v48 = vunpack.c.l.b16 %v3504_v38  ;;  %v7533_v37 = vld [vmem:[#allocation2 + $0x50] sm:$0x1]  ;;  %v6311_v56 = vld [vmem:[%s9028_s3 + $0x88] sm:$0xff] }
 0x1b9   : > { %v7512_v23 = vpop.f32.mrf.mxu0  ;;  %v3507_v50 = vrot.slane %v7523_v62, 5 }
 0x1ba   : > { %v1715_v32 = vpop.f32.mrf.mxu1  ;;  %v1951_v6 = vpop.f32.mrf.mxu2  ;;  %9071 = vst [vmem:[#allocation28_spill] sm:$0xff] %v7512_v23  ;;  %v3501_v23 = vsel %vm7043_vm15, %v6021_v4, %v3500_v53  ;;  %v3196_v53 = vpack.c.b16 %v3170_v20, %v3169_v24  ;;  %v6195_v4 = vrot.slane %v4816_v63, 9 }
 0x1bb   : > { %v7492_v41 = vadd.f32 %v1948_v36, %v1715_v32  ;;  %v6312_v36 = vld [vmem:[%s9028_s3 + $0x90] sm:$0xff]  ;;  %v7517_v32 = vpack.c.b16 %v5011_v45, %v5010_v61  ;;  %v2909_v61 = vrot.slane %v2907_v3, 5  ;;  %v7529_v45 = vld [vmem:[#allocation2 + $0x4c] sm:$0xf]  ;;  %v3596_v42 = vunpack.c.l.b16 %v3501_v23 }
 0x1bc   : > { %2663 = vmatmul.bf16.gmra.mxu0 %v6331_v40  ;;  %2282 = vmatpush.bf16.msrb.mxu3 %v6312_v36  ;;  %v7521_v40 = vrot.slane %v2913_v34, 5  ;;  %v4906_v9 = vrot.slane %v7529_v45, 5  ;;  %v2923_v3 = vshll.u32 %v7494_v22, 16  ;;  %v6383_v23 = vld [vmem:[%s9028_s3 + $0x1c8] sm:$0xff]  ;;  %v3509_v27 = vrot.slane %v3507_v50, 4 }
 0x1bd   : > { %9070 = vst [vmem:[#allocation27_spill] sm:$0xff] %v7492_v41  ;;  %v3622_v38 = vpack.c.b16 %v3597_v48, %v3596_v42  ;;  %v2732_v48 = vld [vmem:[#allocation2 + $0x60] sm:$0xf] }
 0x1be   : > { %v2920_v52 = vor.u32 %v2919_v29, %v7521_v40  ;;  %v2910_v29 = vor.u32 %v2909_v61, %v2906_v15  ;;  %v4908_v20 = vrot.slane %v4906_v9, 4  ;;  %v4907_v22 = vsel %vm7043_vm15, %v6195_v4, %v4906_v9  ;;  %v3399_v15 = vld [vmem:[#allocation2 + $0x60] sm:$0xe] }
 0x1bf   : > { %v2925_v42 = vrot.slane %v2923_v3, 5  ;;  %v5012_v54 = vunpack.c.l.b16 %v4907_v22  ;;  %v6022_v4 = vrot.slane %v3399_v15, 9  ;;  %v2937_v3 = vshll.u32 %v7523_v62, 16 }
 0x1c0   : > { %v2921_v24 = vrot.slane %v2920_v52, 4  ;;  %2283 = vmatpush.bf16.msrb.mxu3 %v6311_v56  ;;  %v6332_v52 = vld [vmem:[#allocation2 + $0xb4] sm:$0xff]  ;;  %v2911_v56 = vrot.slane %v2910_v29, 4  ;;  %v6310_v29 = vld [vmem:[%s9028_s3 + $0x80] sm:$0xff] }
 0x1c1   : > { %v7551_v63 = vpop.f32.mrf.mxu0  ;;  %v3508_v22 = vsel %vm7043_vm15, %v6022_v4, %v3507_v50  ;;  %v6292_v4 = vld [vmem:[#allocation2 + $0xa8] sm:$0xff] }
 0x1c2   : > { %v1718_v36 = vpop.f32.mrf.mxu1  ;;  %v1953_v34 = vpop.f32.mrf.mxu2  ;;  %9073 = vst [vmem:[#allocation30_spill] sm:$0xff] %v7551_v63  ;;  %v2926_v9 = vsel %vm6779_vm8, %v2921_v24, %v2925_v42  ;;  %v2928_v63 = vshrl.u32 %v2732_v48, 16 }
 0x1c3   : > { %v7527_v21 = vadd.f32 %v1951_v6, %v1718_v36  ;;  %v6384_v6 = vld [vmem:[%s9028_s3 + $0x1d0] sm:$0xff]  ;;  %v7543_v36 = vld [vmem:[#allocation2 + $0x68] sm:$0x1] }
 0x1c4   : > { %1970 = vmatmul.bf16.gmra.mxu3 %v6291_v31  ;;  %4696 = vmatpush.bf16.msra.mxu0 %v6384_v6  ;;  %v4909_v31 = vrot.slane %v7533_v37, 5  ;;  %v3510_v6 = vrot.slane %v7543_v36, 5 }
 0x1c5   : > { %9072 = vst [vmem:[#allocation29_spill] sm:$0xff] %v7527_v21  ;;  %2284 = vmatpush.bf16.msrb.mxu3 %v6310_v29 }
 0x1c6   : > { %3304 = vmatmul.bf16.gmra.mxu1 %v3196_v53  ;;  %v4910_v61 = vsel %vm7043_vm15, %v4908_v20, %v4909_v31  ;;  %v2931_v20 = vshll.u32 %v2732_v48, 16  ;;  %v2941_v31 = vshrl.u32 %v7523_v62, 16  ;;  %v6471_v62 = vld [vmem:[#allocation2 + $0x4] sm:$0xf]  ;;  %v3172_v48 = vunpack.c.l.b16 %v2926_v9 }
 0x1c7   : > { %3734 = vmatmul.bf16.gmra.mxu2 %v3622_v38  ;;  %v5013_v39 = vunpack.c.l.b16 %v4910_v61  ;;  %v3511_v38 = vsel %vm7043_vm15, %v3509_v27, %v3510_v6  ;;  %v2916_v27 = vsel %vm6779_vm8, %v2911_v56, %v7521_v40  ;;  %v2039_v15 = vrot.slane %v6471_v62, 5  ;;  %v4131_v40 = vld [vmem:[#allocation2 + $0x18] sm:$0xf] }
 0x1c8   : > { %4697 = vmatpush.bf16.msra.mxu0 %v6383_v23  ;;  %v3599_v61 = vunpack.c.l.b16 %v3511_v38  ;;  %v2933_v42 = vrot.slane %v2931_v20, 5  ;;  %v7577_v6 = vrot.slane %v2937_v3, 5  ;;  %v3171_v44 = vunpack.c.l.b16 %v2916_v27  ;;  %v1986_v3 = vld [vmem:[#allocation2] sm:$0xe] }
 0x1c9   : > { %v7570_v23 = vpack.c.b16 %v5013_v39, %v5012_v54  ;;  %v2943_v54 = vrot.slane %v2941_v31, 4  ;;  %v6472_v39 = vld [vmem:[#allocation2 + $0x8] sm:$0x1]  ;;  %v7579_v56 = vpop.f32.mrf.mxu0  ;;  %v4189_v9 = vshll.u32 %v7327_v59, 16  ;;  %v2041_v31 = vrot.slane %v2039_v15, 4 }
 0x1ca   : > { %v1720_v53 = vpop.f32.mrf.mxu1  ;;  %v1956_v24 = vpop.f32.mrf.mxu2  ;;  %9075 = vst [vmem:[#allocation32_spill] sm:$0xff] %v7579_v56  ;;  %v3197_v38 = vpack.c.b16 %v3172_v48, %v3171_v44  ;;  %v5839_v62 = vrot.slane %v1986_v3, 9 }
 0x1cb   : > { %v7556_v57 = vadd.f32 %v1953_v34, %v1720_v53  ;;  %v6382_v34 = vld [vmem:[%s9028_s3 + $0x1c0] sm:$0xff]  ;;  %v2930_v53 = vrot.slane %v2928_v63, 4  ;;  %v4193_v63 = vshrl.u32 %v7327_v59, 16  ;;  %v2944_v27 = vor.u32 %v2943_v54, %v7577_v6 }
 0x1cc   : > { %2668 = vmatmul.bf16.gmra.mxu0 %v6332_v52  ;;  %v2042_v52 = vrot.slane %v6472_v39, 5  ;;  %v4183_v39 = vshll.u32 %v4131_v40, 16  ;;  %v7592_v59 = vrot.slane %v4189_v9, 5 }
 0x1cd   : > { %9074 = vst [vmem:[#allocation31_spill] sm:$0xff] %v7556_v57  ;;  %4698 = vmatpush.bf16.msra.mxu0 %v6382_v34  ;;  %v3598_v57 = vunpack.c.l.b16 %v3508_v22  ;;  %v7583_v34 = vld [vmem:[#allocation2 + $0x70] sm:$0xf]  ;;  %v2934_v29 = vor.u32 %v2933_v42, %v2930_v53  ;;  %v2947_v22 = vshll.u32 %v7543_v36, 16  ;;  %v4195_v44 = vrot.slane %v4193_v63, 4  ;;  %v6381_v36 = vld [vmem:[%s9028_s3 + $0x1b8] sm:$0xff] }
 0x1ce   : > { %v2043_v56 = vsel %vm7043_vm15, %v2041_v31, %v2042_v52  ;;  %v6333_v42 = vld [vmem:[#allocation2 + $0xc0] sm:$0xff]  ;;  %v2945_v54 = vrot.slane %v2944_v27, 4  ;;  %4010 = vmatpush.bf16.msra.mxu3 %v6381_v36  ;;  %v4185_v31 = vrot.slane %v4183_v39, 5  ;;  %v2965_v39 = vshrl.u32 %v7583_v34, 16 }
 0x1cf   : > { %v3623_v20 = vpack.c.b16 %v3599_v61, %v3598_v57  ;;  %v2040_v57 = vsel %vm7043_vm15, %v5839_v62, %v2039_v15  ;;  %v2166_v48 = vunpack.c.l.b16 %v2043_v56  ;;  %v2949_v9 = vrot.slane %v2947_v22, 5  ;;  %v3400_v56 = vld [vmem:[#allocation2 + $0x6c] sm:$0xe] }
 0x1d0   : > { %v2165_v53 = vunpack.c.l.b16 %v2040_v57  ;;  %v4196_v62 = vor.u32 %v4195_v44, %v7592_v59  ;;  %v4134_v57 = vld [vmem:[#allocation2 + $0x24] sm:$0xf]  ;;  %v4199_v22 = vshll.u32 %v7333_v2, 16  ;;  %v6397_v44 = vld [vmem:[%s9028_s3 + $0x238] sm:$0xff]  ;;  %v4217_v2 = vshrl.u32 %v7339_v5, 16 }
 0x1d1   : > { %v7610_v36 = vpop.f32.mrf.mxu0  ;;  %5116 = vmatpush.bf16.msra.mxu1 %v6397_v44  ;;  %v2967_v21 = vrot.slane %v2965_v39, 4 }
 0x1d2   : > { %v1723_v13 = vpop.f32.mrf.mxu1  ;;  %v1958_v61 = vpop.f32.mrf.mxu2  ;;  %9078 = vst [vmem:[#allocation35_spill] sm:$0xff] %v7610_v36  ;;  %v4219_v44 = vrot.slane %v4217_v2, 4 }
 0x1d3   : > { %v7581_v50 = vadd.f32 %v1956_v24, %v1723_v13  ;;  %v3514_v13 = vrot.slane %v7583_v34, 5  ;;  %v4180_v24 = vshrl.u32 %v4131_v40, 16  ;;  %v7599_v40 = vld [vmem:[#allocation2 + $0x74] sm:$0x1] }
 0x1d4   : > { %1975 = vmatmul.bf16.gmra.mxu3 %v6292_v4  ;;  %v2935_v4 = vrot.slane %v2934_v29, 4  ;;  %v3517_v27 = vrot.slane %v7599_v40, 5  ;;  %v2950_v29 = vsel %vm6779_vm8, %v2945_v54, %v2949_v9  ;;  %v4213_v54 = vshll.u32 %v7339_v5, 16 }
 0x1d5   : > { %9076 = vst [vmem:[#allocation33_spill] sm:$0xff] %v7581_v50  ;;  %v3516_v63 = vrot.slane %v3514_v13, 4  ;;  %v4182_v3 = vrot.slane %v4180_v24, 4  ;;  %v2961_v24 = vshll.u32 %v7583_v34, 16  ;;  %v3174_v9 = vunpack.c.l.b16 %v2950_v29 }
 0x1d6   : > { %3309 = vmatmul.bf16.gmra.mxu1 %v3197_v38  ;;  %v7601_v38 = vpack.c.b16 %v2166_v48, %v2165_v53  ;;  %v2735_v48 = vld [vmem:[#allocation2 + $0x6c] sm:$0xf]  ;;  %v4204_v53 = vshrl.u32 %v4134_v57, 16  ;;  %v4201_v50 = vrot.slane %v4199_v22, 5  ;;  %v4215_v29 = vrot.slane %v4213_v54, 5 }
 0x1d7   : > { %3739 = vmatmul.bf16.gmra.mxu2 %v3623_v20  ;;  %v2940_v20 = vsel %vm6779_vm8, %v2935_v4, %v7577_v6  ;;  %v6023_v6 = vrot.slane %v3400_v56, 9  ;;  %v4197_v4 = vrot.slane %v4196_v62, 4  ;;  %v2952_v36 = vshrl.u32 %v2735_v48, 16  ;;  %v6293_v62 = vld [vmem:[#allocation2 + $0xb4] sm:$0xff] }
 0x1d8   : > { %v2955_v34 = vshll.u32 %v2735_v48, 16  ;;  %v7626_v56 = vrot.slane %v2961_v24, 5 }
 0x1d9   : > { %v4202_v5 = vsel %vm6779_vm8, %v4197_v4, %v4201_v50  ;;  %v2954_v58 = vrot.slane %v2952_v36, 4  ;;  %v7636_v50 = vpop.f32.mrf.mxu0  ;;  %v4220_v36 = vor.u32 %v4219_v44, %v4215_v29 }
 0x1da   : > { %v1725_v52 = vpop.f32.mrf.mxu1  ;;  %v2968_v39 = vor.u32 %v2967_v21, %v7626_v56  ;;  %9080 = vst [vmem:[#allocation37_spill] sm:$0xff] %v7636_v50  ;;  %v4817_v50 = vld [vmem:[#allocation2 + $0x54] sm:$0xe] }
 0x1db   : > { %v7603_v15 = vadd.f32 %v1958_v61, %v1725_v52  ;;  %v3518_v61 = vsel %vm7043_vm15, %v3516_v63, %v3517_v27  ;;  %v4186_v52 = vor.u32 %v4185_v31, %v4182_v3  ;;  %v1961_v63 = vpop.f32.mrf.mxu2  ;;  %v3173_v27 = vunpack.c.l.b16 %v2940_v20 }
 0x1dc   : > { %2673 = vmatmul.bf16.gmra.mxu0 %v6333_v42  ;;  %v4207_v42 = vshll.u32 %v4134_v57, 16  ;;  %v3601_v57 = vunpack.c.l.b16 %v3518_v61  ;;  %v4206_v3 = vrot.slane %v4204_v53, 4  ;;  %v4580_v61 = vunpack.c.l.b16 %v4202_v5 }
 0x1dd   : > { %9077 = vst [vmem:[#allocation34_spill] sm:$0xff] %v7603_v15  ;;  %v3515_v15 = vsel %vm7043_vm15, %v6023_v6, %v3514_v13  ;;  %v4187_v41 = vrot.slane %v4186_v52, 4  ;;  %v2957_v13 = vrot.slane %v2955_v34, 5  ;;  %v3198_v24 = vpack.c.b16 %v3174_v9, %v3173_v27  ;;  %v2739_v6 = vld [vmem:[#allocation2 + $0x7c] sm:$0xf] }
 0x1de   : > { %v4209_v31 = vrot.slane %v4207_v42, 5  ;;  %v3600_v18 = vunpack.c.l.b16 %v3515_v15  ;;  %v2971_v15 = vshll.u32 %v7599_v40, 16  ;;  %v4223_v52 = vshll.u32 %v7348_v33, 16  ;;  %v1987_v9 = vld [vmem:[#allocation2 + $0xc] sm:$0xe] }
 0x1df   : > { %v4192_v20 = vsel %vm6779_vm8, %v4187_v41, %v7592_v59  ;;  %v2958_v54 = vor.u32 %v2957_v13, %v2954_v58  ;;  %v3521_v2 = vrot.slane %v2739_v6, 5  ;;  %v2969_v41 = vrot.slane %v2968_v39, 4  ;;  %v1988_v34 = vld [vmem:[#allocation2 + $0x18] sm:$0xe]  ;;  %v7640_v27 = vld [vmem:[#allocation2 + $0x80] sm:$0x1] }
 0x1e0   : > { %v4210_v53 = vor.u32 %v4209_v31, %v4206_v3  ;;  %v3624_v42 = vpack.c.b16 %v3601_v57, %v3600_v18  ;;  %v4579_v4 = vunpack.c.l.b16 %v4192_v20  ;;  %v4221_v3 = vrot.slane %v4220_v36, 4  ;;  %v6473_v58 = vld [vmem:[#allocation2 + $0x10] sm:$0xf] }
 0x1e1   : > { %v4225_v31 = vrot.slane %v4223_v52, 5  ;;  %v5840_v18 = vrot.slane %v1987_v9, 9  ;;  %v3523_v5 = vrot.slane %v3521_v2, 4  ;;  %v2046_v44 = vrot.slane %v6473_v58, 5  ;;  %v6475_v52 = vld [vmem:[#allocation2 + $0x1c] sm:$0xf] }
 0x1e2   : > { %v4611_v59 = vpack.c.b16 %v4580_v61, %v4579_v4  ;;  %v4211_v21 = vrot.slane %v4210_v53, 4  ;;  %v2985_v20 = vshll.u32 %v2739_v6, 16  ;;  %v2989_v39 = vshrl.u32 %v2739_v6, 16  ;;  %v6474_v53 = vld [vmem:[#allocation2 + $0x14] sm:$0x1] }
 0x1e3   : > { %v1728_v48 = vpop.f32.mrf.mxu1  ;;  %v1963_v57 = vpop.f32.mrf.mxu2  ;;  %v3524_v61 = vrot.slane %v7640_v27, 5  ;;  %v5841_v36 = vrot.slane %v1988_v34, 9  ;;  %v2053_v4 = vrot.slane %v6475_v52, 5  ;;  %v7656_v6 = vld [vmem:[#allocation2 + $0x58] sm:$0xf] }
 0x1e4   : > { %v7630_v22 = vadd.f32 %v1961_v63, %v1728_v48  ;;  %1980 = vmatmul.bf16.gmra.mxu3 %v6293_v62  ;;  %v2973_v63 = vrot.slane %v2971_v15, 5  ;;  %v2959_v62 = vrot.slane %v2958_v54, 4  ;;  %v4216_v33 = vsel %vm6779_vm8, %v4211_v21, %v4215_v29  ;;  %v2738_v15 = vld [vmem:[#allocation2 + $0x78] sm:$0xf] }
 0x1e5   : > { %v4226_v54 = vsel %vm6779_vm8, %v4221_v3, %v4225_v31  ;;  %v7654_v9 = vunpack.c.l.b16 %v4216_v33  ;;  %v3525_v34 = vsel %vm7043_vm15, %v3523_v5, %v3524_v61  ;;  %v2976_v58 = vshrl.u32 %v2738_v15, 16  ;;  %v4137_v5 = vld [vmem:[#allocation2 + $0x30] sm:$0xf] }
 0x1e6   : > { %9079 = vst [vmem:[#allocation36_spill] sm:$0xff] %v7630_v22  ;;  %3314 = vmatmul.bf16.gmra.mxu1 %v3198_v24  ;;  %v2974_v13 = vsel %vm6779_vm8, %v2969_v41, %v2973_v63  ;;  %v3401_v24 = vld [vmem:[#allocation2 + $0x78] sm:$0xe]  ;;  %v2964_v29 = vsel %vm6779_vm8, %v2959_v62, %v7626_v56  ;;  %v6476_v41 = vld [vmem:[#allocation2 + $0x20] sm:$0x1]  ;;  %v7662_v56 = vrot.slane %v2985_v20, 5  ;;  %v2047_v33 = vsel %vm7043_vm15, %v5840_v18, %v2046_v44 }
 0x1e7   : > { %3744 = vmatmul.bf16.gmra.mxu2 %v3624_v42  ;;  %v2049_v42 = vrot.slane %v6474_v53, 5  ;;  %v3176_v21 = vunpack.c.l.b16 %v2974_v13  ;;  %v6024_v63 = vrot.slane %v3401_v24, 9  ;;  %v2979_v53 = vshll.u32 %v2738_v15, 16 }
 0x1e8   : > { %v2991_v62 = vrot.slane %v2989_v39, 4  ;;  %v3175_v3 = vunpack.c.l.b16 %v2964_v29  ;;  %v9033_v13 = vrot.slane %v7656_v6, 5  ;;  %v3603_v24 = vunpack.c.l.b16 %v3525_v34 }
 0x1e9   : > { %v3522_v31 = vsel %vm7043_vm15, %v6024_v63, %v3521_v2  ;;  %v4582_v52 = vunpack.c.l.b16 %v4226_v54  ;;  %v7671_v61 = vsel %vm7043_vm15, %v5841_v36, %v2053_v4  ;;  %v2055_v15 = vrot.slane %v2053_v4, 4  ;;  %v7681_v36 = vld [vmem:[#allocation2 + $0x88] sm:$0xf]  ;;  %v7683_v4 = vld [vmem:[#allocation2 + $0x5c] sm:$0x1] }
 0x1ea   : > { %v3199_v39 = vpack.c.b16 %v3176_v21, %v3175_v3  ;;  %v4237_v2 = vshll.u32 %v7412_v47, 16  ;;  %v4241_v18 = vshrl.u32 %v7412_v47, 16  ;;  %v2978_v54 = vrot.slane %v2976_v58, 4 }
 0x1eb   : > { %v1730_v40 = vpop.f32.mrf.mxu1  ;;  %v2992_v63 = vor.u32 %v2991_v62, %v7662_v56  ;;  %v2167_v34 = vunpack.c.l.b16 %v2047_v33  ;;  %v4228_v21 = vshrl.u32 %v4137_v5, 16  ;;  %v2995_v58 = vshll.u32 %v7640_v27, 16  ;;  %v6380_v62 = vld [vmem:[%s9028_s3 + $0x1b0] sm:$0xff] }
 0x1ec   : > { %v7644_v48 = vadd.f32 %v1963_v57, %v1730_v40  ;;  %4699 = vmatmul.bf16.vlgmr.msra.gmra.mxu0 %v4611_v59  ;;  %v2056_v59 = vrot.slane %v6476_v41, 5  ;;  %v2048_v57 = vrot.slane %v2046_v44, 4  ;;  %v7660_v40 = vpop.f32.mrf.mxu0  ;;  %v3602_v44 = vunpack.c.l.b16 %v3522_v31  ;;  %4011 = vmatpush.bf16.msra.mxu3 %v6380_v62 }
 0x1ed   : > { %9082 = vst [vmem:[#allocation39_spill] sm:$0xff] %v7660_v40  ;;  %v2981_v41 = vrot.slane %v2979_v53, 5  ;;  %v4231_v53 = vshll.u32 %v4137_v5, 16  ;;  %v3528_v33 = vrot.slane %v7681_v36, 5  ;;  %v7695_v40 = vrot.slane %v4237_v2, 5 }
 0x1ee   : > { %9081 = vst [vmem:[#allocation38_spill] sm:$0xff] %v7644_v48  ;;  %v2050_v29 = vsel %vm7043_vm15, %v2048_v57, %v2049_v42  ;;  %v1989_v42 = vld [vmem:[#allocation2 + $0x24] sm:$0xe]  ;;  %v4915_v57 = vrot.slane %v9033_v13, 4  ;;  %v3625_v47 = vpack.c.b16 %v3603_v24, %v3602_v44  ;;  %v4243_v3 = vrot.slane %v4241_v18, 4 }
 0x1ef   : > { %v4916_v13 = vrot.slane %v7683_v4, 5  ;;  %v2982_v24 = vor.u32 %v2981_v41, %v2978_v54  ;;  %v7700_v27 = vsel %vm7043_vm15, %v2055_v15, %v2056_v59  ;;  %v5842_v5 = vrot.slane %v1989_v42, 9  ;;  %v7710_v41 = vld [vmem:[#allocation2 + $0x8c] sm:$0x1] }
 0x1f0   : > { %v4230_v44 = vrot.slane %v4228_v21, 4  ;;  %v2997_v54 = vrot.slane %v2995_v58, 5  ;;  %v4247_v59 = vshll.u32 %v7425_v25, 16  ;;  %v6196_v15 = vrot.slane %v4817_v50, 9  ;;  %v6396_v58 = vld [vmem:[%s9028_s3 + $0x230] sm:$0xff] }
 0x1f1   : > { %v4917_v18 = vsel %vm7043_vm15, %v4915_v57, %v4916_v13  ;;  %v3530_v21 = vrot.slane %v3528_v33, 4  ;;  %v2983_v13 = vrot.slane %v2982_v24, 4  ;;  %v7722_v25 = vld [vmem:[#allocation2 + $0x2c] sm:$0x1]  ;;  %v3009_v24 = vshll.u32 %v7681_v36, 16  ;;  %5117 = vmatpush.bf16.msra.mxu1 %v6396_v58 }
 0x1f2   : > { %v4249_v2 = vrot.slane %v4247_v59, 5 }
 0x1f3   : > { %v7673_v20 = vpop.f32.mrf.mxu1  ;;  %v7749_v58 = vrot.slane %v3009_v24, 5  ;;  %v4818_v24 = vld [vmem:[#allocation2 + $0x60] sm:$0xe] }
 0x1f4   : > { %9083 = vst [vmem:[#allocation40_spill] sm:$0xff] %v7673_v20  ;;  %2285 = vmatmul.bf16.vlgmr.msrb.gmra.mxu3 %v7601_v38  ;;  %v2168_v38 = vunpack.c.l.b16 %v2050_v29  ;;  %v4612_v29 = vpack.c.b16 %v4582_v52, %v7654_v9  ;;  %v7703_v20 = vld [vmem:[#allocation2 + $0x28] sm:$0xf]  ;;  %v7708_v48 = vpop.f32.mrf.mxu0  ;;  %v3402_v52 = vld [vmem:[#allocation2 + $0x84] sm:$0xe] }
 0x1f5   : > { %9084 = vst [vmem:[#allocation41_spill] sm:$0xff] %v7708_v48  ;;  %v9087_v48 = vrot.slane %v7703_v20, 5 }
 0x1f6   : > { %3319 = vmatmul.bf16.gmra.mxu1 %v3199_v39  ;;  %v2993_v39 = vrot.slane %v2992_v63, 4  ;;  %v4233_v63 = vrot.slane %v4231_v53, 5  ;;  %v2198_v9 = vpack.c.b16 %v2168_v38, %v2167_v34  ;;  %v9086_v34 = vrot.slane %v7656_v6, 5  ;;  %v2741_v53 = vld [vmem:[#allocation2 + $0x84] sm:$0xf] }
 0x1f7   : > { %v7692_v31 = vpop.f32.mrf.mxu3  ;;  %3749 = vmatmul.bf16.gmra.mxu2 %v3625_v47  ;;  %v4244_v47 = vor.u32 %v4243_v3, %v7695_v40  ;;  %v3531_v38 = vrot.slane %v7710_v41, 5  ;;  %v7736_v50 = vsel %vm7043_vm15, %v5842_v5, %v9087_v48  ;;  %v3003_v48 = vshll.u32 %v2741_v53, 16  ;;  %v4140_v5 = vld [vmem:[#allocation2 + $0x3c] sm:$0xf] }
 0x1f8   : > { %v2998_v57 = vsel %vm6779_vm8, %v2993_v39, %v2997_v54  ;;  %v4914_v3 = vsel %vm7043_vm15, %v6196_v15, %v9086_v34  ;;  %v3013_v39 = vshrl.u32 %v7681_v36, 16  ;;  %v6025_v54 = vrot.slane %v3402_v52, 9 }
 0x1f9   : > { %v4234_v62 = vor.u32 %v4233_v63, %v4230_v44  ;;  %v2988_v34 = vsel %vm6779_vm8, %v2983_v13, %v7662_v56  ;;  %v3532_v36 = vsel %vm7043_vm15, %v3530_v21, %v3531_v38  ;;  %v4245_v44 = vrot.slane %v4244_v47, 4 }
 0x1fa   : > { %v3178_v63 = vunpack.c.l.b16 %v2998_v57  ;;  %v3529_v59 = vsel %vm7043_vm15, %v6025_v54, %v3528_v33  ;;  %v3000_v52 = vshrl.u32 %v2741_v53, 16  ;;  %v3015_v22 = vrot.slane %v3013_v39, 4 }
 0x1fb   : > { %v7713_v42 = vpop.f32.mrf.mxu1  ;;  %v3177_v56 = vunpack.c.l.b16 %v2988_v34  ;;  %v3605_v13 = vunpack.c.l.b16 %v3532_v36  ;;  %v4261_v21 = vshll.u32 %v7467_v46, 16  ;;  %v4265_v47 = vshrl.u32 %v7467_v46, 16 }
 0x1fc   : > { %9085 = vst [vmem:[#allocation42_spill] sm:$0xff] %v7713_v42  ;;  %4704 = vmatmul.bf16.gmra.mxu0 %v4612_v29  ;;  %v5015_v29 = vunpack.c.l.b16 %v4917_v18  ;;  %v7738_v42 = vld [vmem:[#allocation2 + $0x64] sm:$0xf]  ;;  %v5014_v18 = vunpack.c.l.b16 %v4914_v3  ;;  %v4235_v3 = vrot.slane %v4234_v62, 4  ;;  %v4250_v33 = vsel %vm6779_vm8, %v4245_v44, %v4249_v2  ;;  %v7760_v39 = vpop.f32.mrf.mxu0 }
 0x1fd   : > { %v4920_v51 = vrot.slane %v7738_v42, 5  ;;  %v4252_v38 = vshrl.u32 %v4140_v5, 16  ;;  %v4255_v53 = vshll.u32 %v4140_v5, 16  ;;  %9090 = vst [vmem:[#allocation45_spill] sm:$0xff] %v7760_v39  ;;  %v3604_v54 = vunpack.c.l.b16 %v3529_v59 }
 0x1fe   : > { %v7751_v35 = vpack.c.b16 %v5015_v29, %v5014_v18  ;;  %v3200_v29 = vpack.c.b16 %v3178_v63, %v3177_v56  ;;  %v3002_v34 = vrot.slane %v3000_v52, 4  ;;  %v3005_v36 = vrot.slane %v3003_v48, 5  ;;  %v7762_v18 = vld [vmem:[#allocation2 + $0x94] sm:$0xf] }
 0x1ff   : > { %v7740_v15 = vpop.f32.mrf.mxu3  ;;  %v4240_v46 = vsel %vm6779_vm8, %v4235_v3, %v7695_v40  ;;  %v3016_v2 = vor.u32 %v3015_v22, %v7749_v58  ;;  %v9091_v62 = vrot.slane %v7703_v20, 5  ;;  %v4922_v5 = vrot.slane %v4920_v51, 4 }
 0x200   : > { %9088 = vst [vmem:[#allocation43_spill] sm:$0xff] %v7751_v35  ;;  %v4584_v63 = vunpack.c.l.b16 %v4250_v33  ;;  %v7772_v59 = vrot.slane %v4261_v21, 5  ;;  %v4267_v52 = vrot.slane %v4265_v47, 4  ;;  %v3019_v56 = vshll.u32 %v7710_v41, 16 }
 0x201   : > { %v2062_v44 = vrot.slane %v9091_v62, 4  ;;  %v3535_v39 = vrot.slane %v7762_v18, 5  ;;  %v4923_v40 = vrot.slane %v7764_v7, 5  ;;  %v4583_v22 = vunpack.c.l.b16 %v4240_v46 }
 0x202   : > { %v3006_v20 = vor.u32 %v3005_v36, %v3002_v34  ;;  %v4254_v3 = vrot.slane %v4252_v38, 4  ;;  %v4257_v62 = vrot.slane %v4255_v53, 5  ;;  %v9093_v21 = vunpack.c.l.b16 %v7700_v27 }
 0x203   : > { %v7756_v57 = vpop.f32.mrf.mxu1  ;;  %v3017_v33 = vrot.slane %v3016_v2, 4  ;;  %v4268_v38 = vor.u32 %v4267_v52, %v7772_v59  ;;  %v9094_v53 = vrot.slane %v7722_v25, 5  ;;  %v3021_v36 = vrot.slane %v3019_v56, 5  ;;  %v2744_v25 = vld [vmem:[#allocation2 + $0x90] sm:$0xf] }
 0x204   : > { %9089 = vst [vmem:[#allocation44_spill] sm:$0xff] %v7756_v57  ;;  %2290 = vmatmul.bf16.gmra.mxu3 %v2198_v9  ;;  %v3626_v9 = vpack.c.b16 %v3605_v13, %v3604_v54  ;;  %v6197_v57 = vrot.slane %v4818_v24, 9  ;;  %v9092_v13 = vunpack.c.l.b16 %v7671_v61  ;;  %v4924_v24 = vsel %vm7043_vm15, %v4922_v5, %v4923_v40 }
 0x205   : > { %v4613_v54 = vpack.c.b16 %v4584_v63, %v4583_v22  ;;  %v7796_v61 = vsel %vm7043_vm15, %v2062_v44, %v9094_v53  ;;  %v5017_v2 = vunpack.c.l.b16 %v4924_v24  ;;  %v3007_v5 = vrot.slane %v3006_v20, 4  ;;  %v7808_v53 = vpop.f32.mrf.mxu0 }
 0x206   : > { %3324 = vmatmul.bf16.gmra.mxu1 %v3200_v29  ;;  %v7779_v29 = vld [vmem:[#allocation2 + $0x30] sm:$0xe]  ;;  %v2199_v47 = vpack.c.b16 %v9093_v21, %v9092_v13  ;;  %v4921_v41 = vsel %vm7043_vm15, %v6197_v57, %v4920_v51  ;;  %v3537_v57 = vrot.slane %v3535_v39, 4  ;;  %v4258_v63 = vor.u32 %v4257_v62, %v4254_v3  ;;  %v4143_v21 = vld [vmem:[#allocation2 + $0x48] sm:$0xf]  ;;  %9096 = vst [vmem:[#allocation47_spill] sm:$0xff] %v7808_v53 }
 0x207   : > { %v7774_v48 = vpop.f32.mrf.mxu3  ;;  %3754 = vmatmul.bf16.gmra.mxu2 %v3626_v9  ;;  %v7789_v9 = vld [vmem:[#allocation2 + $0x98] sm:$0x1]  ;;  %v3403_v51 = vld [vmem:[#allocation2 + $0x90] sm:$0xe]  ;;  %v4271_v52 = vshll.u32 %v7482_v49, 16  ;;  %v5016_v40 = vunpack.c.l.b16 %v4921_v41  ;;  %v3022_v44 = vsel %vm6779_vm8, %v3017_v33, %v3021_v36  ;;  %v3033_v13 = vshll.u32 %v7762_v18, 16 }
 0x208   : > { %v3538_v22 = vrot.slane %v7789_v9, 5  ;;  %v3037_v56 = vshrl.u32 %v7762_v18, 16  ;;  %v3012_v20 = vsel %vm6779_vm8, %v3007_v5, %v7749_v58  ;;  %v6026_v3 = vrot.slane %v3403_v51, 9  ;;  %v6479_v62 = vld [vmem:[#allocation2 + $0x34] sm:$0xf] }
 0x209   : > { %v4269_v49 = vrot.slane %v4268_v38, 4  ;;  %v2067_v41 = vrot.slane %v6479_v62, 5  ;;  %v3027_v36 = vshll.u32 %v2744_v25, 16  ;;  %v7817_v27 = vpack.c.b16 %v5017_v2, %v5016_v40  ;;  %v7823_v62 = vpop.f32.mrf.mxu2 }
 0x20a   : > { %v3539_v33 = vsel %vm7043_vm15, %v3537_v57, %v3538_v22  ;;  %v3180_v18 = vunpack.c.l.b16 %v3022_v44  ;;  %v4259_v46 = vrot.slane %v4258_v63, 4  ;;  %v4273_v53 = vrot.slane %v4271_v52, 5  ;;  %9098 = vst [vmem:[#allocation49_spill] sm:$0xff] %v7823_v62  ;;  %v7825_v57 = vld [vmem:[#allocation2 + $0xa0] sm:$0xf] }
 0x20b   : > { %v7799_v34 = vpop.f32.mrf.mxu1  ;;  %9097 = vst [vmem:[#allocation48_spill] sm:$0xff] %v7817_v27  ;;  %v3536_v58 = vsel %vm7043_vm15, %v6026_v3, %v3535_v39  ;;  %v7821_v51 = vrot.slane %v3033_v13, 5  ;;  %v3039_v38 = vrot.slane %v3037_v56, 4  ;;  %v4279_v5 = vshll.u32 %v4143_v21, 16  ;;  %v6480_v44 = vld [vmem:[#allocation2 + $0x38] sm:$0x1] }
 0x20c   : > { %9095 = vst [vmem:[#allocation46_spill] sm:$0xff] %v7799_v34  ;;  %4709 = vmatmul.bf16.gmra.mxu0 %v4613_v54  ;;  %v3024_v54 = vshrl.u32 %v2744_v25, 16  ;;  %v4276_v34 = vshrl.u32 %v4143_v21, 16  ;;  %v3179_v10 = vunpack.c.l.b16 %v3012_v20  ;;  %v3607_v60 = vunpack.c.l.b16 %v3539_v33  ;;  %v7838_v62 = vld [vmem:[#allocation2 + $0x3c] sm:$0xe] }
 0x20d   : > { %v4285_v2 = vshll.u32 %v7529_v45, 16  ;;  %v4289_v25 = vshrl.u32 %v7529_v45, 16  ;;  %v4274_v52 = vsel %vm6779_vm8, %v4269_v49, %v4273_v53  ;;  %v3029_v40 = vrot.slane %v3027_v36, 5  ;;  %v4819_v27 = vld [vmem:[#allocation2 + $0x6c] sm:$0xe] }
 0x20e   : > { %v3026_v39 = vrot.slane %v3024_v54, 4  ;;  %v2070_v22 = vrot.slane %v6480_v44, 5  ;;  %v3201_v13 = vpack.c.b16 %v3180_v18, %v3179_v10  ;;  %v3606_v56 = vunpack.c.l.b16 %v3536_v58  ;;  %v7855_v58 = vpop.f32.mrf.mxu0 }
 0x20f   : > { %v7813_v24 = vpop.f32.mrf.mxu3  ;;  %v4264_v21 = vsel %vm6779_vm8, %v4259_v46, %v7772_v59  ;;  %v2069_v20 = vrot.slane %v2067_v41, 4  ;;  %v3040_v3 = vor.u32 %v3039_v38, %v7821_v51  ;;  %v9034_v45 = vrot.slane %v7825_v57, 5  ;;  %9101 = vst [vmem:[#allocation51_spill] sm:$0xff] %v7855_v58 }
 0x210   : > { %v4278_v33 = vrot.slane %v4276_v34, 4  ;;  %v3627_v53 = vpack.c.b16 %v3607_v60, %v3606_v56  ;;  %v4586_v49 = vunpack.c.l.b16 %v4274_v52  ;;  %v7840_v54 = vrot.slane %v4285_v2, 5 }
 0x211   : > { %v4291_v10 = vrot.slane %v4289_v25, 4  ;;  %v2172_v46 = vunpack.c.l.b16 %v7796_v61  ;;  %v3030_v36 = vor.u32 %v3029_v40, %v3026_v39  ;;  %v3043_v34 = vshll.u32 %v7789_v9, 16  ;;  %v7864_v9 = vld [vmem:[#allocation2 + $0x40] sm:$0xf]  ;;  %v7867_v25 = vld [vmem:[#allocation2 + $0x70] sm:$0xf] }
 0x212   : > { %v9100_v18 = vrot.slane %v7779_v29, 9  ;;  %v4585_v38 = vunpack.c.l.b16 %v4264_v21  ;;  %v7861_v2 = vsel %vm7043_vm15, %v2069_v20, %v2070_v22  ;;  %v3544_v52 = vrot.slane %v9034_v45, 4  ;;  %v7871_v40 = vld [vmem:[#allocation2 + $0x44] sm:$0x1] }
 0x213   : > { %v7829_v63 = vpop.f32.mrf.mxu1  ;;  %v3057_v56 = vshll.u32 %v7825_v57, 16  ;;  %v3061_v21 = vshrl.u32 %v7825_v57, 16  ;;  %v4295_v44 = vshll.u32 %v7533_v37, 16  ;;  %v2174_v29 = vunpack.c.l.b16 %v7861_v2 }
 0x214   : > { %9099 = vst [vmem:[#allocation50_spill] sm:$0xff] %v7829_v63  ;;  %2295 = vmatmul.bf16.gmra.mxu3 %v2199_v47  ;;  %v4281_v63 = vrot.slane %v4279_v5, 5  ;;  %v6379_v47 = vld [vmem:[%s9028_s3 + $0x1a8] sm:$0xff]  ;;  %v7853_v60 = vsel %vm7043_vm15, %v9100_v18, %v2067_v41  ;;  %v7857_v5 = vld [vmem:[#allocation2 + $0xa4] sm:$0x1]  ;;  %v3041_v41 = vrot.slane %v3040_v3, 4  ;;  %v4614_v22 = vpack.c.b16 %v4586_v49, %v4585_v38 }
 0x215   : > { %4012 = vmatpush.bf16.msra.mxu3 %v6379_v47  ;;  %v3045_v47 = vrot.slane %v3043_v34, 5  ;;  %v3545_v3 = vrot.slane %v7857_v5, 5  ;;  %v2747_v18 = vld [vmem:[#allocation2 + $0x9c] sm:$0xf]  ;;  %v9104_v49 = vunpack.c.l.b16 %v7736_v50  ;;  %v2173_v61 = vunpack.c.l.b16 %v7853_v60  ;;  %v7891_v34 = vld [vmem:[#allocation2 + $0x74] sm:$0x1] }
 0x216   : > { %3329 = vmatmul.bf16.gmra.mxu1 %v3201_v13  ;;  %v4282_v39 = vor.u32 %v4281_v63, %v4278_v33  ;;  %v4292_v13 = vor.u32 %v4291_v10, %v7840_v54  ;;  %v4927_v63 = vrot.slane %v7867_v25, 5  ;;  %v7881_v33 = vpop.f32.mrf.mxu2  ;;  %v3404_v10 = vld [vmem:[#allocation2 + $0x9c] sm:$0xe]  ;;  %v3048_v60 = vshrl.u32 %v2747_v18, 16 }
 0x217   : > { %v7845_v59 = vpop.f32.mrf.mxu3  ;;  %3759 = vmatmul.bf16.gmra.mxu2 %v3627_v53  ;;  %v3031_v53 = vrot.slane %v3030_v36, 4  ;;  %9103 = vst [vmem:[#allocation53_spill] sm:$0xff] %v7881_v33  ;;  %v2200_v38 = vpack.c.b16 %v2172_v46, %v9104_v49  ;;  %v6395_v36 = vld [vmem:[%s9028_s3 + $0x228] sm:$0xff]  ;;  %v3046_v50 = vsel %vm6779_vm8, %v3041_v41, %v3045_v47  ;;  %v3546_v37 = vsel %vm7043_vm15, %v3544_v52, %v3545_v3  ;;  %v4146_v47 = vld [vmem:[#allocation2 + $0x54] sm:$0xf] }
 0x218   : > { %v4283_v46 = vrot.slane %v4282_v39, 4  ;;  %v3051_v49 = vshll.u32 %v2747_v18, 16  ;;  %v7900_v2 = vrot.slane %v3057_v56, 5  ;;  %v3063_v45 = vrot.slane %v3061_v21, 4  ;;  %5118 = vmatpush.bf16.msra.mxu1 %v6395_v36 }
 0x219   : > { %v4293_v33 = vrot.slane %v4292_v13, 4  ;;  %v4929_v35 = vrot.slane %v4927_v63, 4  ;;  %v4297_v41 = vrot.slane %v4295_v44, 5  ;;  %v4309_v52 = vshll.u32 %v7656_v6, 16 }
 0x21a   : > { %v4313_v39 = vshrl.u32 %v7656_v6, 16  ;;  %v9105_v56 = vrot.slane %v7825_v57, 5  ;;  %v3609_v18 = vunpack.c.l.b16 %v3546_v37  ;;  %v3050_v36 = vrot.slane %v3048_v60, 4 }
 0x21b   : > { %v7877_v20 = vpop.f32.mrf.mxu1  ;;  %v3064_v44 = vor.u32 %v3063_v45, %v7900_v2  ;;  %v6198_v26 = vrot.slane %v4819_v27, 9  ;;  %v4288_v6 = vsel %vm6779_vm8, %v4283_v46, %v7840_v54  ;;  %v4298_v57 = vsel %vm6779_vm8, %v4293_v33, %v4297_v41 }
 0x21c   : > { %9102 = vst [vmem:[#allocation52_spill] sm:$0xff] %v7877_v20  ;;  %4714 = vmatmul.bf16.gmra.mxu0 %v4614_v22  ;;  %v3036_v22 = vsel %vm6779_vm8, %v3031_v53, %v7821_v51  ;;  %v6027_v20 = vrot.slane %v3404_v10, 9  ;;  %v4930_v51 = vrot.slane %v7891_v34, 5  ;;  %v3182_v53 = vunpack.c.l.b16 %v3046_v50  ;;  %v7913_v10 = vpop.f32.mrf.mxu0 }
 0x21d   : > { %v3181_v3 = vunpack.c.l.b16 %v3036_v22  ;;  %9106 = vst [vmem:[#allocation54_spill] sm:$0xff] %v7913_v10  ;;  %v3053_v50 = vrot.slane %v3051_v49, 5  ;;  %v9108_v22 = vrot.slane %v7864_v9, 5  ;;  %v3067_v49 = vshll.u32 %v7857_v5, 16 }
 0x21e   : > { %v3543_v21 = vsel %vm7043_vm15, %v6027_v20, %v9105_v56  ;;  %v4931_v13 = vsel %vm7043_vm15, %v4929_v35, %v4930_v51  ;;  %v4300_v20 = vshrl.u32 %v4146_v47, 16  ;;  %v4928_v27 = vsel %vm7043_vm15, %v6198_v26, %v4927_v63  ;;  %v7930_v46 = vpop.f32.mrf.mxu2 }
 0x21f   : > { %v7902_v58 = vpop.f32.mrf.mxu3  ;;  %v2076_v35 = vrot.slane %v9108_v22, 4  ;;  %v3202_v37 = vpack.c.b16 %v3182_v53, %v3181_v3  ;;  %v3608_v60 = vunpack.c.l.b16 %v3543_v21  ;;  %v4303_v45 = vshll.u32 %v4146_v47, 16  ;;  %9109 = vst [vmem:[#allocation56_spill] sm:$0xff] %v7930_v46  ;;  %v7936_v21 = vld [vmem:[#allocation2 + $0x7c] sm:$0xf] }
 0x220   : > { %v7928_v51 = vrot.slane %v4309_v52, 5  ;;  %v4315_v56 = vrot.slane %v4313_v39, 4  ;;  %v5019_v54 = vunpack.c.l.b16 %v4931_v13  ;;  %v4588_v41 = vunpack.c.l.b16 %v4298_v57  ;;  %v7938_v52 = vld [vmem:[#allocation2 + $0xb0] sm:$0x1]  ;;  %v3405_v39 = vld [vmem:[#allocation2 + $0xa8] sm:$0xe] }
 0x221   : > { %v3628_v33 = vpack.c.b16 %v3609_v18, %v3608_v60  ;;  %v3054_v10 = vor.u32 %v3053_v50, %v3050_v36  ;;  %v3065_v22 = vrot.slane %v3064_v44, 4  ;;  %v7934_v3 = vpack.c.b16 %v2174_v29, %v2173_v61  ;;  %v2750_v57 = vld [vmem:[#allocation2 + $0xa8] sm:$0xf] }
 0x222   : > { %v5018_v26 = vunpack.c.l.b16 %v4928_v27  ;;  %v4587_v63 = vunpack.c.l.b16 %v4288_v6  ;;  %v3069_v47 = vrot.slane %v3067_v49, 5  ;;  %v9110_v18 = vrot.slane %v7864_v9, 5  ;;  %v1992_v27 = vld [vmem:[#allocation2 + $0x48] sm:$0xe] }
 0x223   : > { %v7916_v43 = vpop.f32.mrf.mxu1  ;;  %v9111_v13 = vrot.slane %v7838_v62, 9  ;;  %v9112_v61 = vrot.slane %v7871_v40, 5  ;;  %v4302_v50 = vrot.slane %v4300_v20, 4  ;;  %v4305_v44 = vrot.slane %v4303_v45, 5  ;;  %v6483_v45 = vld [vmem:[#allocation2 + $0x4c] sm:$0xf] }
 0x224   : > { %9107 = vst [vmem:[#allocation55_spill] sm:$0xff] %v7916_v43  ;;  %2300 = vmatmul.bf16.gmra.mxu3 %v2200_v38  ;;  %v2751_v38 = vld [vmem:[#allocation2 + $0xac] sm:$0xf]  ;;  %v4316_v6 = vor.u32 %v4315_v56, %v7928_v51  ;;  %v4615_v9 = vpack.c.b16 %v4588_v41, %v4587_v63  ;;  %v3055_v60 = vrot.slane %v3054_v10, 4  ;;  %v3070_v62 = vsel %vm6779_vm8, %v3065_v22, %v3069_v47  ;;  %v7964_v56 = vpop.f32.mrf.mxu0  ;;  %v7966_v63 = vld [vmem:[#allocation2 + $0x80] sm:$0x1] }
 0x225   : > { %v3549_v5 = vrot.slane %v2751_v38, 5  ;;  %v7946_v36 = vsel %vm7043_vm15, %v9111_v13, %v9110_v18  ;;  %v7952_v29 = vsel %vm7043_vm15, %v2076_v35, %v9112_v61  ;;  %v4319_v49 = vshll.u32 %v7683_v4, 16  ;;  %9114 = vst [vmem:[#allocation58_spill] sm:$0xff] %v7964_v56 }
 0x226   : > { %3334 = vmatmul.bf16.gmra.mxu1 %v3202_v37  ;;  %v7955_v37 = vpack.c.b16 %v5019_v54, %v5018_v26  ;;  %v3552_v20 = vrot.slane %v7938_v52, 5  ;;  %v3072_v54 = vshrl.u32 %v2750_v57, 16  ;;  %v3075_v41 = vshll.u32 %v2750_v57, 16  ;;  %v7981_v57 = vpop.f32.mrf.mxu2 }
 0x227   : > { %v7932_v53 = vpop.f32.mrf.mxu3  ;;  %3764 = vmatmul.bf16.gmra.mxu2 %v3628_v33  ;;  %v6028_v33 = vrot.slane %v3405_v39, 9  ;;  %v3551_v35 = vrot.slane %v3549_v5, 4  ;;  %v3081_v10 = vshll.u32 %v2751_v38, 16  ;;  %v3085_v26 = vshrl.u32 %v2751_v38, 16  ;;  %9116 = vst [vmem:[#allocation59_spill] sm:$0xff] %v7981_v57 }
 0x228   : > { %v4306_v22 = vor.u32 %v4305_v44, %v4302_v50  ;;  %v4317_v4 = vrot.slane %v4316_v6, 4  ;;  %v2176_v47 = vunpack.c.l.b16 %v7952_v29  ;;  %v5845_v18 = vrot.slane %v1992_v27, 9 }
 0x229   : > { %v3060_v39 = vsel %vm6779_vm8, %v3055_v60, %v7900_v2  ;;  %v3184_v13 = vunpack.c.l.b16 %v3070_v62  ;;  %v4321_v61 = vrot.slane %v4319_v49, 5  ;;  %v2081_v56 = vrot.slane %v6483_v45, 5 }
 0x22a   : > { %v3550_v38 = vsel %vm7043_vm15, %v6028_v33, %v3549_v5  ;;  %v3553_v50 = vsel %vm7043_vm15, %v3551_v35, %v3552_v20  ;;  %v9115_v44 = vrot.slane %v7936_v21, 5  ;;  %v4937_v6 = vrot.slane %v7966_v63, 5 }
 0x22b   : > { %v7960_v40 = vpop.f32.mrf.mxu1  ;;  %v3074_v2 = vrot.slane %v3072_v54, 4  ;;  %v3077_v60 = vrot.slane %v3075_v41, 5  ;;  %v7983_v62 = vrot.slane %v3081_v10, 5  ;;  %v3087_v49 = vrot.slane %v3085_v26, 4 }
 0x22c   : > { %9113 = vst [vmem:[#allocation57_spill] sm:$0xff] %v7960_v40  ;;  %4719 = vmatmul.bf16.gmra.mxu0 %v4615_v9  ;;  %v4936_v29 = vrot.slane %v9115_v44, 4  ;;  %v4307_v27 = vrot.slane %v4306_v22, 4  ;;  %v4322_v45 = vsel %vm6779_vm8, %v4317_v4, %v4321_v61  ;;  %v4333_v5 = vshll.u32 %v7738_v42, 16  ;;  %v4149_v40 = vld [vmem:[#allocation2 + $0x60] sm:$0xf] }
 0x22d   : > { %v3183_v35 = vunpack.c.l.b16 %v3060_v39  ;;  %v3610_v20 = vunpack.c.l.b16 %v3550_v38  ;;  %v3611_v44 = vunpack.c.l.b16 %v3553_v50  ;;  %v4337_v54 = vshrl.u32 %v7738_v42, 16 }
 0x22e   : > { %v7990_v33 = vsel %vm7043_vm15, %v4936_v29, %v4937_v6  ;;  %v2175_v41 = vunpack.c.l.b16 %v7946_v36  ;;  %v3091_v10 = vshll.u32 %v7938_v52, 16  ;;  %v7997_v26 = vsel %vm7043_vm15, %v5845_v18, %v2081_v56  ;;  %v8006_v29 = vpop.f32.mrf.mxu0 }
 0x22f   : > { %v7972_v9 = vpop.f32.mrf.mxu3  ;;  %v3203_v4 = vpack.c.b16 %v3184_v13, %v3183_v35  ;;  %v4312_v39 = vsel %vm6779_vm8, %v4307_v27, %v7928_v51  ;;  %v3078_v61 = vor.u32 %v3077_v60, %v3074_v2  ;;  %v3088_v42 = vor.u32 %v3087_v49, %v7983_v62  ;;  %9118 = vst [vmem:[#allocation61_spill] sm:$0xff] %v8006_v29  ;;  %v6378_v51 = vld [vmem:[%s9028_s3 + $0x1a0] sm:$0xff] }
 0x230   : > { %v4590_v38 = vunpack.c.l.b16 %v4322_v45  ;;  %v4324_v36 = vshrl.u32 %v4149_v40, 16  ;;  %v4327_v50 = vshll.u32 %v4149_v40, 16  ;;  %v2083_v52 = vrot.slane %v2081_v56, 4  ;;  %v6484_v56 = vld [vmem:[#allocation2 + $0x50] sm:$0x1]  ;;  %4013 = vmatpush.bf16.msra.mxu3 %v6378_v51 }
 0x231   : > { %v3629_v18 = vpack.c.b16 %v3611_v44, %v3610_v20  ;;  %v8008_v6 = vpack.c.b16 %v2176_v47, %v2175_v41  ;;  %v4339_v13 = vrot.slane %v4337_v54, 4  ;;  %v4589_v60 = vunpack.c.l.b16 %v4312_v39  ;;  %v4152_v45 = vld [vmem:[#allocation2 + $0x6c] sm:$0xf]  ;;  %v8021_v20 = vld [vmem:[#allocation2 + $0xbc] sm:$0x1] }
 0x232   : > { %v3093_v49 = vrot.slane %v3091_v10, 5  ;;  %v2084_v27 = vrot.slane %v6484_v56, 5  ;;  %v3079_v35 = vrot.slane %v3078_v61, 4  ;;  %v3406_v44 = vld [vmem:[#allocation2 + $0xb4] sm:$0xe]  ;;  %v4329_v10 = vrot.slane %v4327_v50, 5  ;;  %v8028_v56 = vpop.f32.mrf.mxu2 }
 0x233   : > { %v7999_v22 = vpop.f32.mrf.mxu1  ;;  %v4616_v41 = vpack.c.b16 %v4590_v38, %v4589_v60  ;;  %9119 = vst [vmem:[#allocation62_spill] sm:$0xff] %v8028_v56  ;;  %v4348_v61 = vshrl.u32 %v4152_v45, 16  ;;  %v6029_v29 = vrot.slane %v3406_v44, 9  ;;  %v3559_v51 = vrot.slane %v8021_v20, 5  ;;  %v8043_v60 = vld [vmem:[#allocation2 + $0x58] sm:$0xf] }
 0x234   : > { %9117 = vst [vmem:[#allocation60_spill] sm:$0xff] %v7999_v22  ;;  %2305 = vmatmul.bf16.gmra.mxu3 %v7934_v3  ;;  %v8010_v22 = vld [vmem:[#allocation2 + $0xb8] sm:$0xf]  ;;  %v8012_v3 = vrot.slane %v4333_v5, 5  ;;  %v3089_v5 = vrot.slane %v3088_v42, 4  ;;  %v8026_v39 = vsel %vm7043_vm15, %v2083_v52, %v2084_v27  ;;  %v4351_v42 = vshll.u32 %v4152_v45, 16 }
 0x235   : > { %v3556_v40 = vrot.slane %v8010_v22, 5  ;;  %v4361_v38 = vshrl.u32 %v7867_v25, 16  ;;  %v4343_v52 = vshll.u32 %v7764_v7, 16  ;;  %v3105_v44 = vshll.u32 %v8010_v22, 16 }
 0x236   : > { %3339 = vmatmul.bf16.gmra.mxu1 %v3203_v4  ;;  %v4326_v4 = vrot.slane %v4324_v36, 4  ;;  %v3084_v36 = vsel %vm6779_vm8, %v3079_v35, %v7983_v62  ;;  %v3094_v50 = vsel %vm6779_vm8, %v3089_v5, %v3093_v49  ;;  %v4350_v5 = vrot.slane %v4348_v61, 4  ;;  %v8056_v46 = vpop.f32.mrf.mxu0  ;;  %v8061_v61 = vld [vmem:[#allocation2 + $0x54] sm:$0xe] }
 0x237   : > { %v1966_v2 = vpop.f32.mrf.mxu3  ;;  %3769 = vmatmul.bf16.gmra.mxu2 %v3629_v18  ;;  %v2753_v18 = vld [vmem:[#allocation2 + $0xb4] sm:$0xf]  ;;  %v3558_v43 = vrot.slane %v3556_v40, 4  ;;  %v4353_v7 = vrot.slane %v4351_v42, 5  ;;  %v3557_v56 = vsel %vm7043_vm15, %v6029_v29, %v3556_v40  ;;  %9121 = vst [vmem:[#allocation64_spill] sm:$0xff] %v8056_v46 }
 0x238   : > { %v8019_v47 = vadd.f32 %v1966_v2, %v7692_v31  ;;  %v4340_v31 = vor.u32 %v4339_v13, %v8012_v3  ;;  %v4357_v2 = vshll.u32 %v7867_v25, 16  ;;  %v6394_v13 = vld [vmem:[%s9028_s3 + $0x220] sm:$0xff]  ;;  %v3096_v45 = vshrl.u32 %v2753_v18, 16 }
 0x239   : > { %v3099_v25 = vshll.u32 %v2753_v18, 16  ;;  %v4330_v35 = vor.u32 %v4329_v10, %v4326_v4  ;;  %5119 = vmatpush.bf16.msra.mxu1 %v6394_v13  ;;  %v3560_v27 = vsel %vm7043_vm15, %v3558_v43, %v3559_v51  ;;  %v4363_v18 = vrot.slane %v4361_v38, 4 }
 0x23a   : > { %v4341_v49 = vrot.slane %v4340_v31, 4  ;;  %v8054_v57 = vrot.slane %v4357_v2, 5  ;;  %v3185_v4 = vunpack.c.l.b16 %v3084_v36  ;;  %v3186_v10 = vunpack.c.l.b16 %v3094_v50  ;;  %v8070_v50 = vpop.f32.mrf.mxu2 }
 0x23b   : > { %v8048_v62 = vpop.f32.mrf.mxu1  ;;  %v4345_v31 = vrot.slane %v4343_v52, 5  ;;  %v3098_v42 = vrot.slane %v3096_v45, 4  ;;  %v3101_v13 = vrot.slane %v3099_v25, 5  ;;  %v3612_v40 = vunpack.c.l.b16 %v3557_v56  ;;  %9122 = vst [vmem:[#allocation65_spill] sm:$0xff] %v8070_v50  ;;  %v8182_v50 = vld [vmem:[#allocation2 + $0xa4] sm:$0x1] }
 0x23c   : > { %4724 = vmatmul.bf16.gmra.mxu0 %v4616_v41  ;;  %v3109_v41 = vshrl.u32 %v8010_v22, 16  ;;  %9120 = vst [vmem:[#allocation63_spill] sm:$0xff] %v8048_v62  ;;  %v8063_v62 = vrot.slane %v3105_v44, 5  ;;  %v3613_v43 = vunpack.c.l.b16 %v3560_v27  ;;  %v2178_v2 = vunpack.c.l.b16 %v8026_v39  ;;  %v6486_v39 = vld [vmem:[#allocation2 + $0x5c] sm:$0x1] }
 0x23d   : > { %v4354_v51 = vor.u32 %v4353_v7, %v4350_v5  ;;  %v4331_v38 = vrot.slane %v4330_v35, 4  ;;  %v3204_v52 = vpack.c.b16 %v3186_v10, %v3185_v4  ;;  %v4367_v45 = vshll.u32 %v7891_v34, 16  ;;  %v4820_v44 = vld [vmem:[#allocation2 + $0x78] sm:$0xe]  ;;  %v2757_v7 = vld [vmem:[#allocation2 + $0xc4] sm:$0xf] }
 0x23e   : > { %v3111_v29 = vrot.slane %v3109_v41, 4  ;;  %v9123_v56 = vrot.slane %v8043_v60, 5  ;;  %v2091_v25 = vrot.slane %v6486_v39, 5  ;;  %v3102_v35 = vor.u32 %v3101_v13, %v3098_v42  ;;  %v6393_v10 = vld [vmem:[%s9028_s3 + $0x218] sm:$0xff]  ;;  %v3407_v42 = vld [vmem:[#allocation2 + $0xc0] sm:$0xe] }
 0x23f   : > { %v1968_v54 = vpop.f32.mrf.mxu3  ;;  %v4336_v41 = vsel %vm6779_vm8, %v4331_v38, %v8012_v3  ;;  %v3115_v5 = vshll.u32 %v8021_v20, 16  ;;  %v3563_v34 = vrot.slane %v2757_v7, 5  ;;  %v4355_v4 = vrot.slane %v4354_v51, 4  ;;  %v8088_v3 = vld [vmem:[#allocation2 + $0xc8] sm:$0x1]  ;;  %5120 = vmatpush.bf16.msra.mxu1 %v6393_v10 }
 0x240   : > { %v8059_v22 = vadd.f32 %v1968_v54, %v7740_v15  ;;  %v4346_v15 = vsel %vm6779_vm8, %v4341_v49, %v4345_v31  ;;  %v4364_v54 = vor.u32 %v4363_v18, %v8054_v57  ;;  %v2090_v27 = vrot.slane %v9123_v56, 4 }
 0x241   : > { %v3112_v49 = vor.u32 %v3111_v29, %v8063_v62  ;;  %v4592_v18 = vunpack.c.l.b16 %v4346_v15  ;;  %v9124_v56 = vunpack.c.l.b16 %v7997_v26  ;;  %v6199_v20 = vrot.slane %v4820_v44, 9 }
 0x242   : > { %v4365_v13 = vrot.slane %v4364_v54, 4  ;;  %v4360_v51 = vsel %vm6779_vm8, %v4355_v4, %v8054_v57  ;;  %v4369_v38 = vrot.slane %v4367_v45, 5  ;;  %v3103_v26 = vrot.slane %v3102_v35, 4  ;;  %v2756_v57 = vld [vmem:[#allocation2 + $0xc0] sm:$0xf] }
 0x243   : > { %v8086_v39 = vpack.c.b16 %v2178_v2, %v9124_v56  ;;  %v8090_v29 = vpop.f32.mrf.mxu1  ;;  %v3113_v2 = vrot.slane %v3112_v49, 4  ;;  %v3117_v15 = vrot.slane %v3115_v5, 5  ;;  %v9126_v54 = vrot.slane %v7936_v21, 5  ;;  %v6392_v5 = vld [vmem:[%s9028_s3 + $0x210] sm:$0xff] }
 0x244   : > { %2310 = vmatmul.bf16.gmra.mxu3 %v8008_v6  ;;  %v3630_v6 = vpack.c.b16 %v3613_v43, %v3612_v40  ;;  %9125 = vst [vmem:[#allocation66_spill] sm:$0xff] %v8090_v29  ;;  %v4591_v43 = vunpack.c.l.b16 %v4336_v41  ;;  %v6030_v41 = vrot.slane %v3407_v42, 9  ;;  %v3566_v56 = vrot.slane %v8088_v3, 5  ;;  %5121 = vmatpush.bf16.msra.mxu1 %v6392_v5 }
 0x245   : > { %v4935_v44 = vsel %vm7043_vm15, %v6199_v20, %v9126_v54  ;;  %v4370_v45 = vsel %vm6779_vm8, %v4365_v13, %v4369_v38  ;;  %v3129_v35 = vshll.u32 %v2757_v7, 16  ;;  %v3133_v49 = vshrl.u32 %v2757_v7, 16  ;;  %v8120_v20 = vld [vmem:[#allocation2 + $0x88] sm:$0xf] }
 0x246   : > { %3344 = vmatmul.bf16.gmra.mxu1 %v3204_v52  ;;  %v8098_v52 = vld [vmem:[#allocation2 + $0x78] sm:$0xf]  ;;  %v5021_v4 = vunpack.c.l.b16 %v7990_v33  ;;  %v8113_v10 = vunpack.c.l.b16 %v4360_v51  ;;  %v5020_v13 = vunpack.c.l.b16 %v4935_v44  ;;  %v3108_v7 = vsel %vm6779_vm8, %v3103_v26, %v8063_v62  ;;  %v4821_v26 = vld [vmem:[#allocation2 + $0x84] sm:$0xe] }
 0x247   : > { %v1971_v31 = vpop.f32.mrf.mxu3  ;;  %3774 = vmatmul.bf16.gmra.mxu2 %v3630_v6  ;;  %v4617_v6 = vpack.c.b16 %v4592_v18, %v4591_v43  ;;  %v8117_v18 = vsel %vm7043_vm15, %v2090_v27, %v2091_v25  ;;  %v4372_v42 = vshrl.u32 %v8098_v52, 16  ;;  %v3118_v43 = vsel %vm6779_vm8, %v3113_v2, %v3117_v15  ;;  %v6391_v27 = vld [vmem:[%s9028_s3 + $0x208] sm:$0xff]  ;;  %v8130_v25 = vpop.f32.mrf.mxu2 }
 0x248   : > { %v8093_v40 = vadd.f32 %v1971_v31, %v7774_v48  ;;  %v8104_v48 = vpop.f32.mrf.mxu0  ;;  %v3565_v31 = vrot.slane %v3563_v34, 4  ;;  %v3120_v33 = vshrl.u32 %v2756_v57, 16  ;;  %v3123_v38 = vshll.u32 %v2756_v57, 16  ;;  %9128 = vst [vmem:[#allocation68_spill] sm:$0xff] %v8130_v25  ;;  %5122 = vmatpush.bf16.msra.mxu1 %v6391_v27 }
 0x249   : > { %9127 = vst [vmem:[#allocation67_spill] sm:$0xff] %v8104_v48  ;;  %v3564_v51 = vsel %vm7043_vm15, %v6030_v41, %v3563_v34  ;;  %v8136_v44 = vunpack.c.l.b16 %v4370_v45  ;;  %v4381_v62 = vshll.u32 %v7936_v21, 16  ;;  %v8139_v15 = vrot.slane %v3129_v35, 5 }
 0x24a   : > { %v3567_v54 = vsel %vm7043_vm15, %v3565_v31, %v3566_v56  ;;  %v8141_v57 = vpack.c.b16 %v5021_v4, %v5020_v13  ;;  %v4941_v5 = vrot.slane %v8120_v20, 5  ;;  %v3187_v34 = vunpack.c.l.b16 %v3108_v7  ;;  %v8148_v56 = vld [vmem:[#allocation2 + $0x8c] sm:$0x1] }
 0x24b   : > { %v3188_v41 = vunpack.c.l.b16 %v3118_v43  ;;  %v4385_v31 = vshrl.u32 %v7936_v21, 16  ;;  %v3122_v45 = vrot.slane %v3120_v33, 4  ;;  %v3125_v48 = vrot.slane %v3123_v38, 5  ;;  %v4822_v43 = vld [vmem:[#allocation2 + $0x90] sm:$0xe] }
 0x24c   : > { %4729 = vmatmul.bf16.gmra.mxu0 %v4617_v6  ;;  %v3135_v6 = vrot.slane %v3133_v49, 4  ;;  %v8150_v46 = vrot.slane %v4372_v42, 4  ;;  %v6200_v35 = vrot.slane %v4821_v26, 9  ;;  %v8152_v49 = vpop.f32.mrf.mxu1  ;;  %v3614_v4 = vunpack.c.l.b16 %v3564_v51  ;;  %v6390_v42 = vld [vmem:[%s9028_s3 + $0x200] sm:$0xff]  ;;  %v6377_v26 = vld [vmem:[%s9028_s3 + $0x198] sm:$0xff] }
 0x24d   : > { %9129 = vst [vmem:[#allocation69_spill] sm:$0xff] %v8152_v49  ;;  %v3615_v13 = vunpack.c.l.b16 %v3567_v54  ;;  %v3139_v29 = vshll.u32 %v8088_v3, 16  ;;  %v4943_v7 = vrot.slane %v4941_v5, 4  ;;  %v4944_v38 = vrot.slane %v8148_v56, 5  ;;  %5123 = vmatpush.bf16.msra.mxu1 %v6390_v42  ;;  %4014 = vmatpush.bf16.msra.mxu3 %v6377_v26 }
 0x24e   : > { %v3136_v21 = vor.u32 %v3135_v6, %v8139_v15  ;;  %v4942_v33 = vsel %vm7043_vm15, %v6200_v35, %v4941_v5  ;;  %v3205_v3 = vpack.c.b16 %v3188_v41, %v3187_v34  ;;  %v4618_v51 = vpack.c.b16 %v8136_v44, %v8113_v10  ;;  %v8175_v6 = vld [vmem:[#allocation2 + $0x98] sm:$0x1]  ;;  %v8177_v35 = vld [vmem:[#allocation2 + $0xa0] sm:$0xf]  ;;  %v4823_v10 = vld [vmem:[#allocation2 + $0x9c] sm:$0xe] }
 0x24f   : > { %v1973_v2 = vpop.f32.mrf.mxu3  ;;  %v8170_v54 = vrot.slane %v4381_v62, 5  ;;  %v3126_v5 = vor.u32 %v3125_v48, %v3122_v45  ;;  %v6201_v34 = vrot.slane %v4822_v43, 9  ;;  %v3631_v44 = vpack.c.b16 %v3615_v13, %v3614_v4  ;;  %v8187_v43 = vpop.f32.mrf.mxu2 }
 0x250   : > { %v8145_v36 = vadd.f32 %v1973_v2, %v7813_v24  ;;  %v8155_v24 = vld [vmem:[#allocation2 + $0x94] sm:$0xf]  ;;  %v4375_v2 = vshll.u32 %v8098_v52, 16  ;;  %v8165_v27 = vpop.f32.mrf.mxu0  ;;  %v4387_v52 = vrot.slane %v4385_v31, 4  ;;  %v3141_v62 = vrot.slane %v3139_v29, 5 }
 0x251   : > { %9130 = vst [vmem:[#allocation70_spill] sm:$0xff] %v8165_v27  ;;  %v4948_v41 = vrot.slane %v8155_v24, 5  ;;  %v5022_v31 = vunpack.c.l.b16 %v4942_v33  ;;  %v3137_v25 = vrot.slane %v3136_v21, 4  ;;  %v6202_v4 = vrot.slane %v4823_v10, 9  ;;  %v8208_v10 = vld [vmem:[#allocation2 + $0xac] sm:$0xf] }
 0x252   : > { %v4955_v13 = vrot.slane %v8177_v35, 5  ;;  %v3127_v21 = vrot.slane %v3126_v5, 4  ;;  %v4377_v33 = vrot.slane %v4375_v2, 5  ;;  %v2180_v2 = vunpack.c.l.b16 %v8117_v18 }
 0x253   : > { %v4949_v48 = vsel %vm7043_vm15, %v6201_v34, %v4948_v41  ;;  %v4950_v45 = vrot.slane %v4948_v41, 4  ;;  %v4388_v5 = vor.u32 %v4387_v52, %v8170_v54  ;;  %v4391_v52 = vshll.u32 %v7966_v63, 16 }
 0x254   : > { %2315 = vmatmul.bf16.gmra.mxu3 %v8086_v39  ;;  %v4945_v39 = vsel %vm7043_vm15, %v4943_v7, %v4944_v38  ;;  %v4951_v7 = vrot.slane %v8175_v6, 5  ;;  %v4957_v34 = vrot.slane %v4955_v13, 4  ;;  %v3132_v18 = vsel %vm6779_vm8, %v3127_v21, %v8139_v15 }
 0x255   : > { %v5023_v27 = vunpack.c.l.b16 %v4945_v39  ;;  %v4956_v39 = vsel %vm7043_vm15, %v6202_v4, %v4955_v13  ;;  %v4824_v13 = vld [vmem:[#allocation2 + $0xa8] sm:$0xe]  ;;  %v3189_v63 = vunpack.c.l.b16 %v3132_v18  ;;  %v4409_v18 = vshrl.u32 %v8120_v20, 16 }
 0x256   : > { %3349 = vmatmul.bf16.gmra.mxu1 %v3205_v3  ;;  %v4952_v38 = vsel %vm7043_vm15, %v4950_v45, %v4951_v7  ;;  %v5024_v3 = vunpack.c.l.b16 %v4949_v48  ;;  %v3142_v48 = vsel %vm6779_vm8, %v3137_v25, %v3141_v62  ;;  %v4962_v45 = vrot.slane %v8208_v10, 5 }
 0x257   : > { %v1976_v49 = vpop.f32.mrf.mxu3  ;;  %3779 = vmatmul.bf16.gmra.mxu2 %v3631_v44  ;;  %v8192_v29 = vpack.c.b16 %v5023_v27, %v5022_v31  ;;  %v5025_v26 = vunpack.c.l.b16 %v4952_v38  ;;  %v9132_v27 = vrot.slane %v8061_v61, 9  ;;  %v8210_v44 = vld [vmem:[#allocation2 + $0xb0] sm:$0x1]  ;;  %v8212_v31 = vpop.f32.mrf.mxu1  ;;  %v5026_v7 = vunpack.c.l.b16 %v4956_v39 }
 0x258   : > { %v8190_v42 = vadd.f32 %v1976_v49, %v7845_v59  ;;  %v4958_v59 = vrot.slane %v8182_v50, 5  ;;  %v9131_v49 = vrot.slane %v8043_v60, 5  ;;  %v4378_v25 = vor.u32 %v4377_v33, %v8150_v46 }
 0x259   : > { %v8216_v60 = vpack.c.b16 %v5025_v26, %v5024_v3  ;;  %v6203_v62 = vrot.slane %v4824_v13, 9  ;;  %v4964_v38 = vrot.slane %v4962_v45, 4  ;;  %v4965_v3 = vrot.slane %v8210_v44, 5 }
 0x25a   : > { %v2089_v41 = vsel %vm7043_vm15, %v9132_v27, %v9131_v49  ;;  %v4959_v61 = vsel %vm7043_vm15, %v4957_v34, %v4958_v59  ;;  %v3190_v59 = vunpack.c.l.b16 %v3142_v48  ;;  %v4389_v49 = vrot.slane %v4388_v5, 4 }
 0x25b   : > { %v5027_v4 = vunpack.c.l.b16 %v4959_v61  ;;  %v2179_v34 = vunpack.c.l.b16 %v2089_v41  ;;  %v4963_v21 = vsel %vm7043_vm15, %v6203_v62, %v4962_v45  ;;  %v4966_v46 = vsel %vm7043_vm15, %v4964_v38, %v4965_v3  ;;  %v6487_v41 = vld [vmem:[#allocation2 + $0x64] sm:$0xf] }
 0x25c   : > { %4734 = vmatmul.bf16.gmra.mxu0 %v4618_v51  ;;  %v8225_v51 = vpop.f32.mrf.mxu0  ;;  %v4393_v33 = vrot.slane %v4391_v52, 5  ;;  %v5028_v39 = vunpack.c.l.b16 %v4963_v21  ;;  %v5029_v61 = vunpack.c.l.b16 %v4966_v46  ;;  %v2095_v48 = vrot.slane %v6487_v41, 5  ;;  %v6488_v46 = vld [vmem:[#allocation2 + $0x68] sm:$0x1] }
 0x25d   : > { %9133 = vst [vmem:[#allocation71_spill] sm:$0xff] %v8225_v51  ;;  %v8229_v27 = vpack.c.b16 %v5027_v4, %v5026_v7  ;;  %v2204_v13 = vpack.c.b16 %v2180_v2, %v2179_v34  ;;  %v4379_v51 = vrot.slane %v4378_v25, 4  ;;  %v4158_v7 = vld [vmem:[#allocation2 + $0x84] sm:$0xf]  ;;  %v3206_v45 = vpack.c.b16 %v3190_v59, %v3189_v63  ;;  %v1994_v63 = vld [vmem:[#allocation2 + $0x60] sm:$0xe] }
 0x25e   : > { %v4394_v5 = vsel %vm6779_vm8, %v4389_v49, %v4393_v33  ;;  %v8242_v4 = vpack.c.b16 %v5029_v61, %v5028_v39  ;;  %v2097_v62 = vrot.slane %v2095_v48, 4  ;;  %v4396_v38 = vshrl.u32 %v4158_v7, 16 }
 0x25f   : > { %v1978_v26 = vpop.f32.mrf.mxu3  ;;  %v4384_v52 = vsel %vm6779_vm8, %v4379_v51, %v8170_v54  ;;  %v8247_v2 = vpop.f32.mrf.mxu1  ;;  %v4596_v25 = vunpack.c.l.b16 %v4394_v5  ;;  %v4399_v3 = vshll.u32 %v4158_v7, 16  ;;  %v4411_v49 = vrot.slane %v4409_v18, 4  ;;  %v8256_v5 = vld [vmem:[#allocation2 + $0xb8] sm:$0xf]  ;;  %v8258_v7 = vld [vmem:[#allocation2 + $0xbc] sm:$0x1] }
 0x260   : > { %v8232_v15 = vadd.f32 %v1978_v26, %v7902_v58  ;;  %v4405_v58 = vshll.u32 %v8120_v20, 16  ;;  %v4595_v59 = vunpack.c.l.b16 %v4384_v52  ;;  %v2098_v33 = vrot.slane %v6488_v46, 5 }
 0x261   : > { %v4398_v39 = vrot.slane %v4396_v38, 4  ;;  %v4401_v61 = vrot.slane %v4399_v3, 5  ;;  %v4415_v52 = vshll.u32 %v8148_v56, 16 }
 0x262   : > { %v4407_v34 = vrot.slane %v4405_v58, 5  ;;  %v4619_v54 = vpack.c.b16 %v4596_v25, %v4595_v59  ;;  %v2099_v51 = vsel %vm7043_vm15, %v2097_v62, %v2098_v33  ;;  %v4969_v58 = vrot.slane %v8256_v5, 5  ;;  %v4825_v25 = vld [vmem:[#allocation2 + $0xb4] sm:$0xe] }
 0x263   : > { %v4402_v62 = vor.u32 %v4401_v61, %v4398_v39  ;;  %v6204_v38 = vrot.slane %v4825_v25, 9 }
 0x264   : > { %2320 = vmatmul.bf16.gmra.mxu3 %v2204_v13  ;;  %v8249_v21 = vpop.f32.mrf.mxu0  ;;  %v5847_v13 = vrot.slane %v1994_v63, 9  ;;  %v4412_v41 = vor.u32 %v4411_v49, %v4407_v34  ;;  %v4971_v3 = vrot.slane %v4969_v58, 4 }
 0x265   : > { %9134 = vst [vmem:[#allocation72_spill] sm:$0xff] %v8249_v21 }
 0x266   : > { %3354 = vmatmul.bf16.gmra.mxu1 %v3206_v45  ;;  %v2096_v18 = vsel %vm7043_vm15, %v5847_v13, %v2095_v48  ;;  %v2182_v45 = vunpack.c.l.b16 %v2099_v51  ;;  %v4413_v59 = vrot.slane %v4412_v41, 4  ;;  %v4970_v48 = vsel %vm7043_vm15, %v6204_v38, %v4969_v58  ;;  %v6489_v41 = vld [vmem:[#allocation2 + $0x70] sm:$0xf] }
 0x267   : > { %v1981_v26 = vpop.f32.mrf.mxu3  ;;  %v8268_v63 = vpop.f32.mrf.mxu1  ;;  %v2181_v33 = vunpack.c.l.b16 %v2096_v18  ;;  %v5030_v51 = vunpack.c.l.b16 %v4970_v48  ;;  %v2102_v25 = vrot.slane %v6489_v41, 5  ;;  %v4429_v18 = vshll.u32 %v8155_v24, 16  ;;  %v4161_v38 = vld [vmem:[#allocation2 + $0x90] sm:$0xf] }
 0x268   : > { %v8252_v20 = vadd.f32 %v1981_v26, %v7932_v53  ;;  %v6405_v53 = vld [vmem:[%s9030_s5 + $0x38] sm:$0xff]  ;;  %v4972_v26 = vrot.slane %v8258_v7, 5 }
 0x269   : > { %5421 = vmatpush.bf16.msra.mxu2 %v6405_v53  ;;  %v2205_v13 = vpack.c.b16 %v2182_v45, %v2181_v33  ;;  %v4403_v53 = vrot.slane %v4402_v62, 4  ;;  %v4420_v33 = vshrl.u32 %v4161_v38, 16  ;;  %v4431_v48 = vrot.slane %v4429_v18, 5 }
 0x26a   : > { %v4973_v56 = vsel %vm7043_vm15, %v4971_v3, %v4972_v26  ;;  %v2104_v3 = vrot.slane %v2102_v25, 4  ;;  %v4439_v18 = vshll.u32 %v8175_v6, 16 }
 0x26b   : > { %v5031_v39 = vunpack.c.l.b16 %v4973_v56  ;;  %v4408_v45 = vsel %vm6779_vm8, %v4403_v53, %v4407_v34 }
 0x26c   : > { %4739 = vmatmul.bf16.gmra.mxu0 %v4619_v54  ;;  %v4417_v54 = vrot.slane %v4415_v52, 5  ;;  %v8277_v61 = vpop.f32.mrf.mxu0  ;;  %v6376_v52 = vld [vmem:[%s9028_s3 + $0x190] sm:$0xff] }
 0x26d   : > { %9135 = vst [vmem:[#allocation73_spill] sm:$0xff] %v8277_v61  ;;  %v8283_v58 = vpack.c.b16 %v5031_v39, %v5030_v51  ;;  %4015 = vmatpush.bf16.msra.mxu3 %v6376_v52  ;;  %v4597_v51 = vunpack.c.l.b16 %v4408_v45  ;;  %v6490_v39 = vld [vmem:[#allocation2 + $0x74] sm:$0x1] }
 0x26f   : > { %v1983_v49 = vpop.f32.mrf.mxu3  ;;  %v8294_v41 = vpop.f32.mrf.mxu1 }
 0x270   : > { %v8271_v46 = vadd.f32 %v1983_v49, %v7972_v9  ;;  %v4418_v9 = vsel %vm6779_vm8, %v4413_v59, %v4417_v54  ;;  %v4433_v49 = vshrl.u32 %v8155_v24, 16  ;;  %v1995_v59 = vld [vmem:[#allocation2 + $0x6c] sm:$0xe]  ;;  %v4423_v24 = vshll.u32 %v4161_v38, 16 }
 0x271   : > { %v4598_v62 = vunpack.c.l.b16 %v4418_v9  ;;  %v5848_v53 = vrot.slane %v1995_v59, 9  ;;  %v4422_v9 = vrot.slane %v4420_v33, 4  ;;  %v4441_v59 = vrot.slane %v4439_v18, 5 }
 0x272   : > { %v4435_v56 = vrot.slane %v4433_v49, 4  ;;  %v4425_v52 = vrot.slane %v4423_v24, 5 }
 0x273   : > { %v4620_v34 = vpack.c.b16 %v4598_v62, %v4597_v51 }
 0x274   : > { %2325 = vmatmul.bf16.gmra.mxu3 %v2205_v13  ;;  %v2105_v13 = vrot.slane %v6490_v39, 5  ;;  %v4436_v61 = vor.u32 %v4435_v56, %v4431_v48  ;;  %v8298_v21 = vpop.f32.mrf.mxu0  ;;  %v4426_v45 = vor.u32 %v4425_v52, %v4422_v9  ;;  %v4164_v39 = vld [vmem:[#allocation2 + $0x9c] sm:$0xf] }
 0x275   : > { %9136 = vst [vmem:[#allocation74_spill] sm:$0xff] %v8298_v21  ;;  %v4447_v9 = vshll.u32 %v4164_v39, 16 }
 0x276   : > { %5124 = vmatmul.bf16.vlgmr.msra.gmra.mxu1 %v7369_v12  ;;  %v2106_v12 = vsel %vm7043_vm15, %v2104_v3, %v2105_v13  ;;  %v4437_v62 = vrot.slane %v4436_v61, 4  ;;  %v6491_v3 = vld [vmem:[#allocation2 + $0x7c] sm:$0xf]  ;;  %v4427_v24 = vrot.slane %v4426_v45, 4  ;;  %v4453_v13 = vshll.u32 %v8177_v35, 16 }
 0x277   : > { %v2286_v26 = vpop.f32.mrf.mxu3  ;;  %v2184_v49 = vunpack.c.l.b16 %v2106_v12  ;;  %v2109_v33 = vrot.slane %v6491_v3, 5  ;;  %v8309_v6 = vpop.f32.mrf.mxu1  ;;  %v4444_v12 = vshrl.u32 %v4164_v39, 16  ;;  %v4449_v3 = vrot.slane %v4447_v9, 5 }
 0x278   : > { %v8292_v54 = vadd.f32 %v2286_v26, %v6988_v55  ;;  %v2103_v55 = vsel %vm7043_vm15, %v5848_v53, %v2102_v25  ;;  %v4442_v56 = vsel %vm6779_vm8, %v4437_v62, %v4441_v59  ;;  %v4457_v25 = vshrl.u32 %v8177_v35, 16  ;;  %v1996_v62 = vld [vmem:[#allocation2 + $0x78] sm:$0xe] }
 0x279   : > { %v2183_v26 = vunpack.c.l.b16 %v2103_v55  ;;  %v4432_v61 = vsel %vm6779_vm8, %v4427_v24, %v4431_v48  ;;  %v4600_v53 = vunpack.c.l.b16 %v4442_v56  ;;  %v2111_v55 = vrot.slane %v2109_v33, 4 }
 0x27a   : > { %v4455_v18 = vrot.slane %v4453_v13, 5  ;;  %v4599_v35 = vunpack.c.l.b16 %v4432_v61  ;;  %v4446_v48 = vrot.slane %v4444_v12, 4  ;;  %v5849_v24 = vrot.slane %v1996_v62, 9  ;;  %v4167_v12 = vld [vmem:[#allocation2 + $0xa8] sm:$0xf] }
 0x27b   : > { %v2206_v51 = vpack.c.b16 %v2184_v49, %v2183_v26  ;;  %v4459_v49 = vrot.slane %v4457_v25, 4  ;;  %v6492_v26 = vld [vmem:[#allocation2 + $0x80] sm:$0x1]  ;;  %v4463_v39 = vshll.u32 %v8182_v50, 16  ;;  %v4468_v62 = vshrl.u32 %v4167_v12, 16 }
 0x27c   : > { %4744 = vmatmul.bf16.gmra.mxu0 %v4620_v34  ;;  %v8313_v34 = vpop.f32.mrf.mxu0  ;;  %v2112_v59 = vrot.slane %v6492_v26, 5  ;;  %v2110_v13 = vsel %vm7043_vm15, %v5849_v24, %v2109_v33  ;;  %v4471_v26 = vshll.u32 %v4167_v12, 16  ;;  %v4481_v33 = vshrl.u32 %v8208_v10, 16 }
 0x27d   : > { %9137 = vst [vmem:[#allocation75_spill] sm:$0xff] %v8313_v34  ;;  %v4460_v56 = vor.u32 %v4459_v49, %v4455_v18  ;;  %v2185_v50 = vunpack.c.l.b16 %v2110_v13  ;;  %v6498_v34 = vld [vmem:[#allocation2 + $0xa4] sm:$0x1] }
 0x27e   : > { %v4483_v12 = vrot.slane %v4481_v33, 4  ;;  %v2133_v21 = vrot.slane %v6498_v34, 5  ;;  %v9146_v34 = vld [vmem:[#allocation12_spill] sm:$0xff] }
 0x27f   : > { %v8303_v38 = vpop.f32.mrf.mxu3  ;;  %v8327_v25 = vpop.f32.mrf.mxu1 }
 0x280   : > { %9138 = vst [vmem:[#allocation76_spill] sm:$0xff] %v8327_v25 }
 0x284   : > { %2330 = vmatmul.bf16.gmra.mxu3 %v2206_v51  ;;  %v4621_v51 = vpack.c.b16 %v4600_v53, %v4599_v35  ;;  %v4450_v53 = vor.u32 %v4449_v3, %v4446_v48  ;;  %v4465_v35 = vrot.slane %v4463_v39, 5  ;;  %v6493_v48 = vld [vmem:[#allocation2 + $0x88] sm:$0xf]  ;;  %v4470_v39 = vrot.slane %v4468_v62, 4 }
 0x285   : > { %v2116_v3 = vrot.slane %v6493_v48, 5 }
 0x286   : > { %5129 = vmatmul.bf16.gmra.mxu1 %v7385_v1  ;;  %v2113_v1 = vsel %vm7043_vm15, %v2111_v55, %v2112_v59  ;;  %v8329_v55 = vpop.f32.mrf.mxu0  ;;  %v4477_v59 = vshll.u32 %v8208_v10, 16  ;;  %v4451_v24 = vrot.slane %v4450_v53, 4 }
 0x287   : > { %v2291_v52 = vpop.f32.mrf.mxu3  ;;  %v2186_v61 = vunpack.c.l.b16 %v2113_v1  ;;  %9139 = vst [vmem:[#allocation77_spill] sm:$0xff] %v8329_v55 }
 0x288   : > { %v8317_v45 = vadd.f32 %v2291_v52, %v7093_v28  ;;  %v6404_v28 = vld [vmem:[%s9030_s5 + $0x30] sm:$0xff]  ;;  %v4461_v52 = vrot.slane %v4460_v56, 4  ;;  %v6375_v56 = vld [vmem:[%s9028_s3 + $0x188] sm:$0xff]  ;;  %v4479_v13 = vrot.slane %v4477_v59, 5 }
 0x289   : > { %5422 = vmatpush.bf16.msra.mxu2 %v6404_v28  ;;  %v4473_v28 = vrot.slane %v4471_v26, 5  ;;  %4016 = vmatpush.bf16.msra.mxu3 %v6375_v56  ;;  %v4487_v26 = vshll.u32 %v8210_v44, 16 }
 0x28a   : > { %v4466_v1 = vsel %vm6779_vm8, %v4461_v52, %v4465_v35  ;;  %v8344_v52 = vpop.f32.mrf.mxu1  ;;  %v6494_v35 = vld [vmem:[#allocation2 + $0x8c] sm:$0x1]  ;;  %v4484_v62 = vor.u32 %v4483_v12, %v4479_v13 }
 0x28b   : > { %v4602_v10 = vunpack.c.l.b16 %v4466_v1  ;;  %9140 = vst [vmem:[#allocation78_spill] sm:$0xff] %v8344_v52 }
 0x28c   : > { %4749 = vmatmul.bf16.gmra.mxu0 %v4621_v51  ;;  %v2207_v51 = vpack.c.b16 %v2186_v61, %v2185_v50  ;;  %v2118_v61 = vrot.slane %v2116_v3, 4 }
 0x28e   : > { %v8350_v59 = vpop.f32.mrf.mxu0 }
 0x28f   : > { %v2293_v9 = vpop.f32.mrf.mxu3 }
 0x290   : > { %v8332_v49 = vadd.f32 %v2293_v9, %v7123_v11  ;;  %v4456_v11 = vsel %vm6779_vm8, %v4451_v24, %v4455_v18  ;;  %v1997_v9 = vld [vmem:[#allocation2 + $0x84] sm:$0xe]  ;;  %v4474_v24 = vor.u32 %v4473_v28, %v4470_v39  ;;  %v4170_v28 = vld [vmem:[#allocation2 + $0xb4] sm:$0xf] }
 0x291   : > { %v4601_v18 = vunpack.c.l.b16 %v4456_v11  ;;  %v5850_v33 = vrot.slane %v1997_v9, 9  ;;  %v4485_v11 = vrot.slane %v4484_v62, 4  ;;  %v6495_v62 = vld [vmem:[#allocation2 + $0x94] sm:$0xf] }
 0x292   : > { %v4475_v56 = vrot.slane %v4474_v24, 4  ;;  %v8363_v9 = vpop.f32.mrf.mxu1  ;;  %v4505_v24 = vshrl.u32 %v8256_v5, 16 }
 0x293   : > { %v2117_v1 = vsel %vm7043_vm15, %v5850_v33, %v2116_v3  ;;  %9141 = vst [vmem:[#allocation79_spill] sm:$0xff] %v8363_v9  ;;  %v4492_v3 = vshrl.u32 %v4170_v28, 16 }
 0x294   : > { %2335 = vmatmul.bf16.gmra.mxu3 %v2207_v51  ;;  %v2119_v51 = vrot.slane %v6494_v35, 5  ;;  %v2187_v39 = vunpack.c.l.b16 %v2117_v1 }
 0x296   : > { %5134 = vmatmul.bf16.gmra.mxu1 %v7460_v14  ;;  %v4622_v14 = vpack.c.b16 %v4602_v10, %v4601_v18  ;;  %v2120_v48 = vsel %vm7043_vm15, %v2118_v61, %v2119_v51  ;;  %v4480_v10 = vsel %vm6779_vm8, %v4475_v56, %v4479_v13  ;;  %v4495_v18 = vshll.u32 %v4170_v28, 16 }
 0x297   : > { %v2296_v53 = vpop.f32.mrf.mxu3  ;;  %v4501_v51 = vshll.u32 %v8256_v5, 16  ;;  %v4494_v13 = vrot.slane %v4492_v3, 4  ;;  %v6496_v5 = vld [vmem:[#allocation2 + $0x98] sm:$0x1] }
 0x298   : > { %v8347_v50 = vadd.f32 %v2296_v53, %v7150_v17  ;;  %v2188_v17 = vunpack.c.l.b16 %v2120_v48  ;;  %v4489_v53 = vrot.slane %v4487_v26, 5  ;;  %v2123_v26 = vrot.slane %v6495_v62, 5 }
 0x299   : > { %v4497_v48 = vrot.slane %v4495_v18, 5  ;;  %v4503_v1 = vrot.slane %v4501_v51, 5 }
 0x29a   : > { %v2208_v12 = vpack.c.b16 %v2188_v17, %v2187_v39  ;;  %v4490_v61 = vsel %vm6779_vm8, %v4485_v11, %v4489_v53  ;;  %v4507_v17 = vrot.slane %v4505_v24, 4  ;;  %v2125_v11 = vrot.slane %v2123_v26, 4 }
 0x29b   : > { %v4604_v33 = vunpack.c.l.b16 %v4490_v61  ;;  %v2126_v39 = vrot.slane %v6496_v5, 5  ;;  %v4498_v62 = vor.u32 %v4497_v48, %v4494_v13  ;;  %v8376_v61 = vpop.f32.mrf.mxu1  ;;  %v6497_v5 = vld [vmem:[#allocation2 + $0xa0] sm:$0xf] }
 0x29c   : > { %4754 = vmatmul.bf16.gmra.mxu0 %v4622_v14  ;;  %v8367_v14 = vpop.f32.mrf.mxu0  ;;  %v4508_v55 = vor.u32 %v4507_v17, %v4503_v1  ;;  %9142 = vst [vmem:[#allocation80_spill] sm:$0xff] %v8376_v61  ;;  %v4173_v17 = vld [vmem:[#allocation2 + $0xc0] sm:$0xf] }
 0x29d   : > { %v4499_v24 = vrot.slane %v4498_v62, 4 }
 0x29f   : > { %v2298_v35 = vpop.f32.mrf.mxu3 }
 0x2a0   : > { %v8357_v44 = vadd.f32 %v2298_v35, %v7188_v30  ;;  %v4603_v30 = vunpack.c.l.b16 %v4480_v10  ;;  %v1998_v35 = vld [vmem:[#allocation2 + $0x90] sm:$0xe] }
 0x2a1   : > { %v5851_v10 = vrot.slane %v1998_v35, 9  ;;  %v4504_v35 = vsel %vm6779_vm8, %v4499_v24, %v4503_v1 }
 0x2a2   : > { %v4623_v28 = vpack.c.b16 %v4604_v33, %v4603_v30  ;;  %v4509_v30 = vrot.slane %v4508_v55, 4  ;;  %v4516_v55 = vshrl.u32 %v4173_v17, 16  ;;  %v4605_v1 = vunpack.c.l.b16 %v4504_v35 }
 0x2a3   : > { %v2124_v3 = vsel %vm7043_vm15, %v5851_v10, %v2123_v26  ;;  %v8399_v10 = vpop.f32.mrf.mxu1 }
 0x2a4   : > { %2340 = vmatmul.bf16.gmra.mxu3 %v2208_v12  ;;  %v4511_v12 = vshll.u32 %v8258_v7, 16  ;;  %v8383_v18 = vpop.f32.mrf.mxu0  ;;  %v2189_v48 = vunpack.c.l.b16 %v2124_v3  ;;  %9143 = vst [vmem:[#allocation81_spill] sm:$0xff] %v8399_v10  ;;  %v4518_v24 = vrot.slane %v4516_v55, 4 }
 0x2a6   : > { %5139 = vmatmul.bf16.gmra.mxu1 %v7517_v32  ;;  %v2127_v32 = vsel %vm7043_vm15, %v2125_v11, %v2126_v39  ;;  %v4513_v7 = vrot.slane %v4511_v12, 5  ;;  %v2130_v39 = vrot.slane %v6497_v5, 5  ;;  %v6374_v12 = vld [vmem:[%s9028_s3 + $0x180] sm:$0xff]  ;;  %v8407_v5 = vld [vmem:[#allocation2 + $0xc8] sm:$0x1] }
 0x2a7   : > { %v2301_v56 = vpop.f32.mrf.mxu3  ;;  %v2190_v51 = vunpack.c.l.b16 %v2127_v32  ;;  %4017 = vmatpush.bf16.msra.mxu3 %v6374_v12  ;;  %v4535_v55 = vshll.u32 %v8407_v5, 16 }
 0x2a8   : > { %v8371_v53 = vadd.f32 %v2301_v56, %v7211_v8  ;;  %v6403_v8 = vld [vmem:[%s9030_s5 + $0x28] sm:$0xff]  ;;  %v8388_v56 = vld [vmem:[#allocation2 + $0xc4] sm:$0xf]  ;;  %v4514_v26 = vsel %vm6779_vm8, %v4509_v30, %v4513_v7 }
 0x2a9   : > { %5423 = vmatpush.bf16.msra.mxu2 %v6403_v8  ;;  %v2209_v11 = vpack.c.b16 %v2190_v51, %v2189_v48  ;;  %v4525_v62 = vshll.u32 %v8388_v56, 16  ;;  %v4606_v32 = vunpack.c.l.b16 %v4514_v26  ;;  %v2132_v8 = vrot.slane %v2130_v39, 4  ;;  %v1999_v51 = vld [vmem:[#allocation2 + $0x9c] sm:$0xe] }
 0x2aa   : > { %v5852_v35 = vrot.slane %v1999_v51, 9  ;;  %v4537_v61 = vrot.slane %v4535_v55, 5 }
 0x2ab   : > { %v4527_v7 = vrot.slane %v4525_v62, 5  ;;  %v2134_v26 = vsel %vm7043_vm15, %v2132_v8, %v2133_v21  ;;  %v8414_v9 = vpop.f32.mrf.mxu1 }
 0x2ac   : > { %4759 = vmatmul.bf16.gmra.mxu0 %v4623_v28  ;;  %v4519_v28 = vshll.u32 %v4173_v17, 16  ;;  %v8402_v48 = vpop.f32.mrf.mxu0  ;;  %v9144_v17 = vld [vmem:[#allocation10_spill] sm:$0xff]  ;;  %v2192_v62 = vunpack.c.l.b16 %v2134_v26 }
 0x2ad   : > { %9145 = vst [vmem:[#allocation10_spill] sm:$0xff] %v8414_v9 }
 0x2ae   : > { %v4521_v30 = vrot.slane %v4519_v28, 5  ;;  %v2131_v28 = vsel %vm7043_vm15, %v5852_v35, %v2130_v39 }
 0x2af   : > { %v2303_v33 = vpop.f32.mrf.mxu3 }
 0x2b0   : > { %v8386_v13 = vadd.f32 %v2303_v33, %v7234_v16  ;;  %v4529_v16 = vshrl.u32 %v8388_v56, 16  ;;  %v4522_v12 = vor.u32 %v4521_v30, %v4518_v24  ;;  %v6499_v24 = vld [vmem:[#allocation2 + $0xac] sm:$0xf] }
 0x2b1   : > { %v2137_v30 = vrot.slane %v6499_v24, 5 }
 0x2b2   : > { %v4531_v33 = vrot.slane %v4529_v16, 4 }
 0x2b3   : > { %v2139_v55 = vrot.slane %v2137_v30, 4 }
 0x2b4   : > { %2345 = vmatmul.bf16.gmra.mxu3 %v2209_v11  ;;  %v4532_v10 = vor.u32 %v4531_v33, %v4527_v7  ;;  %v8419_v21 = vpop.f32.mrf.mxu0  ;;  %v9147_v33 = vld [vmem:[#allocation43_spill] sm:$0xff] }
 0x2b6   : > { %5144 = vmatmul.bf16.gmra.mxu1 %v7570_v23  ;;  %v4624_v23 = vpack.c.b16 %v4606_v32, %v4605_v1  ;;  %v2191_v32 = vunpack.c.l.b16 %v2131_v28  ;;  %v6500_v28 = vld [vmem:[#allocation2 + $0xb0] sm:$0x1] }
 0x2b7   : > { %v2306_v3 = vpop.f32.mrf.mxu3 }
 0x2b8   : > { %v8405_v11 = vadd.f32 %v2306_v3, %v9144_v17  ;;  %v4523_v3 = vrot.slane %v4522_v12, 4  ;;  %v4533_v17 = vrot.slane %v4532_v10, 4  ;;  %v2210_v8 = vpack.c.b16 %v2192_v62, %v2191_v32  ;;  %v2000_v10 = vld [vmem:[#allocation2 + $0xa8] sm:$0xe]  ;;  %v9148_v62 = vld [vmem:[#allocation14_spill] sm:$0xff]  ;;  %v6402_v32 = vld [vmem:[%s9030_s5 + $0x20] sm:$0xff] }
 0x2b9   : > { %v5853_v12 = vrot.slane %v2000_v10, 9  ;;  %5424 = vmatpush.bf16.msra.mxu2 %v6402_v32  ;;  %v9150_v10 = vld [vmem:[#allocation16_spill] sm:$0xff] }
 0x2ba   : > { %v4528_v51 = vsel %vm6779_vm8, %v4523_v3, %v4527_v7  ;;  %v4538_v39 = vsel %vm6779_vm8, %v4533_v17, %v4537_v61  ;;  %v8429_v7 = vpop.f32.mrf.mxu1 }
 0x2bb   : > { %v4608_v35 = vunpack.c.l.b16 %v4538_v39  ;;  %9149 = vst [vmem:[#allocation12_spill] sm:$0xff] %v8429_v7  ;;  %v2138_v61 = vsel %vm7043_vm15, %v5853_v12, %v2137_v30  ;;  %v2001_v12 = vld [vmem:[#allocation2 + $0xb4] sm:$0xe]  ;;  %v9155_v7 = vld [vmem:[#allocation20_spill] sm:$0xff] }
 0x2bc   : > { %4764 = vmatmul.bf16.gmra.mxu0 %v4624_v23  ;;  %v4607_v23 = vunpack.c.l.b16 %v4528_v51  ;;  %v2193_v51 = vunpack.c.l.b16 %v2138_v61  ;;  %v9153_v61 = vld [vmem:[#allocation18_spill] sm:$0xff] }
 0x2be   : > { %v4625_v3 = vpack.c.b16 %v4608_v35, %v4607_v23  ;;  %v6501_v35 = vld [vmem:[#allocation2 + $0xb8] sm:$0xf] }
 0x2bf   : > { %v2308_v16 = vpop.f32.mrf.mxu3  ;;  %v2144_v30 = vrot.slane %v6501_v35, 5 }
 0x2c0   : > { %v8417_v1 = vadd.f32 %v2308_v16, %v9146_v34  ;;  %v2140_v16 = vrot.slane %v6500_v28, 5 }
 0x2c2   : > { %v2141_v17 = vsel %vm7043_vm15, %v2139_v55, %v2140_v16  ;;  %v9152_v55 = vld [vmem:[#allocation48_spill] sm:$0xff]  ;;  %v5854_v16 = vrot.slane %v2001_v12, 9 }
 0x2c3   : > { %v2194_v39 = vunpack.c.l.b16 %v2141_v17 }
 0x2c4   : > { %2350 = vmatmul.bf16.gmra.mxu3 %v2210_v8  ;;  %v8438_v8 = vpop.f32.mrf.mxu0 }
 0x2c5   : > { %v2211_v23 = vpack.c.b16 %v2194_v39, %v2193_v51  ;;  %v2145_v51 = vsel %vm7043_vm15, %v5854_v16, %v2144_v30 }
 0x2c6   : > { %5149 = vmatmul.bf16.gmra.mxu1 %v9147_v33 }
 0x2c7   : > { %v2311_v26 = vpop.f32.mrf.mxu3 }
 0x2c8   : > { %v8427_v34 = vadd.f32 %v2311_v26, %v9148_v62  ;;  %v8443_v26 = vpop.f32.mrf.mxu1  ;;  %v2146_v62 = vrot.slane %v2144_v30, 4 }
 0x2c9   : > { %9151 = vst [vmem:[#allocation43_spill] sm:$0xff] %v8443_v26  ;;  %v2195_v26 = vunpack.c.l.b16 %v2145_v51 }
 0x2cc   : > { %4769 = vmatmul.bf16.gmra.mxu0 %v4625_v3  ;;  %v6502_v3 = vld [vmem:[#allocation2 + $0xbc] sm:$0x1] }
 0x2cd   : > { %v2147_v32 = vrot.slane %v6502_v3, 5 }
 0x2cf   : > { %v2313_v24 = vpop.f32.mrf.mxu3  ;;  %v2148_v39 = vsel %vm7043_vm15, %v2146_v62, %v2147_v32 }
 0x2d0   : > { %v8441_v33 = vadd.f32 %v2313_v24, %v9150_v10  ;;  %v4976_v24 = vrot.slane %v8388_v56, 5  ;;  %v4826_v10 = vld [vmem:[#allocation2 + $0xc0] sm:$0xe]  ;;  %v8455_v12 = vpop.f32.mrf.mxu1  ;;  %v2196_v3 = vunpack.c.l.b16 %v2148_v39  ;;  %v9157_v39 = vld [vmem:[#allocation22_spill] sm:$0xff] }
 0x2d1   : > { %9154 = vst [vmem:[#allocation14_spill] sm:$0xff] %v8455_v12 }
 0x2d2   : > { %v4978_v35 = vrot.slane %v4976_v24, 4 }
 0x2d4   : > { %2355 = vmatmul.bf16.gmra.mxu3 %v2211_v23  ;;  %v6205_v23 = vrot.slane %v4826_v10, 9  ;;  %v2212_v10 = vpack.c.b16 %v2196_v3, %v2195_v26  ;;  %v6358_v26 = vld [vmem:[#allocation2 + $0x18] sm:$0xff]  ;;  %v9160_v3 = vld [vmem:[#allocation25_spill] sm:$0xff] }
 0x2d6   : > { %5154 = vmatmul.bf16.gmra.mxu1 %v9152_v55  ;;  %v4979_v55 = vrot.slane %v8407_v5, 5 }
 0x2d7   : > { %v2316_v28 = vpop.f32.mrf.mxu3 }
 0x2d8   : > { %v8447_v17 = vadd.f32 %v2316_v28, %v9153_v61  ;;  %v4977_v28 = vsel %vm7043_vm15, %v6205_v23, %v4976_v24  ;;  %v4980_v56 = vsel %vm7043_vm15, %v4978_v35, %v4979_v55  ;;  %v8467_v51 = vpop.f32.mrf.mxu1  ;;  %v6401_v23 = vld [vmem:[%s9030_s5 + $0x18] sm:$0xff] }
 0x2d9   : > { %v5032_v30 = vunpack.c.l.b16 %v4977_v28  ;;  %v5033_v16 = vunpack.c.l.b16 %v4980_v56  ;;  %9156 = vst [vmem:[#allocation16_spill] sm:$0xff] %v8467_v51  ;;  %5425 = vmatpush.bf16.msra.mxu2 %v6401_v23 }
 0x2db   : > { %v8464_v32 = vpack.c.b16 %v5033_v16, %v5032_v30  ;;  %v9162_v16 = vld [vmem:[#allocation27_spill] sm:$0xff] }
 0x2df   : > { %v2318_v61 = vpop.f32.mrf.mxu3 }
 0x2e0   : > { %v8462_v62 = vadd.f32 %v2318_v61, %v9155_v7  ;;  %v9158_v7 = vld [vmem:[#allocation23_spill] sm:$0xff]  ;;  %v8478_v28 = vpop.f32.mrf.mxu1 }
 0x2e1   : > { %9159 = vst [vmem:[#allocation48_spill] sm:$0xff] %v8478_v28 }
 0x2e4   : > { %2360 = vmatmul.bf16.gmra.mxu3 %v2212_v10 }
 0x2e6   : > { %5159 = vmatmul.bf16.gmra.mxu1 %v7955_v37 }
 0x2e7   : > { %v2321_v5 = vpop.f32.mrf.mxu3 }
 0x2e8   : > { %v8470_v24 = vadd.f32 %v2321_v5, %v9157_v39  ;;  %v8484_v61 = vpop.f32.mrf.mxu1  ;;  %v6359_v5 = vld [vmem:[#allocation2 + $0x24] sm:$0xff] }
 0x2e9   : > { %9161 = vst [vmem:[#allocation18_spill] sm:$0xff] %v8484_v61  ;;  %v9172_v61 = vld [vmem:[#allocation34_spill] sm:$0xff] }
 0x2ef   : > { %v2323_v35 = vpop.f32.mrf.mxu3 }
 0x2f0   : > { %v8476_v55 = vadd.f32 %v2323_v35, %v9158_v7  ;;  %v8489_v39 = vpop.f32.mrf.mxu1  ;;  %v9164_v35 = vld [vmem:[#allocation29_spill] sm:$0xff] }
 0x2f1   : > { %9163 = vst [vmem:[#allocation20_spill] sm:$0xff] %v8489_v39 }
 0x2f4   : > { %4018 = vmatmul.bf16.vlgmr.msra.gmra.mxu3 %v6358_v26 }
 0x2f6   : > { %5164 = vmatmul.bf16.gmra.mxu1 %v8141_v57  ;;  %v6400_v57 = vld [vmem:[%s9030_s5 + $0x10] sm:$0xff] }
 0x2f7   : > { %v2326_v37 = vpop.f32.mrf.mxu3  ;;  %5426 = vmatpush.bf16.msra.mxu2 %v6400_v57  ;;  %v8512_v57 = vpop.f32.mrf.mxu2 }
 0x2f8   : > { %v8482_v56 = vadd.f32 %v2326_v37, %v9160_v3  ;;  %v8498_v37 = vpop.f32.mrf.mxu1  ;;  %v9167_v3 = vld [vmem:[#allocation31_spill] sm:$0xff] }
 0x2f9   : > { %9166 = vst [vmem:[#allocation23_spill] sm:$0xff] %v8498_v37  ;;  %v6361_v37 = vld [vmem:[#allocation2 + $0x3c] sm:$0xff] }
 0x2ff   : > { %v2328_v30 = vpop.f32.mrf.mxu3 }
 0x300   : > { %v8487_v10 = vadd.f32 %v2328_v30, %v9162_v16  ;;  %v6360_v16 = vld [vmem:[#allocation2 + $0x30] sm:$0xff] }
 0x304   : > { %4023 = vmatmul.bf16.gmra.mxu3 %v6359_v5  ;;  %v9169_v5 = vld [vmem:[#allocation33_spill] sm:$0xff] }
 0x306   : > { %5169 = vmatmul.bf16.gmra.mxu1 %v8192_v29 }
 0x307   : > { %v2331_v23 = vpop.f32.mrf.mxu3 }
 0x308   : > { %v8493_v7 = vadd.f32 %v2331_v23, %v9164_v35  ;;  %v8507_v23 = vpop.f32.mrf.mxu1 }
 0x309   : > { %9171 = vst [vmem:[#allocation29_spill] sm:$0xff] %v8507_v23 }
 0x30a   : > { %9165 = vst [vmem:[#allocation22_spill] sm:$0xff] %v8493_v7 }
 0x30f   : > { %v2333_v26 = vpop.f32.mrf.mxu3 }
 0x310   : > { %v8501_v30 = vadd.f32 %v2333_v26, %v9167_v3  ;;  %v8514_v51 = vpop.f32.mrf.mxu1 }
 0x312   : > { %9168 = vst [vmem:[#allocation25_spill] sm:$0xff] %v8501_v30 }
 0x314   : > { %4028 = vmatmul.bf16.gmra.mxu3 %v6360_v16  ;;  %v8520_v16 = vpop.f32.mrf.mxu2 }
 0x316   : > { %5174 = vmatmul.bf16.gmra.mxu1 %v8216_v60  ;;  %v9174_v60 = vld [vmem:[#allocation36_spill] sm:$0xff] }
 0x317   : > { %v2336_v29 = vpop.f32.mrf.mxu3 }
 0x318   : > { %v8505_v39 = vadd.f32 %v2336_v29, %v9169_v5  ;;  %v6399_v29 = vld [vmem:[%s9030_s5 + $0x8] sm:$0xff] }
 0x319   : > { %5427 = vmatpush.bf16.msra.mxu2 %v6399_v29 }
 0x31a   : > { %9170 = vst [vmem:[#allocation27_spill] sm:$0xff] %v8505_v39 }
 0x31f   : > { %v2338_v35 = vpop.f32.mrf.mxu3 }
 0x320   : > { %v8510_v28 = vadd.f32 %v2338_v35, %v9172_v61  ;;  %v8525_v61 = vpop.f32.mrf.mxu1  ;;  %v9176_v35 = vld [vmem:[#allocation38_spill] sm:$0xff] }
 0x322   : > { %9173 = vst [vmem:[#allocation31_spill] sm:$0xff] %v8510_v28 }
 0x324   : > { %4033 = vmatmul.bf16.gmra.mxu3 %v6361_v37  ;;  %v6362_v37 = vld [vmem:[#allocation2 + $0x48] sm:$0xff] }
 0x326   : > { %5179 = vmatmul.bf16.gmra.mxu1 %v8229_v27  ;;  %v8530_v27 = vpop.f32.mrf.mxu2 }
 0x327   : > { %v2341_v26 = vpop.f32.mrf.mxu3 }
 0x328   : > { %v8518_v3 = vadd.f32 %v2341_v26, %v9174_v60  ;;  %v8533_v60 = vpop.f32.mrf.mxu1 }
 0x32a   : > { %9175 = vst [vmem:[#allocation33_spill] sm:$0xff] %v8518_v3 }
 0x32e   : > { %v8538_v9 = vpop.f32.mrf.mxu2 }
 0x32f   : > { %v2343_v5 = vpop.f32.mrf.mxu3 }
 0x330   : > { %v8528_v23 = vadd.f32 %v2343_v5, %v9176_v35  ;;  %v8543_v5 = vpop.f32.mrf.mxu1  ;;  %v6363_v35 = vld [vmem:[#allocation2 + $0x54] sm:$0xff] }
 0x332   : > { %9177 = vst [vmem:[#allocation34_spill] sm:$0xff] %v8528_v23 }
 0x334   : > { %4038 = vmatmul.bf16.gmra.mxu3 %v6362_v37 }
 0x336   : > { %5184 = vmatmul.bf16.gmra.mxu1 %v8242_v4  ;;  %v8549_v23 = vpop.f32.mrf.mxu2 }
 0x337   : > { %v2346_v26 = vpop.f32.mrf.mxu3 }
 0x338   : > { %v8536_v12 = vadd.f32 %v2346_v26, %v8019_v47  ;;  %v6398_v47 = vld [vmem:[%s9030_s5] sm:$0xff]  ;;  %v8554_v26 = vpop.f32.mrf.mxu1 }
 0x339   : > { %5428 = vmatpush.bf16.msra.mxu2 %v6398_v47 }
 0x33a   : > { %9178 = vst [vmem:[#allocation36_spill] sm:$0xff] %v8536_v12 }
 0x33f   : > { %v2348_v29 = vpop.f32.mrf.mxu3 }
 0x340   : > { %v8541_v3 = vadd.f32 %v2348_v29, %v8059_v22 }
 0x342   : > { %9179 = vst [vmem:[#allocation38_spill] sm:$0xff] %v8541_v3  ;;  %v8559_v3 = vpop.f32.mrf.mxu2 }
 0x344   : > { %4043 = vmatmul.bf16.gmra.mxu3 %v6363_v35  ;;  %v6364_v35 = vld [vmem:[#allocation2 + $0x60] sm:$0xff] }
 0x346   : > { %5189 = vmatmul.bf16.gmra.mxu1 %v8283_v58  ;;  %v8561_v58 = vpop.f32.mrf.mxu1 }
 0x347   : > { %v2351_v37 = vpop.f32.mrf.mxu3 }
 0x348   : > { %v8547_v4 = vadd.f32 %v2351_v37, %v8093_v40 }
 0x34a   : > { %9180 = vst [vmem:[#allocation82_spill] sm:$0xff] %v8547_v4  ;;  %v8567_v4 = vpop.f32.mrf.mxu2 }
 0x34f   : > { %v2353_v22 = vpop.f32.mrf.mxu3 }
 0x350   : > { %v8557_v29 = vadd.f32 %v2353_v22, %v8145_v36  ;;  %v6365_v36 = vld [vmem:[#allocation2 + $0x6c] sm:$0xff] }
 0x352   : > { %9181 = vst [vmem:[#allocation83_spill] sm:$0xff] %v8557_v29  ;;  %v8572_v22 = vpop.f32.mrf.mxu2 }
 0x354   : > { %4048 = vmatmul.bf16.gmra.mxu3 %v6364_v35 }
 0x356   : > { %5194 = vmatmul.bf16.gmra.mxu1 %v8464_v32  ;;  %v9185_v32 = vld [vmem:[#allocation8_spill] sm:$0xff] }
 0x357   : > { %v2356_v40 = vpop.f32.mrf.mxu3  ;;  %v2679_v28 = vadd.f32 %v9185_v32, %v8292_v54  ;;  %v8590_v32 = vpop.f32.mrf.mxu0 }
 0x358   : > { %v8565_v37 = vadd.f32 %v2356_v40, %v8190_v42  ;;  %v9186_v42 = vld [vmem:[#allocation7_spill] sm:$0xff]  ;;  %v9187_v40 = vld [vmem:[#allocation6_spill] sm:$0xff] }
 0x35a   : > { %9182 = vst [vmem:[#allocation84_spill] sm:$0xff] %v8565_v37  ;;  %v1909_v37 = vadd.f32 %v9187_v40, %v9186_v42  ;;  %v8592_v42 = vpop.f32.mrf.mxu1 }
 0x35f   : > { %v2358_v12 = vpop.f32.mrf.mxu3 }
 0x360   : > { %v8570_v47 = vadd.f32 %v2358_v12, %v8232_v15  ;;  %v8584_v15 = vpop.f32.mrf.mxu2  ;;  %v2367_v12 = vadd.f32 %v8303_v38, %v1909_v37  ;;  %v9195_v37 = vld [vmem:[#allocation11_spill] sm:$0xff] }
 0x361   : > { %9189 = vst [vmem:[#allocation7_spill] sm:$0xff] %v8584_v15 }
 0x362   : > { %9183 = vst [vmem:[#allocation85_spill] sm:$0xff] %v8570_v47  ;;  %v9190_v47 = vld [vmem:[#allocation40_spill] sm:$0xff] }
 0x363   : > { %v3360_v52 = vadd.f32 %v9190_v47, %v2679_v28  ;;  %v2681_v28 = vadd.f32 %v9195_v37, %v8317_v45  ;;  %v9196_v47 = vld [vmem:[#allocation53_spill] sm:$0xff] }
 0x364   : > { %4053 = vmatmul.bf16.gmra.mxu3 %v6365_v36  ;;  %v6366_v36 = vld [vmem:[#allocation2 + $0x78] sm:$0xff] }
 0x367   : > { %v2361_v29 = vpop.f32.mrf.mxu3 }
 0x368   : > { %v8575_v35 = vadd.f32 %v2361_v29, %v8252_v20  ;;  %v9191_v20 = vld [vmem:[#allocation9_spill] sm:$0xff]  ;;  %v8595_v40 = vpop.f32.mrf.mxu2 }
 0x369   : > { %v2680_v29 = vadd.f32 %v9191_v20, %v2367_v12  ;;  %9194 = vst [vmem:[#allocation6_spill] sm:$0xff] %v8595_v40  ;;  %v8607_v20 = vpop.f32.mrf.mxu0  ;;  %v9200_v40 = vld [vmem:[#allocation46_spill] sm:$0xff] }
 0x36a   : > { %9184 = vst [vmem:[#allocation86_spill] sm:$0xff] %v8575_v35  ;;  %v9192_v35 = vld [vmem:[#allocation49_spill] sm:$0xff] }
 0x36b   : > { %v3785_v7 = vadd.f32 %v9192_v35, %v3360_v52 }
 0x36f   : > { %v2363_v39 = vpop.f32.mrf.mxu3 }
 0x370   : > { %v8582_v30 = vadd.f32 %v2363_v39, %v8271_v46  ;;  %v9193_v46 = vld [vmem:[#allocation42_spill] sm:$0xff] }
 0x371   : > { %v3361_v39 = vadd.f32 %v9193_v46, %v2680_v29  ;;  %v8611_v46 = vpop.f32.mrf.mxu1 }
 0x372   : > { %9188 = vst [vmem:[#allocation8_spill] sm:$0xff] %v8582_v30 }
 0x374   : > { %4058 = vmatmul.bf16.gmra.mxu3 %v6366_v36  ;;  %v3786_v36 = vadd.f32 %v9196_v47, %v3361_v39 }
 0x377   : > { %v4019_v54 = vpop.f32.mrf.mxu3 }
 0x378   : > { %v4099_v25 = vadd.f32 %v4019_v54, %v3785_v7  ;;  %v8605_v7 = vld [vmem:[%s9029_s4] ss:$0 sm:$0xff]  ;;  %v6367_v54 = vld [vmem:[#allocation2 + $0x84] sm:$0xff] }
 0x37a   : > { %v4780_v38 = vadd.f32 %v8350_v59, %v4099_v25  ;;  %v9197_v25 = vld [vmem:[#allocation44_spill] sm:$0xff] }
 0x37b   : > { %v3362_v59 = vadd.f32 %v9197_v25, %v2681_v28 }
 0x37c   : > { %v5205_v52 = vadd.f32 %v8514_v51, %v4780_v38  ;;  %v8615_v51 = vpop.f32.mrf.mxu2  ;;  %v9198_v38 = vld [vmem:[#allocation13_spill] sm:$0xff] }
 0x37d   : > { %v2682_v37 = vadd.f32 %v9198_v38, %v8332_v49  ;;  %v8627_v49 = vpop.f32.mrf.mxu1 }
 0x37e   : > { %v5241_v45 = vadd.f32 %v8605_v7, %v5205_v52  ;;  %v8622_v52 = vpop.f32.mrf.mxu0 }
 0x37f   : > { %v4021_v12 = vpop.f32.mrf.mxu3  ;;  %v3363_v15 = vadd.f32 %v9200_v40, %v2682_v37  ;;  %v6368_v37 = vld [vmem:[#allocation2 + $0x90] sm:$0xff] }
 0x380   : > { %v4100_v35 = vadd.f32 %v4021_v12, %v3786_v36  ;;  %v9199_v36 = vld [vmem:[#allocation56_spill] sm:$0xff] }
 0x381   : > { %v3787_v12 = vadd.f32 %v9199_v36, %v3362_v59  ;;  %v9203_v36 = vld [vmem:[#allocation50_spill] sm:$0xff] }
 0x382   : > { %v4781_v29 = vadd.f32 %v8367_v14, %v4100_v35  ;;  %v5273_v35 = vmax.f32 %v5241_v45, 0.0 }
 0x384   : > { %v5206_v39 = vadd.f32 %v8525_v61, %v4781_v29  ;;  %4063 = vmatmul.bf16.gmra.mxu3 %v6367_v54  ;;  %v9201_v29 = vld [vmem:[#allocation15_spill] sm:$0xff]  ;;  %v8630_v59 = vpop.f32.mrf.mxu2 }
 0x385   : > { %v2683_v54 = vadd.f32 %v9201_v29, %v8347_v50  ;;  %v8643_v29 = vpop.f32.mrf.mxu1 }
 0x386   : > { %v5242_v47 = vadd.f32 %v8605_v7, %v5206_v39  ;;  %v9202_v39 = vld [vmem:[#allocation59_spill] sm:$0xff] }
 0x387   : > { %v4024_v14 = vpop.f32.mrf.mxu3  ;;  %v3788_v38 = vadd.f32 %v9202_v39, %v3363_v15  ;;  %v8639_v15 = vpop.f32.mrf.mxu0 }
 0x388   : > { %v5274_v30 = vmax.f32 %v5242_v47, 0.0  ;;  %v4101_v28 = vadd.f32 %v4024_v14, %v3787_v12  ;;  %v3364_v12 = vadd.f32 %v9203_v36, %v2683_v54  ;;  %v9204_v14 = vld [vmem:[#allocation17_spill] sm:$0xff] }
 0x38a   : > { %v5305_v25 = vpack.c.bf16 %v5274_v30, %v5273_v35  ;;  %v4782_v61 = vadd.f32 %v8383_v18, %v4101_v28  ;;  %v2684_v35 = vadd.f32 %v9204_v14, %v8357_v44  ;;  %v9205_v28 = vld [vmem:[#allocation62_spill] sm:$0xff]  ;;  %v9207_v44 = vld [vmem:[#allocation19_spill] sm:$0xff] }
 0x38c   : > { %5429 = vmatmul.bf16.vlgmr.msra.gmra.mxu2 %v5305_v25  ;;  %v5207_v47 = vadd.f32 %v8533_v60, %v4782_v61  ;;  %v3789_v25 = vadd.f32 %v9205_v28, %v3364_v12 }
 0x38d   : > { %v8655_v28 = vpop.f32.mrf.mxu1 }
 0x38e   : > { %v5243_v50 = vadd.f32 %v8605_v7, %v5207_v47 }
 0x38f   : > { %v4026_v45 = vpop.f32.mrf.mxu3 }
 0x390   : > { %v4102_v30 = vadd.f32 %v4026_v45, %v3788_v38  ;;  %v5275_v39 = vmax.f32 %v5243_v50, 0.0  ;;  %v8645_v38 = vpop.f32.mrf.mxu2  ;;  %v9206_v45 = vld [vmem:[#allocation52_spill] sm:$0xff] }
 0x391   : > { %v3365_v47 = vadd.f32 %v9206_v45, %v2684_v35  ;;  %v9209_v35 = vld [vmem:[#allocation55_spill] sm:$0xff] }
 0x392   : > { %v4783_v40 = vadd.f32 %v8402_v48, %v4102_v30 }
 0x394   : > { %v5208_v18 = vadd.f32 %v8543_v5, %v4783_v40  ;;  %4068 = vmatmul.bf16.gmra.mxu3 %v6368_v37  ;;  %v2685_v40 = vadd.f32 %v9207_v44, %v8371_v53  ;;  %v9208_v37 = vld [vmem:[#allocation65_spill] sm:$0xff] }
 0x395   : > { %v3790_v36 = vadd.f32 %v9208_v37, %v3365_v47 }
 0x396   : > { %v5244_v60 = vadd.f32 %v8605_v7, %v5208_v18  ;;  %v8652_v18 = vpop.f32.mrf.mxu0 }
 0x397   : > { %v4029_v61 = vpop.f32.mrf.mxu3 }
 0x398   : > { %v4103_v48 = vadd.f32 %v4029_v61, %v3789_v25  ;;  %v5276_v54 = vmax.f32 %v5244_v60, 0.0  ;;  %v6369_v60 = vld [vmem:[#allocation2 + $0x9c] sm:$0xff]  ;;  %v3366_v61 = vadd.f32 %v9209_v35, %v2685_v40 }
 0x39a   : > { %v5306_v5 = vpack.c.bf16 %v5276_v54, %v5275_v39  ;;  %v4784_v30 = vadd.f32 %v8419_v21, %v4103_v48  ;;  %v8659_v21 = vpop.f32.mrf.mxu2  ;;  %v9210_v39 = vld [vmem:[#allocation21_spill] sm:$0xff] }
 0x39b   : > { %v2686_v54 = vadd.f32 %v9210_v39, %v8386_v13  ;;  %v9213_v13 = vld [vmem:[#allocation24_spill] sm:$0xff] }
 0x39c   : > { %5434 = vmatmul.bf16.gmra.mxu2 %v5306_v5  ;;  %v5209_v14 = vadd.f32 %v8554_v26, %v4784_v30  ;;  %v9211_v5 = vld [vmem:[#allocation68_spill] sm:$0xff] }
 0x39d   : > { %v3791_v26 = vadd.f32 %v9211_v5, %v3366_v61  ;;  %v6370_v39 = vld [vmem:[#allocation2 + $0xa8] sm:$0xff] }
 0x39e   : > { %v5245_v53 = vadd.f32 %v8605_v7, %v5209_v14  ;;  %v8667_v37 = vpop.f32.mrf.mxu0 }
 0x39f   : > { %v4031_v12 = vpop.f32.mrf.mxu3 }
 0x3a0   : > { %v4104_v50 = vadd.f32 %v4031_v12, %v3790_v36  ;;  %v9212_v36 = vld [vmem:[#allocation57_spill] sm:$0xff] }
 0x3a1   : > { %v3367_v12 = vadd.f32 %v9212_v36, %v2686_v54  ;;  %v9214_v54 = vld [vmem:[#allocation60_spill] sm:$0xff] }
 0x3a2   : > { %v4785_v25 = vadd.f32 %v8438_v8, %v4104_v50  ;;  %v5277_v8 = vmax.f32 %v5245_v53, 0.0  ;;  %v8673_v50 = vpop.f32.mrf.mxu2 }
 0x3a4   : > { %v5210_v48 = vadd.f32 %v8561_v58, %v4785_v25  ;;  %4073 = vmatmul.bf16.gmra.mxu3 %v6369_v60  ;;  %v8670_v58 = vpop.f32.mrf.mxu1  ;;  %v2687_v25 = vadd.f32 %v9213_v13, %v8405_v11  ;;  %v3792_v60 = vadd.f32 %v8187_v43, %v3367_v12  ;;  %v9215_v11 = vld [vmem:[#allocation26_spill] sm:$0xff]  ;;  %v9217_v13 = vld [vmem:[#allocation28_spill] sm:$0xff] }
 0x3a6   : > { %v5246_v45 = vadd.f32 %v8605_v7, %v5210_v48  ;;  %v3368_v5 = vadd.f32 %v9214_v54, %v2687_v25  ;;  %v2689_v25 = vadd.f32 %v9217_v13, %v8427_v34  ;;  %v6371_v34 = vld [vmem:[#allocation2 + $0xb4] sm:$0xff] }
 0x3a7   : > { %v4034_v47 = vpop.f32.mrf.mxu3 }
 0x3a8   : > { %v4105_v30 = vadd.f32 %v4034_v47, %v3791_v26  ;;  %v5278_v44 = vmax.f32 %v5246_v45, 0.0  ;;  %v8681_v26 = vpop.f32.mrf.mxu0  ;;  %v2688_v47 = vadd.f32 %v9215_v11, %v8417_v1 }
 0x3aa   : > { %v5307_v40 = vpack.c.bf16 %v5278_v44, %v5277_v8  ;;  %v4786_v14 = vadd.f32 %v8590_v32, %v4105_v30 }
 0x3ac   : > { %5439 = vmatmul.bf16.gmra.mxu2 %v5307_v40  ;;  %v5211_v61 = vadd.f32 %v8592_v42, %v4786_v14  ;;  %v8687_v43 = vpop.f32.mrf.mxu1  ;;  %v3793_v42 = vadd.f32 %v8512_v57, %v3368_v5 }
 0x3ae   : > { %v5247_v45 = vadd.f32 %v8605_v7, %v5211_v61 }
 0x3af   : > { %v4036_v35 = vpop.f32.mrf.mxu3 }
 0x3b0   : > { %v4106_v48 = vadd.f32 %v4036_v35, %v3792_v60  ;;  %v5279_v40 = vmax.f32 %v5247_v45, 0.0  ;;  %v8697_v60 = vpop.f32.mrf.mxu0 }
 0x3b2   : > { %v4787_v53 = vadd.f32 %v8607_v20, %v4106_v48  ;;  %v8691_v20 = vpop.f32.mrf.mxu2 }
 0x3b4   : > { %v5212_v32 = vadd.f32 %v8611_v46, %v4787_v53  ;;  %4078 = vmatmul.bf16.gmra.mxu3 %v6370_v39  ;;  %v9216_v46 = vld [vmem:[#allocation63_spill] sm:$0xff]  ;;  %v8700_v61 = vpop.f32.mrf.mxu1  ;;  %v9218_v39 = vld [vmem:[#allocation66_spill] sm:$0xff] }
 0x3b5   : > { %v3369_v14 = vadd.f32 %v9216_v46, %v2688_v47  ;;  %v3370_v54 = vadd.f32 %v9218_v39, %v2689_v25  ;;  %v4827_v46 = vld [vmem:[#allocation2 + $0xcc] sm:$0xe] }
 0x3b6   : > { %v5248_v30 = vadd.f32 %v8605_v7, %v5212_v32  ;;  %v6206_v39 = vrot.slane %v4827_v46, 9  ;;  %v9221_v46 = vld [vmem:[#allocation32_spill] sm:$0xff] }
 0x3b7   : > { %v4039_v8 = vpop.f32.mrf.mxu3  ;;  %v3794_v57 = vadd.f32 %v8520_v16, %v3369_v14  ;;  %v3795_v16 = vadd.f32 %v8530_v27, %v3370_v54 }
 0x3b8   : > { %v4107_v44 = vadd.f32 %v4039_v8, %v3793_v42  ;;  %v5280_v36 = vmax.f32 %v5248_v30, 0.0  ;;  %v4176_v42 = vld [vmem:[#allocation2 + $0xcc] sm:$0xf]  ;;  %v4178_v30 = vld [vmem:[#allocation2 + $0xd4] sm:$0x1] }
 0x3b9   : > { %v4540_v8 = vshrl.u32 %v4176_v42, 16 }
 0x3ba   : > { %v5308_v12 = vpack.c.bf16 %v5280_v36, %v5279_v40  ;;  %v4788_v1 = vadd.f32 %v8622_v52, %v4107_v44  ;;  %v8704_v5 = vpop.f32.mrf.mxu2  ;;  %v9219_v52 = vld [vmem:[#allocation30_spill] sm:$0xff]  ;;  %v4543_v44 = vshll.u32 %v4176_v42, 16 }
 0x3bb   : > { %v2690_v45 = vadd.f32 %v9219_v52, %v8441_v33  ;;  %v4986_v33 = vrot.slane %v4178_v30, 5 }
 0x3bc   : > { %5444 = vmatmul.bf16.gmra.mxu2 %v5308_v12  ;;  %v5213_v48 = vadd.f32 %v8627_v49, %v4788_v1  ;;  %v4177_v49 = vld [vmem:[#allocation2 + $0xd0] sm:$0xf]  ;;  %v4559_v12 = vshll.u32 %v4178_v30, 16  ;;  %v4545_v25 = vrot.slane %v4543_v44, 5 }
 0x3bd   : > { %v4549_v40 = vshll.u32 %v4177_v49, 16  ;;  %v4553_v36 = vshrl.u32 %v4177_v49, 16  ;;  %v4983_v14 = vrot.slane %v4177_v49, 5  ;;  %v9220_v49 = vld [vmem:[#allocation69_spill] sm:$0xff] }
 0x3be   : > { %v5249_v47 = vadd.f32 %v8605_v7, %v5213_v48  ;;  %v3371_v30 = vadd.f32 %v9220_v49, %v2690_v45 }
 0x3bf   : > { %v4041_v35 = vpop.f32.mrf.mxu3  ;;  %v4551_v1 = vrot.slane %v4549_v40, 5  ;;  %v4555_v27 = vrot.slane %v4553_v36, 4  ;;  %v4985_v52 = vrot.slane %v4983_v14, 4 }
 0x3c0   : > { %v4108_v53 = vadd.f32 %v4041_v35, %v3794_v57  ;;  %v8713_v57 = vpop.f32.mrf.mxu0  ;;  %v5281_v48 = vmax.f32 %v5249_v47, 0.0 }
 0x3c2   : > { %v4789_v32 = vadd.f32 %v8639_v15, %v4108_v53  ;;  %v8720_v44 = vpop.f32.mrf.mxu2 }
 0x3c4   : > { %v5214_v11 = vadd.f32 %v8643_v29, %v4789_v32  ;;  %4083 = vmatmul.bf16.gmra.mxu3 %v6371_v34  ;;  %v4542_v29 = vrot.slane %v4540_v8, 4  ;;  %v4556_v32 = vor.u32 %v4555_v27, %v4551_v1  ;;  %v4561_v34 = vrot.slane %v4559_v12, 5 }
 0x3c5   : > { %v4984_v8 = vsel %vm7043_vm15, %v6206_v39, %v4983_v14  ;;  %v6372_v39 = vld [vmem:[#allocation2 + $0xc0] sm:$0xff] }
 0x3c6   : > { %v5250_v15 = vadd.f32 %v8605_v7, %v5214_v11  ;;  %v4546_v54 = vor.u32 %v4545_v25, %v4542_v29  ;;  %v8715_v11 = vpop.f32.mrf.mxu1  ;;  %v4557_v36 = vrot.slane %v4556_v32, 4  ;;  %v5034_v47 = vunpack.c.l.b16 %v4984_v8 }
 0x3c7   : > { %v4044_v13 = vpop.f32.mrf.mxu3  ;;  %v3796_v29 = vadd.f32 %v8538_v9, %v3371_v30 }
 0x3c8   : > { %v4109_v35 = vadd.f32 %v4044_v13, %v3795_v16  ;;  %v5282_v53 = vmax.f32 %v5250_v15, 0.0  ;;  %v4547_v40 = vrot.slane %v4546_v54, 4  ;;  %v4987_v16 = vsel %vm7043_vm15, %v4985_v52, %v4986_v33 }
 0x3c9   : > { %v5035_v12 = vunpack.c.l.b16 %v4987_v16  ;;  %v2691_v13 = vadd.f32 %v9221_v46, %v8447_v17  ;;  %v4562_v14 = vsel %vm6779_vm8, %v4557_v36, %v4561_v34  ;;  %v9223_v16 = vld [vmem:[#allocation37_spill] sm:$0xff] }
 0x3ca   : > { %v5309_v42 = vpack.c.bf16 %v5282_v53, %v5281_v48  ;;  %v4790_v15 = vadd.f32 %v8652_v18, %v4109_v35  ;;  %v4552_v45 = vsel %vm6779_vm8, %v4547_v40, %v4551_v1  ;;  %v4610_v27 = vunpack.c.l.b16 %v4562_v14  ;;  %v4737_v53 = vpop.f32.mrf.mxu0  ;;  %v8737_v32 = vpop.f32.mrf.mxu2 }
 0x3cb   : > { %v4609_v25 = vunpack.c.l.b16 %v4552_v45  ;;  %v5051_v19 = vpack.c.b16 %v5035_v12, %v5034_v47  ;;  %v3372_v1 = vadd.f32 %v8212_v31, %v2691_v13  ;;  %v2693_v47 = vadd.f32 %v9223_v16, %v8470_v24  ;;  %v6373_v45 = vld [vmem:[#allocation2 + $0xcc] sm:$0xff]  ;;  %v9224_v24 = vld [vmem:[#allocation39_spill] sm:$0xff] }
 0x3cc   : > { %5449 = vmatmul.bf16.gmra.mxu2 %v5309_v42  ;;  %v5215_v48 = vadd.f32 %v8655_v28, %v4790_v15  ;;  %v9222_v28 = vld [vmem:[#allocation35_spill] sm:$0xff] }
 0x3cd   : > { %v4626_v35 = vpack.c.b16 %v4610_v27, %v4609_v25  ;;  %5199 = vmatmul.bf16.gmra.mxu1 %v5051_v19  ;;  %v2692_v34 = vadd.f32 %v9222_v28, %v8462_v62  ;;  %v3797_v52 = vadd.f32 %v8549_v23, %v3372_v1  ;;  %v2694_v25 = vadd.f32 %v9224_v24, %v8476_v55  ;;  %v9225_v55 = vld [vmem:[#allocation41_spill] sm:$0xff] }
 0x3ce   : > { %v5162_v0 = vpop.f32.mrf.mxu1  ;;  %v5251_v9 = vadd.f32 %v8605_v7, %v5215_v48 }
 0x3cf   : > { %v4046_v33 = vpop.f32.mrf.mxu3  ;;  %4774 = vmatmul.bf16.gmra.mxu0 %v4626_v35  ;;  %v3373_v40 = vadd.f32 %v8247_v2, %v2692_v34  ;;  %v3374_v2 = vadd.f32 %v8268_v63, %v2693_v47  ;;  %v9228_v47 = vld [vmem:[#allocation76_spill] sm:$0xff] }
 0x3d0   : > { %v4110_v18 = vadd.f32 %v4046_v33, %v3796_v29  ;;  %v5283_v30 = vmax.f32 %v5251_v9, 0.0 }
 0x3d1   : > { %v3798_v62 = vadd.f32 %v8559_v3, %v3373_v40  ;;  %v3799_v27 = vadd.f32 %v8567_v4, %v3374_v2 }
 0x3d2   : > { %v4791_v17 = vadd.f32 %v8667_v37, %v4110_v18  ;;  %v8748_v23 = vpop.f32.mrf.mxu2 }
 0x3d4   : > { %v5216_v54 = vadd.f32 %v8670_v58, %v4791_v17  ;;  %4088 = vmatmul.bf16.gmra.mxu3 %v6372_v39  ;;  %v4740_v58 = vpop.f32.mrf.mxu0  ;;  %v2695_v39 = vadd.f32 %v9225_v55, %v8482_v56  ;;  %v9227_v56 = vld [vmem:[#allocation7_spill] sm:$0xff] }
 0x3d6   : > { %v5252_v42 = vadd.f32 %v8605_v7, %v5216_v54  ;;  %v5165_v15 = vpop.f32.mrf.mxu1 }
 0x3d7   : > { %v4049_v37 = vpop.f32.mrf.mxu3 }
 0x3d8   : > { %v4111_v49 = vadd.f32 %v4049_v37, %v3797_v52  ;;  %v5284_v31 = vmax.f32 %v5252_v42, 0.0  ;;  %v3376_v42 = vadd.f32 %v8309_v6, %v2695_v39 }
 0x3da   : > { %v5310_v8 = vpack.c.bf16 %v5284_v31, %v5283_v30  ;;  %v4792_v36 = vadd.f32 %v8681_v26, %v4111_v49  ;;  %v8759_v35 = vpop.f32.mrf.mxu2  ;;  %v9226_v49 = vld [vmem:[#allocation45_spill] sm:$0xff]  ;;  %v3801_v31 = vadd.f32 %v9227_v56, %v3376_v42  ;;  %v9236_v42 = vld [vmem:[#allocation27_spill] sm:$0xff] }
 0x3db   : > { %v2696_v30 = vadd.f32 %v9226_v49, %v8487_v10  ;;  %v5337_v56 = vld [vmem:[%s6666_s19] sm:$0xff] }
 0x3dc   : > { %5454 = vmatmul.bf16.gmra.mxu2 %v5310_v8  ;;  %v5217_v46 = vadd.f32 %v8687_v43, %v4792_v36  ;;  %v4742_v3 = vpop.f32.mrf.mxu0 }
 0x3dd   : > { %v3377_v6 = vadd.f32 %v9228_v47, %v2696_v30 }
 0x3de   : > { %v5253_v29 = vadd.f32 %v8605_v7, %v5217_v46  ;;  %v5167_v33 = vpop.f32.mrf.mxu1  ;;  %v9229_v46 = vld [vmem:[#allocation22_spill] sm:$0xff] }
 0x3df   : > { %v4051_v12 = vpop.f32.mrf.mxu3 }
 0x3e0   : > { %v4112_v13 = vadd.f32 %v4051_v12, %v3798_v62  ;;  %v5285_v18 = vmax.f32 %v5253_v29, 0.0 }
 0x3e2   : > { %v4793_v14 = vadd.f32 %v8697_v60, %v4112_v13  ;;  %v8768_v37 = vpop.f32.mrf.mxu2  ;;  %v9230_v13 = vld [vmem:[#allocation47_spill] sm:$0xff] }
 0x3e3   : > { %v2697_v10 = vadd.f32 %v9230_v13, %v9229_v46  ;;  %v9240_v13 = vld [vmem:[#allocation58_spill] sm:$0xff] }
 0x3e4   : > { %v5218_v26 = vadd.f32 %v8700_v61, %v4793_v14  ;;  %4093 = vmatmul.bf16.gmra.mxu3 %v6373_v45  ;;  %v3375_v61 = vadd.f32 %v8294_v41, %v2694_v25  ;;  %v4745_v54 = vpop.f32.mrf.mxu0  ;;  %v9231_v45 = vld [vmem:[#allocation6_spill] sm:$0xff] }
 0x3e5   : > { %v3802_v14 = vadd.f32 %v9231_v45, %v3377_v6  ;;  %v9232_v25 = vld [vmem:[#allocation78_spill] sm:$0xff] }
 0x3e6   : > { %v5254_v19 = vadd.f32 %v8605_v7, %v5218_v26  ;;  %v3800_v4 = vadd.f32 %v8572_v22, %v3375_v61  ;;  %v5170_v34 = vpop.f32.mrf.mxu1 }
 0x3e7   : > { %v4054_v43 = vpop.f32.mrf.mxu3 }
 0x3e8   : > { %v4113_v48 = vadd.f32 %v4054_v43, %v3799_v27  ;;  %v5286_v60 = vmax.f32 %v5254_v19, 0.0  ;;  %v3378_v27 = vadd.f32 %v9232_v25, %v2697_v10 }
 0x3ea   : > { %v5311_v63 = vpack.c.bf16 %v5286_v60, %v5285_v18  ;;  %v4794_v17 = vadd.f32 %v8713_v57, %v4113_v48  ;;  %v9234_v18 = vld [vmem:[#allocation51_spill] sm:$0xff]  ;;  %v3803_v61 = vadd.f32 %v8615_v51, %v3378_v27 }
 0x3ec   : > { %5459 = vmatmul.bf16.gmra.mxu2 %v5311_v63  ;;  %v5219_v9 = vadd.f32 %v8715_v11, %v4794_v17  ;;  %v4747_v16 = vpop.f32.mrf.mxu0 }
 0x3ee   : > { %v5255_v57 = vadd.f32 %v8605_v7, %v5219_v9  ;;  %v5172_v62 = vpop.f32.mrf.mxu1 }
 0x3ef   : > { %v4056_v1 = vpop.f32.mrf.mxu3 }
 0x3f0   : > { %v4114_v28 = vadd.f32 %v4056_v1, %v3800_v4  ;;  %v5287_v11 = vmax.f32 %v5255_v57, 0.0  ;;  %v9235_v1 = vld [vmem:[#allocation79_spill] sm:$0xff] }
 0x3f2   : > { %v4795_v52 = vadd.f32 %v4737_v53, %v4114_v28 }
 0x3f4   : > { %v5220_v41 = vadd.f32 %v5162_v0, %v4795_v52  ;;  %v8776_v0 = vpop.f32.mrf.mxu2  ;;  %v4750_v19 = vpop.f32.mrf.mxu0  ;;  %v8793_v52 = vld [vmem:[%s9031_s6] ss:$0 sm:$0xff] }
 0x3f6   : > { %v5256_v22 = vadd.f32 %v8605_v7, %v5220_v41  ;;  %v5175_v63 = vpop.f32.mrf.mxu1  ;;  %v9237_v41 = vld [vmem:[#allocation54_spill] sm:$0xff] }
 0x3f7   : > { %v4059_v8 = vpop.f32.mrf.mxu3  ;;  %v2699_v57 = vadd.f32 %v9237_v41, %v9236_v42 }
 0x3f8   : > { %v4115_v40 = vadd.f32 %v4059_v8, %v3801_v31  ;;  %v5288_v36 = vmax.f32 %v5256_v22, 0.0 }
 0x3fa   : > { %v5312_v53 = vpack.c.bf16 %v5288_v36, %v5287_v11  ;;  %v4796_v12 = vadd.f32 %v4740_v58, %v4115_v40  ;;  %v9233_v58 = vld [vmem:[#allocation25_spill] sm:$0xff] }
 0x3fb   : > { %v2698_v60 = vadd.f32 %v9234_v18, %v9233_v58  ;;  %v9241_v58 = vld [vmem:[#allocation81_spill] sm:$0xff] }
 0x3fc   : > { %5464 = vmatmul.bf16.gmra.mxu2 %v5312_v53  ;;  %v5221_v26 = vadd.f32 %v5165_v15, %v4796_v12  ;;  %v8787_v55 = vpop.f32.mrf.mxu2  ;;  %v4752_v51 = vpop.f32.mrf.mxu0  ;;  %v9238_v53 = vld [vmem:[#allocation80_spill] sm:$0xff] }
 0x3fd   : > { %v3379_v9 = vadd.f32 %v9235_v1, %v2698_v60  ;;  %v3380_v47 = vadd.f32 %v9238_v53, %v2699_v57  ;;  %v9244_v57 = vld [vmem:[#allocation10_spill] sm:$0xff] }
 0x3fe   : > { %v5257_v48 = vadd.f32 %v8605_v7, %v5221_v26  ;;  %v5177_v22 = vpop.f32.mrf.mxu1 }
 0x3ff   : > { %v4061_v2 = vpop.f32.mrf.mxu3  ;;  %v3804_v49 = vadd.f32 %v8630_v59, %v3379_v9  ;;  %v9239_v59 = vld [vmem:[#allocation31_spill] sm:$0xff] }
 0x400   : > { %v4116_v29 = vadd.f32 %v4061_v2, %v3802_v14  ;;  %v5289_v39 = vmax.f32 %v5257_v48, 0.0  ;;  %v2700_v10 = vadd.f32 %v9240_v13, %v9239_v59  ;;  %v5338_v14 = vld [vmem:[%s6666_s19 + $0x8] sm:$0xff] }
 0x401   : > { %v9247_v13 = vld [vmem:[#allocation12_spill] sm:$0xff] }
 0x402   : > { %v4797_v24 = vadd.f32 %v4742_v3, %v4116_v29  ;;  %v3381_v18 = vadd.f32 %v9241_v58, %v2700_v10 }
 0x404   : > { %v5222_v43 = vadd.f32 %v5167_v33, %v4797_v24 }
 0x406   : > { %v5258_v17 = vadd.f32 %v8605_v7, %v5222_v43  ;;  %v5180_v27 = vpop.f32.mrf.mxu1 }
 0x407   : > { %v4064_v15 = vpop.f32.mrf.mxu3 }
 0x408   : > { %v4117_v3 = vadd.f32 %v4064_v15, %v3803_v61  ;;  %v5290_v4 = vmax.f32 %v5258_v17, 0.0  ;;  %v9242_v61 = vld [vmem:[#allocation33_spill] sm:$0xff] }
 0x409   : > { %v9243_v17 = vld [vmem:[#allocation61_spill] sm:$0xff] }
 0x40a   : > { %v5313_v33 = vpack.c.bf16 %v5290_v4, %v5289_v39  ;;  %v4798_v28 = vadd.f32 %v4745_v54, %v4117_v3  ;;  %v2701_v15 = vadd.f32 %v9243_v17, %v9242_v61  ;;  %v3806_v3 = vadd.f32 %v8659_v21, %v3381_v18  ;;  %v5339_v4 = vld [vmem:[%s6666_s19 + $0x10] sm:$0xff]  ;;  %v9245_v21 = vld [vmem:[#allocation34_spill] sm:$0xff] }
 0x40c   : > { %5469 = vmatmul.bf16.gmra.mxu2 %v5313_v33  ;;  %v5223_v8 = vadd.f32 %v5170_v34, %v4798_v28  ;;  %v3805_v34 = vadd.f32 %v8645_v38, %v3380_v47 }
 0x40e   : > { %v5259_v46 = vadd.f32 %v8605_v7, %v5223_v8 }
 0x40f   : > { %v4066_v30 = vpop.f32.mrf.mxu3  ;;  %v5430_v31 = vpop.f32.mrf.mxu2 }
 0x410   : > { %v4118_v54 = vadd.f32 %v4066_v30, %v3804_v49  ;;  %v5431_v40 = vadd.f32 %v8793_v52, %v5430_v31  ;;  %v5291_v24 = vmax.f32 %v5259_v46, 0.0  ;;  %v3382_v49 = vadd.f32 %v9244_v57, %v2701_v15  ;;  %v5182_v30 = vpop.f32.mrf.mxu1 }
 0x412   : > { %v4799_v11 = vadd.f32 %v4747_v16, %v4118_v54  ;;  %v5510_v36 = vadd.f32 %v5431_v40, %v5337_v56  ;;  %v9246_v54 = vld [vmem:[#allocation64_spill] sm:$0xff] }
 0x413   : > { %v2702_v40 = vadd.f32 %v9246_v54, %v9245_v21 }
 0x414   : > { %v5224_v6 = vadd.f32 %v5172_v62, %v4799_v11  ;;  %v5542_v12 = vmax.f32 %v5510_v36, 0.0  ;;  %v4755_v62 = vpop.f32.mrf.mxu0 }
 0x415   : > { %v3383_v10 = vadd.f32 %v9247_v13, %v2702_v40 }
 0x416   : > { %5574 = vst.msk [vmem:[%s8807_s23] sm:$0xff] %vm447_vm0, %v5542_v12  ;;  %v5260_v45 = vadd.f32 %v8605_v7, %v5224_v6 }
 0x417   : > { %v4069_v16 = vpop.f32.mrf.mxu3  ;;  %v5432_v2 = vpop.f32.mrf.mxu2 }
 0x418   : > { %v4119_v26 = vadd.f32 %v4069_v16, %v3805_v34  ;;  %v5433_v29 = vadd.f32 %v8793_v52, %v5432_v2  ;;  %v5292_v25 = vmax.f32 %v5260_v45, 0.0 }
 0x41a   : > { %v5511_v43 = vadd.f32 %v5433_v29, %v5338_v14  ;;  %v5314_v48 = vpack.c.bf16 %v5292_v25, %v5291_v24  ;;  %v4800_v60 = vadd.f32 %v4750_v19, %v4119_v26  ;;  %v9249_v14 = vld [vmem:[#allocation67_spill] sm:$0xff]  ;;  %v5185_v26 = vpop.f32.mrf.mxu1  ;;  %v3808_v29 = vadd.f32 %v8691_v20, %v3383_v10 }
 0x41b   : > { %v5341_v25 = vld [vmem:[%s6666_s19 + $0x20] sm:$0xff] }
 0x41c   : > { %v5543_v38 = vmax.f32 %v5511_v43, 0.0  ;;  %5474 = vmatmul.bf16.gmra.mxu2 %v5314_v48  ;;  %v5225_v1 = vadd.f32 %v5175_v63, %v4800_v60  ;;  %v4757_v42 = vpop.f32.mrf.mxu0  ;;  %v3807_v63 = vadd.f32 %v8673_v50, %v3382_v49  ;;  %v9248_v50 = vld [vmem:[#allocation36_spill] sm:$0xff] }
 0x41d   : > { %v2703_v2 = vadd.f32 %v9249_v14, %v9248_v50 }
 0x41e   : > { %5575 = vst.msk [vmem:[%s8807_s23 + $0x8] sm:$0xff] %vm447_vm0, %v5543_v38  ;;  %v5261_v8 = vadd.f32 %v8605_v7, %v5225_v1  ;;  %v9250_v38 = vld [vmem:[#allocation43_spill] sm:$0xff] }
 0x41f   : > { %v4071_v39 = vpop.f32.mrf.mxu3  ;;  %v5435_v33 = vpop.f32.mrf.mxu2  ;;  %v3384_v61 = vadd.f32 %v9250_v38, %v2703_v2  ;;  %v9258_v2 = vld [vmem:[#allocation72_spill] sm:$0xff] }
 0x420   : > { %v4120_v9 = vadd.f32 %v4071_v39, %v3806_v3  ;;  %v5436_v28 = vadd.f32 %v8793_v52, %v5435_v33  ;;  %v5293_v6 = vmax.f32 %v5261_v8, 0.0  ;;  %v9252_v33 = vld [vmem:[#allocation70_spill] sm:$0xff] }
 0x421   : > { %v3809_v1 = vadd.f32 %v8704_v5, %v3384_v61  ;;  %v9253_v8 = vld [vmem:[#allocation14_spill] sm:$0xff] }
 0x422   : > { %v4801_v19 = vadd.f32 %v4752_v51, %v4120_v9  ;;  %v5512_v41 = vadd.f32 %v5436_v28, %v5339_v4  ;;  %v5340_v51 = vld [vmem:[%s6666_s19 + $0x18] sm:$0xff]  ;;  %v5342_v28 = vld [vmem:[%s6666_s19 + $0x28] sm:$0xff] }
 0x423   : > { %v9251_v4 = vld [vmem:[#allocation38_spill] sm:$0xff] }
 0x424   : > { %v5226_v56 = vadd.f32 %v5177_v22, %v4801_v19  ;;  %v5544_v31 = vmax.f32 %v5512_v41, 0.0  ;;  %v4760_v34 = vpop.f32.mrf.mxu0  ;;  %v2704_v20 = vadd.f32 %v9252_v33, %v9251_v4  ;;  %v5187_v19 = vpop.f32.mrf.mxu1  ;;  %v9254_v5 = vld [vmem:[#allocation82_spill] sm:$0xff]  ;;  %v9260_v33 = vld [vmem:[#allocation84_spill] sm:$0xff] }
 0x426   : > { %5576 = vst.msk [vmem:[%s8807_s23 + $0x10] sm:$0xff] %vm447_vm0, %v5544_v31  ;;  %v5262_v11 = vadd.f32 %v8605_v7, %v5226_v56  ;;  %v3385_v21 = vadd.f32 %v9253_v8, %v2704_v20  ;;  %v9261_v20 = vld [vmem:[#allocation73_spill] sm:$0xff] }
 0x427   : > { %v4074_v36 = vpop.f32.mrf.mxu3  ;;  %v5437_v53 = vpop.f32.mrf.mxu2 }
 0x428   : > { %v4121_v47 = vadd.f32 %v4074_v36, %v3807_v63  ;;  %v5438_v22 = vadd.f32 %v8793_v52, %v5437_v53  ;;  %v5294_v12 = vmax.f32 %v5262_v11, 0.0  ;;  %v9255_v63 = vld [vmem:[#allocation71_spill] sm:$0xff]  ;;  %v3810_v36 = vadd.f32 %v8720_v44, %v3385_v21  ;;  %v5343_v53 = vld [vmem:[%s6666_s19 + $0x30] sm:$0xff] }
 0x429   : > { %v2705_v11 = vadd.f32 %v9255_v63, %v9254_v5  ;;  %v9257_v44 = vld [vmem:[#allocation83_spill] sm:$0xff]  ;;  %v9263_v5 = vld [vmem:[#allocation85_spill] sm:$0xff] }
 0x42a   : > { %v5513_v46 = vadd.f32 %v5438_v22, %v5340_v51  ;;  %v5315_v59 = vpack.c.bf16 %v5294_v12, %v5293_v6  ;;  %v4802_v45 = vadd.f32 %v4755_v62, %v4121_v47 }
 0x42c   : > { %v5545_v16 = vmax.f32 %v5513_v46, 0.0  ;;  %5479 = vmatmul.bf16.gmra.mxu2 %v5315_v59  ;;  %v5227_v48 = vadd.f32 %v5180_v27, %v4802_v45  ;;  %v4762_v39 = vpop.f32.mrf.mxu0  ;;  %v5190_v59 = vpop.f32.mrf.mxu1 }
 0x42e   : > { %5577 = vst.msk [vmem:[%s8807_s23 + $0x18] sm:$0xff] %vm447_vm0, %v5545_v16  ;;  %v5263_v3 = vadd.f32 %v8605_v7, %v5227_v48 }
 0x42f   : > { %v4076_v24 = vpop.f32.mrf.mxu3  ;;  %v5440_v43 = vpop.f32.mrf.mxu2 }
 0x430   : > { %v4122_v58 = vadd.f32 %v4076_v24, %v3808_v29  ;;  %v5441_v18 = vadd.f32 %v8793_v52, %v5440_v43  ;;  %v5295_v49 = vmax.f32 %v5263_v3, 0.0  ;;  %v2706_v29 = vadd.f32 %v9258_v2, %v9257_v44  ;;  %v5344_v43 = vld [vmem:[%s6666_s19 + $0x38] sm:$0xff]  ;;  %v9267_v44 = vld [vmem:[#allocation75_spill] sm:$0xff] }
 0x432   : > { %v4803_v62 = vadd.f32 %v4757_v42, %v4122_v58  ;;  %v5514_v60 = vadd.f32 %v5441_v18, %v5341_v25 }
 0x434   : > { %v5228_v17 = vadd.f32 %v5182_v30, %v4803_v62  ;;  %v5546_v15 = vmax.f32 %v5514_v60, 0.0  ;;  %v4765_v22 = vpop.f32.mrf.mxu0 }
 0x436   : > { %5578 = vst.msk [vmem:[%s8807_s23 + $0x20] sm:$0xff] %vm447_vm0, %v5546_v15  ;;  %v5264_v27 = vadd.f32 %v8605_v7, %v5228_v17  ;;  %v9259_v15 = vld [vmem:[#allocation48_spill] sm:$0xff] }
 0x437   : > { %v4079_v9 = vpop.f32.mrf.mxu3  ;;  %v5442_v42 = vpop.f32.mrf.mxu2  ;;  %v3387_v3 = vadd.f32 %v9259_v15, %v2706_v29 }
 0x438   : > { %v4123_v41 = vadd.f32 %v4079_v9, %v3809_v1  ;;  %v5443_v57 = vadd.f32 %v8793_v52, %v5442_v42  ;;  %v5296_v30 = vmax.f32 %v5264_v27, 0.0  ;;  %v2707_v1 = vadd.f32 %v9261_v20, %v9260_v33 }
 0x439   : > { %v3812_v27 = vadd.f32 %v8748_v23, %v3387_v3  ;;  %v9264_v23 = vld [vmem:[#allocation74_spill] sm:$0xff] }
 0x43a   : > { %v5515_v56 = vadd.f32 %v5443_v57, %v5342_v28  ;;  %v5316_v31 = vpack.c.bf16 %v5296_v30, %v5295_v49  ;;  %v4804_v54 = vadd.f32 %v4760_v34, %v4123_v41  ;;  %v9256_v34 = vld [vmem:[#allocation16_spill] sm:$0xff]  ;;  %v5345_v28 = vld [vmem:[%s6666_s19 + $0x40] sm:$0xff]  ;;  %v2708_v63 = vadd.f32 %v9264_v23, %v9263_v5 }
 0x43b   : > { %v3386_v45 = vadd.f32 %v9256_v34, %v2705_v11  ;;  %v9265_v34 = vld [vmem:[#allocation20_spill] sm:$0xff] }
 0x43c   : > { %v5547_v40 = vmax.f32 %v5515_v56, 0.0  ;;  %5484 = vmatmul.bf16.gmra.mxu2 %v5316_v31  ;;  %v5229_v6 = vadd.f32 %v5185_v26, %v4804_v54  ;;  %v4767_v38 = vpop.f32.mrf.mxu0  ;;  %v9262_v56 = vld [vmem:[#allocation18_spill] sm:$0xff] }
 0x43d   : > { %v3811_v24 = vadd.f32 %v8737_v32, %v3386_v45  ;;  %v3388_v31 = vadd.f32 %v9262_v56, %v2707_v1  ;;  %v3389_v45 = vadd.f32 %v9265_v34, %v2708_v63  ;;  %v9271_v56 = vld [vmem:[#allocation29_spill] sm:$0xff] }
 0x43e   : > { %5579 = vst.msk [vmem:[%s8807_s23 + $0x28] sm:$0xff] %vm447_vm0, %v5547_v40  ;;  %v5265_v14 = vadd.f32 %v8605_v7, %v5229_v6 }
 0x43f   : > { %v4081_v51 = vpop.f32.mrf.mxu3  ;;  %v5445_v47 = vpop.f32.mrf.mxu2  ;;  %v3814_v29 = vadd.f32 %v8768_v37, %v3389_v45 }
 0x440   : > { %v4124_v12 = vadd.f32 %v4081_v51, %v3810_v36  ;;  %v5446_v46 = vadd.f32 %v8793_v52, %v5445_v47  ;;  %v5297_v62 = vmax.f32 %v5265_v14, 0.0  ;;  %v3813_v36 = vadd.f32 %v8759_v35, %v3388_v31  ;;  %v5346_v47 = vld [vmem:[%s6666_s19 + $0x48] sm:$0xff]  ;;  %v9266_v14 = vld [vmem:[#allocation86_spill] sm:$0xff] }
 0x441   : > { %v2709_v2 = vadd.f32 %v9267_v44, %v9266_v14 }
 0x442   : > { %v4805_v13 = vadd.f32 %v4762_v39, %v4124_v12  ;;  %v5516_v10 = vadd.f32 %v5446_v46, %v5343_v53  ;;  %v5192_v39 = vpop.f32.mrf.mxu1 }
 0x444   : > { %v5230_v16 = vadd.f32 %v5187_v19, %v4805_v13  ;;  %v5548_v50 = vmax.f32 %v5516_v10, 0.0  ;;  %v4770_v8 = vpop.f32.mrf.mxu0 }
 0x446   : > { %5580 = vst.msk [vmem:[%s8807_s23 + $0x30] sm:$0xff] %vm447_vm0, %v5548_v50  ;;  %v5266_v26 = vadd.f32 %v8605_v7, %v5230_v16 }
 0x447   : > { %v4084_v25 = vpop.f32.mrf.mxu3  ;;  %v5447_v48 = vpop.f32.mrf.mxu2 }
 0x448   : > { %v4125_v58 = vadd.f32 %v4084_v25, %v3811_v24  ;;  %v5448_v18 = vadd.f32 %v8793_v52, %v5447_v48  ;;  %v5298_v60 = vmax.f32 %v5266_v26, 0.0  ;;  %v5347_v26 = vld [vmem:[%s6666_s19 + $0x50] sm:$0xff] }
 0x44a   : > { %v5517_v61 = vadd.f32 %v5448_v18, %v5344_v43  ;;  %v5317_v17 = vpack.c.bf16 %v5298_v60, %v5297_v62  ;;  %v4806_v4 = vadd.f32 %v4765_v22, %v4125_v58  ;;  %v5195_v11 = vpop.f32.mrf.mxu1 }
 0x44c   : > { %v5549_v32 = vmax.f32 %v5517_v61, 0.0  ;;  %5489 = vmatmul.bf16.gmra.mxu2 %v5317_v17  ;;  %v5231_v19 = vadd.f32 %v5190_v59, %v4806_v4  ;;  %v4772_v35 = vpop.f32.mrf.mxu0  ;;  %v9270_v4 = vld [vmem:[#allocation77_spill] sm:$0xff] }
 0x44e   : > { %5581 = vst.msk [vmem:[%s8807_s23 + $0x38] sm:$0xff] %vm447_vm0, %v5549_v32  ;;  %v5267_v40 = vadd.f32 %v8605_v7, %v5231_v19 }
 0x44f   : > { %v4086_v9 = vpop.f32.mrf.mxu3  ;;  %v5450_v42 = vpop.f32.mrf.mxu2 }
 0x450   : > { %v4126_v41 = vadd.f32 %v4086_v9, %v3812_v27  ;;  %v5451_v57 = vadd.f32 %v8793_v52, %v5450_v42  ;;  %v5299_v46 = vmax.f32 %v5267_v40, 0.0  ;;  %v5348_v27 = vld [vmem:[%s6666_s19 + $0x58] sm:$0xff]  ;;  %v5349_v40 = vld [vmem:[%s6666_s19 + $0x60] sm:$0xff] }
 0x452   : > { %v4807_v49 = vadd.f32 %v4767_v38, %v4126_v41  ;;  %v5518_v30 = vadd.f32 %v5451_v57, %v5345_v28  ;;  %v5197_v18 = vpop.f32.mrf.mxu1  ;;  %v9268_v38 = vld [vmem:[#allocation23_spill] sm:$0xff] }
 0x453   : > { %v3390_v61 = vadd.f32 %v9268_v38, %v2709_v2  ;;  %v5354_v38 = vld [vmem:[%s6666_s19 + $0x88] sm:$0xff] }
 0x454   : > { %v5232_v21 = vadd.f32 %v5192_v39, %v4807_v49  ;;  %v5550_v54 = vmax.f32 %v5518_v30, 0.0  ;;  %v9269_v39 = vld [vmem:[#allocation8_spill] sm:$0xff]  ;;  %v4775_v32 = vpop.f32.mrf.mxu0 }
 0x455   : > { %v2710_v37 = vadd.f32 %v9270_v4, %v9269_v39  ;;  %v3815_v33 = vadd.f32 %v8776_v0, %v3390_v61  ;;  %v5355_v39 = vld [vmem:[%s6666_s19 + $0x90] sm:$0xff] }
 0x456   : > { %5582 = vst.msk [vmem:[%s8807_s23 + $0x40] sm:$0xff] %vm447_vm0, %v5550_v54  ;;  %v5268_v51 = vadd.f32 %v8605_v7, %v5232_v21 }
 0x457   : > { %v4089_v53 = vpop.f32.mrf.mxu3  ;;  %v5452_v22 = vpop.f32.mrf.mxu2  ;;  %v3391_v31 = vadd.f32 %v9271_v56, %v2710_v37 }
 0x458   : > { %v4127_v6 = vadd.f32 %v4089_v53, %v3813_v36  ;;  %v5453_v12 = vadd.f32 %v8793_v52, %v5452_v22  ;;  %v5300_v59 = vmax.f32 %v5268_v51, 0.0 }
 0x459   : > { %v3816_v0 = vadd.f32 %v8787_v55, %v3391_v31 }
 0x45a   : > { %v5519_v13 = vadd.f32 %v5453_v12, %v5346_v47  ;;  %v5318_v10 = vpack.c.bf16 %v5300_v59, %v5299_v46  ;;  %v4808_v16 = vadd.f32 %v4770_v8, %v4127_v6  ;;  %v5200_v57 = vpop.f32.mrf.mxu1  ;;  %v5350_v46 = vld [vmem:[%s6666_s19 + $0x68] sm:$0xff] }
 0x45c   : > { %v5551_v50 = vmax.f32 %v5519_v13, 0.0  ;;  %5494 = vmatmul.bf16.gmra.mxu2 %v5318_v10  ;;  %v5233_v43 = vadd.f32 %v5195_v11, %v4808_v16  ;;  %v4777_v36 = vpop.f32.mrf.mxu0 }
 0x45e   : > { %5583 = vst.msk [vmem:[%s8807_s23 + $0x48] sm:$0xff] %vm447_vm0, %v5551_v50  ;;  %v5269_v3 = vadd.f32 %v8605_v7, %v5233_v43 }
 0x45f   : > { %v4091_v24 = vpop.f32.mrf.mxu3  ;;  %v5455_v25 = vpop.f32.mrf.mxu2 }
 0x460   : > { %v4128_v48 = vadd.f32 %v4091_v24, %v3814_v29  ;;  %v5456_v58 = vadd.f32 %v8793_v52, %v5455_v25  ;;  %v5301_v19 = vmax.f32 %v5269_v3, 0.0  ;;  %v5352_v29 = vld [vmem:[%s6666_s19 + $0x78] sm:$0xff] }
 0x462   : > { %v4809_v62 = vadd.f32 %v4772_v35, %v4128_v48  ;;  %v5520_v60 = vadd.f32 %v5456_v58, %v5347_v26  ;;  %v5202_v47 = vpop.f32.mrf.mxu1  ;;  %v5351_v35 = vld [vmem:[%s6666_s19 + $0x70] sm:$0xff]  ;;  %v5353_v48 = vld [vmem:[%s6666_s19 + $0x80] sm:$0xff] }
 0x464   : > { %v5234_v17 = vadd.f32 %v5197_v18, %v4809_v62  ;;  %v5552_v15 = vmax.f32 %v5520_v60, 0.0 }
 0x466   : > { %5584 = vst.msk [vmem:[%s8807_s23 + $0x50] sm:$0xff] %vm447_vm0, %v5552_v15  ;;  %v5270_v20 = vadd.f32 %v8605_v7, %v5234_v17 }
 0x467   : > { %v4094_v1 = vpop.f32.mrf.mxu3  ;;  %v5457_v9 = vpop.f32.mrf.mxu2 }
 0x468   : > { %v4129_v28 = vadd.f32 %v4094_v1, %v3815_v33  ;;  %v5458_v42 = vadd.f32 %v8793_v52, %v5457_v9  ;;  %v5302_v41 = vmax.f32 %v5270_v20, 0.0  ;;  %v5356_v20 = vld [vmem:[%s6666_s19 + $0x98] sm:$0xff] }
 0x46a   : > { %v5521_v49 = vadd.f32 %v5458_v42, %v5348_v27  ;;  %v5319_v30 = vpack.c.bf16 %v5302_v41, %v5301_v19  ;;  %v4810_v8 = vadd.f32 %v4775_v32, %v4129_v28  ;;  %v5357_v42 = vld [vmem:[%s6666_s19 + $0xa0] sm:$0xff] }
 0x46c   : > { %v5553_v21 = vmax.f32 %v5521_v49, 0.0  ;;  %5499 = vmatmul.bf16.gmra.mxu2 %v5319_v30  ;;  %v5235_v23 = vadd.f32 %v5200_v57, %v4810_v8  ;;  %v5358_v30 = vld [vmem:[%s6666_s19 + $0xa8] sm:$0xff] }
 0x46e   : > { %5585 = vst.msk [vmem:[%s8807_s23 + $0x58] sm:$0xff] %vm447_vm0, %v5553_v21  ;;  %v5271_v12 = vadd.f32 %v8605_v7, %v5235_v23 }
 0x46f   : > { %v4096_v54 = vpop.f32.mrf.mxu3  ;;  %v5460_v5 = vpop.f32.mrf.mxu2 }
 0x470   : > { %v4130_v63 = vadd.f32 %v4096_v54, %v3816_v0  ;;  %v5461_v11 = vadd.f32 %v8793_v52, %v5460_v5  ;;  %v5303_v10 = vmax.f32 %v5271_v12, 0.0  ;;  %v5359_v0 = vld [vmem:[%s6666_s19 + $0xb0] sm:$0xff] }
 0x472   : > { %v4811_v51 = vadd.f32 %v4777_v36, %v4130_v63  ;;  %v5522_v53 = vadd.f32 %v5461_v11, %v5349_v40  ;;  %v5360_v63 = vld [vmem:[%s6666_s19 + $0xb8] sm:$0xff] }
 0x474   : > { %v5236_v22 = vadd.f32 %v5202_v47, %v4811_v51  ;;  %v5554_v6 = vmax.f32 %v5522_v53, 0.0  ;;  %v5361_v47 = vld [vmem:[%s6666_s19 + $0xc0] sm:$0xff] }
 0x476   : > { %5586 = vst.msk [vmem:[%s8807_s23 + $0x60] sm:$0xff] %vm447_vm0, %v5554_v6  ;;  %v5272_v55 = vadd.f32 %v8605_v7, %v5236_v22 }
 0x477   : > { %v5462_v59 = vpop.f32.mrf.mxu2 }
 0x478   : > { %v5463_v13 = vadd.f32 %v8793_v52, %v5462_v59  ;;  %v5304_v34 = vmax.f32 %v5272_v55, 0.0 }
 0x47a   : > { %v5523_v45 = vadd.f32 %v5463_v13, %v5350_v46  ;;  %v5320_v16 = vpack.c.bf16 %v5304_v34, %v5303_v10  ;;  %v5362_v46 = vld [vmem:[%s6666_s19 + $0xc8] sm:$0xff] }
 0x47c   : > { %v5555_v50 = vmax.f32 %v5523_v45, 0.0  ;;  %5504 = vmatmul.bf16.gmra.mxu2 %v5320_v16  ;;  %v5363_v45 = vld [vmem:[%s6666_s19 + $0xd0] sm:$0xff] }
 0x47e   : > { %5587 = vst.msk [vmem:[%s8807_s23 + $0x68] sm:$0xff] %vm447_vm0, %v5555_v50 }
 0x47f   : > { %v5465_v14 = vpop.f32.mrf.mxu2 }
 0x480   : > { %v5466_v7 = vadd.f32 %v8793_v52, %v5465_v14 }
 0x482   : > { %v5524_v44 = vadd.f32 %v5466_v7, %v5351_v35  ;;  %v5364_v7 = vld [vmem:[%s6666_s19 + $0xd8] sm:$0xff] }
 0x484   : > { %v5556_v2 = vmax.f32 %v5524_v44, 0.0 }
 0x486   : > { %5588 = vst.msk [vmem:[%s8807_s23 + $0x70] sm:$0xff] %vm447_vm0, %v5556_v2 }
 0x487   : > { %v5467_v24 = vpop.f32.mrf.mxu2 }
 0x488   : > { %v5468_v26 = vadd.f32 %v8793_v52, %v5467_v24 }
 0x48a   : > { %v5525_v25 = vadd.f32 %v5468_v26, %v5352_v29  ;;  %v5365_v26 = vld [vmem:[%s6666_s19 + $0xe0] sm:$0xff] }
 0x48c   : > { %v5557_v43 = vmax.f32 %v5525_v25, 0.0 }
 0x48e   : > { %5589 = vst.msk [vmem:[%s8807_s23 + $0x78] sm:$0xff] %vm447_vm0, %v5557_v43 }
 0x48f   : > { %v5470_v58 = vpop.f32.mrf.mxu2 }
 0x490   : > { %v5471_v18 = vadd.f32 %v8793_v52, %v5470_v58 }
 0x492   : > { %v5526_v62 = vadd.f32 %v5471_v18, %v5353_v48  ;;  %v5366_v18 = vld [vmem:[%s6666_s19 + $0xe8] sm:$0xff] }
 0x494   : > { %v5558_v60 = vmax.f32 %v5526_v62, 0.0 }
 0x496   : > { %5590 = vst.msk [vmem:[%s8807_s23 + $0x80] sm:$0xff] %vm447_vm0, %v5558_v60 }
 0x497   : > { %v5472_v61 = vpop.f32.mrf.mxu2 }
 0x498   : > { %v5473_v17 = vadd.f32 %v8793_v52, %v5472_v61 }
 0x49a   : > { %v5527_v15 = vadd.f32 %v5473_v17, %v5354_v38  ;;  %v5367_v17 = vld [vmem:[%s6666_s19 + $0xf0] sm:$0xff] }
 0x49c   : > { %v5559_v3 = vmax.f32 %v5527_v15, 0.0 }
 0x49e   : > { %5591 = vst.msk [vmem:[%s8807_s23 + $0x88] sm:$0xff] %vm447_vm0, %v5559_v3 }
 0x49f   : > { %v5475_v4 = vpop.f32.mrf.mxu2 }
 0x4a0   : > { %v5476_v37 = vadd.f32 %v8793_v52, %v5475_v4 }
 0x4a2   : > { %v5528_v32 = vadd.f32 %v5476_v37, %v5355_v39  ;;  %v5368_v37 = vld [vmem:[%s6666_s19 + $0xf8] sm:$0xff] }
 0x4a4   : > { %v5560_v33 = vmax.f32 %v5528_v32, 0.0 }
 0x4a6   : > { %5592 = vst.msk [vmem:[%s8807_s23 + $0x90] sm:$0xff] %vm447_vm0, %v5560_v33 }
 0x4a7   : > { %v5477_v1 = vpop.f32.mrf.mxu2 }
 0x4a8   : > { %v5478_v27 = vadd.f32 %v8793_v52, %v5477_v1 }
 0x4aa   : > { %v5529_v9 = vadd.f32 %v5478_v27, %v5356_v20 }
 0x4ac   : > { %v5561_v28 = vmax.f32 %v5529_v9, 0.0 }
 0x4ae   : > { %5593 = vst.msk [vmem:[%s8807_s23 + $0x98] sm:$0xff] %vm447_vm0, %v5561_v28 }
 0x4af   : > { %v5480_v19 = vpop.f32.mrf.mxu2 }
 0x4b0   : > { %v5481_v41 = vadd.f32 %v8793_v52, %v5480_v19 }
 0x4b2   : > { %v5530_v57 = vadd.f32 %v5481_v41, %v5357_v42 }
 0x4b4   : > { %v5562_v49 = vmax.f32 %v5530_v57, 0.0 }
 0x4b6   : > { %5594 = vst.msk [vmem:[%s8807_s23 + $0xa0] sm:$0xff] %vm447_vm0, %v5562_v49 }
 0x4b7   : > { %v5482_v56 = vpop.f32.mrf.mxu2 }
 0x4b8   : > { %v5483_v31 = vadd.f32 %v8793_v52, %v5482_v56 }
 0x4ba   : > { %v5531_v8 = vadd.f32 %v5483_v31, %v5358_v30 }
 0x4bc   : > { %v5563_v21 = vmax.f32 %v5531_v8, 0.0 }
 0x4be   : > { %5595 = vst.msk [vmem:[%s8807_s23 + $0xa8] sm:$0xff] %vm447_vm0, %v5563_v21 }
 0x4bf   : > { %v5485_v54 = vpop.f32.mrf.mxu2 }
 0x4c0   : > { %v5486_v40 = vadd.f32 %v8793_v52, %v5485_v54 }
 0x4c2   : > { %v5532_v5 = vadd.f32 %v5486_v40, %v5359_v0 }
 0x4c4   : > { %v5564_v23 = vmax.f32 %v5532_v5, 0.0 }
 0x4c6   : > { %5596 = vst.msk [vmem:[%s8807_s23 + $0xb0] sm:$0xff] %vm447_vm0, %v5564_v23 }
 0x4c7   : > { %v5487_v11 = vpop.f32.mrf.mxu2 }
 0x4c8   : > { %v5488_v36 = vadd.f32 %v8793_v52, %v5487_v11 }
 0x4ca   : > { %v5533_v51 = vadd.f32 %v5488_v36, %v5360_v63 }
 0x4cc   : > { %v5565_v53 = vmax.f32 %v5533_v51, 0.0 }
 0x4ce   : > { %5597 = vst.msk [vmem:[%s8807_s23 + $0xb8] sm:$0xff] %vm447_vm0, %v5565_v53 }
 0x4cf   : > { %v5490_v22 = vpop.f32.mrf.mxu2 }
 0x4d0   : > { %v5491_v6 = vadd.f32 %v8793_v52, %v5490_v22 }
 0x4d2   : > { %v5534_v12 = vadd.f32 %v5491_v6, %v5361_v47 }
 0x4d4   : > { %v5566_v55 = vmax.f32 %v5534_v12, 0.0 }
 0x4d6   : > { %5598 = vst.msk [vmem:[%s8807_s23 + $0xc0] sm:$0xff] %vm447_vm0, %v5566_v55 }
 0x4d7   : > { %v5492_v59 = vpop.f32.mrf.mxu2 }
 0x4d8   : > { %v5493_v13 = vadd.f32 %v8793_v52, %v5492_v59 }
 0x4da   : > { %v5535_v10 = vadd.f32 %v5493_v13, %v5362_v46 }
 0x4dc   : > { %v5567_v34 = vmax.f32 %v5535_v10, 0.0 }
 0x4de   : > { %5599 = vst.msk [vmem:[%s8807_s23 + $0xc8] sm:$0xff] %vm447_vm0, %v5567_v34 }
 0x4df   : > { %v5495_v16 = vpop.f32.mrf.mxu2 }
 0x4e0   : > { %v5496_v50 = vadd.f32 %v8793_v52, %v5495_v16 }
 0x4e2   : > { %v5536_v35 = vadd.f32 %v5496_v50, %v5363_v45 }
 0x4e4   : > { %v5568_v14 = vmax.f32 %v5536_v35, 0.0 }
 0x4e6   : > { %5600 = vst.msk [vmem:[%s8807_s23 + $0xd0] sm:$0xff] %vm447_vm0, %v5568_v14 }
 0x4e7   : > { %v5497_v44 = vpop.f32.mrf.mxu2 }
 0x4e8   : > { %v5498_v2 = vadd.f32 %v8793_v52, %v5497_v44 }
 0x4ea   : > { %v5537_v29 = vadd.f32 %v5498_v2, %v5364_v7 }
 0x4ec   : > { %v5569_v24 = vmax.f32 %v5537_v29, 0.0 }
 0x4ee   : > { %5601 = vst.msk [vmem:[%s8807_s23 + $0xd8] sm:$0xff] %vm447_vm0, %v5569_v24 }
 0x4ef   : > { %v5500_v25 = vpop.f32.mrf.mxu2 }
 0x4f0   : > { %v5501_v43 = vadd.f32 %v8793_v52, %v5500_v25 }
 0x4f2   : > { %v5538_v48 = vadd.f32 %v5501_v43, %v5365_v26 }
 0x4f4   : > { %v5570_v58 = vmax.f32 %v5538_v48, 0.0 }
 0x4f6   : > { %5602 = vst.msk [vmem:[%s8807_s23 + $0xe0] sm:$0xff] %vm447_vm0, %v5570_v58 }
 0x4f7   : > { %v5502_v62 = vpop.f32.mrf.mxu2 }
 0x4f8   : > { %v5503_v60 = vadd.f32 %v8793_v52, %v5502_v62 }
 0x4fa   : > { %v5539_v38 = vadd.f32 %v5503_v60, %v5366_v18 }
 0x4fc   : > { %v5571_v61 = vmax.f32 %v5539_v38, 0.0 }
 0x4fe   : > { %5603 = vst.msk [vmem:[%s8807_s23 + $0xe8] sm:$0xff] %vm447_vm0, %v5571_v61 }
 0x4ff   : > { %v5505_v15 = vpop.f32.mrf.mxu2 }
 0x500   : > { %v5506_v3 = vadd.f32 %v8793_v52, %v5505_v15 }
 0x502   : > { %v5540_v39 = vadd.f32 %v5506_v3, %v5367_v17 }
 0x504   : > { %v5572_v4 = vmax.f32 %v5540_v39, 0.0 }
 0x506   : > { %5604 = vst.msk [vmem:[%s8807_s23 + $0xf0] sm:$0xff] %vm447_vm0, %v5572_v4 }
 0x507   : > { %v5507_v32 = vpop.f32.mrf.mxu2 }
 0x508   : > { %v5508_v33 = vadd.f32 %v8793_v52, %v5507_v32 }
 0x50a   : > { %v5541_v20 = vadd.f32 %v5508_v33, %v5368_v37 }
 0x50c   : > { %v5573_v1 = vmax.f32 %v5541_v20, 0.0 }
 0x50e   : > { %5605 = vst.msk [vmem:[%s8807_s23 + $0xf8] sm:$0xff] %vm447_vm0, %v5573_v1 }
 0x50f   : > { %6530 = shalt.err (!%p6527_p3)
}
 0x510   : > { %s6568_s21 = smov 128   ;;  %s6569_s23 = smov 8  }
 0x511   : > { %6424 = dma.vmem_to_hbm [thread:$0]  (%p6648_p5), %s5620_s14, 4096, %s5622_s15, %s5607_s28, %s6568_s21, %s6568_s21, %s6569_s23  }
 0x512 PF: > { %p6430_p4 = scmp.ge.s32.totalorder %s6565_s27, 2  ;;  %s5636_s8 = sand.u32 1, %s6553_s24  }
 0x513   : > { %s5637_s9 = scalar_lea.sflag [#allocation4], %s5636_s8 }
 0x514   : > { %p6427_p7 = pnand %p6430_p4, %p6652_p6 }
 0x516   : > { %p6428_p8 = pneg %p6427_p7 }
 0x518   : > { %6548 = dma.done.wait (%p6428_p8), %s5637_s9, 4096  }
 0x519   : > { %6550 = vsyncadd (%p6428_p8), %s5637_s9, 4294963200  ;;  %p17_p9 = scmp.ge.s32.totalorder %s6635_s30, 4   ;;  %s9272_s24 = smov %s6557_s25 }
 0x51a   : > { %s9273_s25 = smov %s6561_s26  ;;  %s9274_s26 = smov %s6646_s10 }
 0x51b   : > { %s9275_s27 = smov %s6635_s30  ;;  %19 = sbr.rel (!%p17_p9) target bundleno = 3 (0x3), region = 86 }
 0x520   :  { %5643 = vsyncpa [#allocation4], 1 }
 0x521   :  { %5645 = vsyncpa [#allocation4 + $0x1], 1 }

</bundles_post_ra>
